<compile_context>
chip_gen: v6e
topology: v6e:2x2x1
jax: 0.10.0
libtpu: 0.0.40
codegen_flags: <defaults>
</compile_context>

<pallas_src>
import functools
import math

import numpy as np
import jax
import jax.numpy as jnp
from jax.experimental import pallas as pl
from jax.experimental.pallas import tpu as pltpu


# ----------------------------- configuration --------------------------------

HIDDEN = 32
NUM_HEADS = 4
HEAD_DIM = HIDDEN // NUM_HEADS
D_FF = 64
NUM_EXPERTS = 4
TOPK = 2
GRID_SIZE = 5
SPLINE_ORDER = 3
N_BASIS = GRID_SIZE + SPLINE_ORDER            # spline basis functions per input
N_KNOTS = GRID_SIZE + 2 * SPLINE_ORDER + 1    # knots per input feature
RMS_EPS = 1e-6

# MXU operand dtype.  f32 keeps exact parity with the f32 reference and the
# top-k routing at these toy shapes.
# TODO(synk): on v6e/v7x store weights bf16-at-rest and set MXU_DTYPE=bfloat16
# (keep preferred_element_type=f32); loosen the final tolerance accordingly.
MXU_DTYPE = jnp.float32

# Uniform B-spline knots, baked as Python constants so every Cox-de-Boor
# denominator is a compile-time reciprocal (no full-tile divides in-kernel).
_KNOT_STEP = 2.0 / GRID_SIZE
_KNOTS_F32 = (np.arange(-SPLINE_ORDER, GRID_SIZE + SPLINE_ORDER + 1,
                        dtype=np.float32) * np.float32(_KNOT_STEP)
              - np.float32(1.0))
KNOTS = tuple(float(v) for v in _KNOTS_F32)


# ----------------------------- in-kernel helpers -----------------------------

def _rmsnorm(x, w, eps):
    ms = jnp.mean(x * x, axis=-1, keepdims=True)
    return x * jax.lax.rsqrt(ms + eps) * w


def _bspline_bases(x, knots, order):
    """Cox-de-Boor recursion with scalar (trace-time constant) knots.

    Returns a list of len(knots) - 1 - order arrays, each shaped like x.
    Denominators are Python constants -> precomputed reciprocals (no divide).
    """
    n_knots = len(knots)
    bases = [jnp.where((x >= knots[i]) & (x < knots[i + 1]), 1.0, 0.0)
             for i in range(n_knots - 1)]
    for k in range(1, order + 1):
        nxt = []
        for i in range(n_knots - 1 - k):
            inv_l = 1.0 / (knots[i + k] - knots[i])
            inv_r = 1.0 / (knots[i + k + 1] - knots[i + 1])
            nxt.append((x - knots[i]) * inv_l * bases[i]
                       + (knots[i + k + 1] - x) * inv_r * bases[i + 1])
        bases = nxt
    return bases


def _kan_apply(x, wbT, wsT, knots, order, mxu_dtype):
    """KANLinear on a resident tile: silu(x) @ Wb^T + basis(x) @ Ws^T.

    wsT is pre-flattened to (n_basis*K, N); the basis is concatenated along
    lanes so the spline path is ONE MXU contraction (n_basis folded into K).
    """
    base = x * jax.nn.sigmoid(x)
    acc = jnp.dot(base.astype(mxu_dtype), wbT.astype(mxu_dtype),
                  preferred_element_type=jnp.float32)
    bcat = jnp.concatenate(_bspline_bases(x, knots, order), axis=-1)
    acc = acc + jnp.dot(bcat.astype(mxu_dtype), wsT.astype(mxu_dtype),
                        preferred_element_type=jnp.float32)
    return acc


# ----------------------------- Pallas kernels -------------------------------

def attn_block_kernel(x_ref, n1w_ref, n2w_ref, wbT_ref, wsT_ref,
                      cos_ref, sin_ref, owT_ref, ob_ref, gw_ref,
                      y1_ref, logits_ref, *,
                      num_heads, head_dim, knots, order, eps, mxu_dtype):
    """Fused attention half: rmsnorm1 -> KAN qkv -> RoPE -> attention ->
    out-projection -> residual -> rmsnorm2 -> gate logits.  One batch/step."""
    S = x_ref.shape[1]
    dh = head_dim // 2
    nhd = num_heads * dh

    x = x_ref[0]                                         # (S, H)
    h = _rmsnorm(x, n1w_ref[...], eps)

    # KAN qkv projection; weight rows are pre-permuted so the output columns
    # are [Q_even | Q_odd | K_even | K_odd | V] (head-major inside each group).
    qkv = _kan_apply(h, wbT_ref[...], wsT_ref[...], knots, order, mxu_dtype)

    cos = cos_ref[...]                                   # (S, nhd) head-tiled
    sin = sin_ref[...]
    qe = qkv[:, 0 * nhd:1 * nhd]
    qo = qkv[:, 1 * nhd:2 * nhd]
    ke = qkv[:, 2 * nhd:3 * nhd]
    ko = qkv[:, 3 * nhd:4 * nhd]
    v = qkv[:, 4 * nhd:4 * nhd + num_heads * head_dim]

    # RoPE as a complex rotation on the even/odd halves (no lane swizzle).
    nrq = qe * cos - qo * sin
    niq = qe * sin + qo * cos
    nrk = ke * cos - ko * sin
    nik = ke * sin + ko * cos

    def split_heads(t, d):                               # (S, NH*d) -> (NH, S, d)
        return jnp.stack([t[:, hh * d:(hh + 1) * d] for hh in range(num_heads)],
                         axis=0)

    # Full head_dim-wide rotated tiles [nr | ni]; q_rot . k_rot is exact.
    qr = jnp.concatenate([split_heads(nrq, dh), split_heads(niq, dh)], axis=-1)
    kr = jnp.concatenate([split_heads(nrk, dh), split_heads(nik, dh)], axis=-1)
    vh = split_heads(v, head_dim)                        # (NH, S, D)

    scale = 1.0 / math.sqrt(head_dim)
    s = jnp.einsum("hqd,hkd->hqk", qr, kr,
                   preferred_element_type=jnp.float32) * scale
    s = s - jnp.max(s, axis=-1, keepdims=True)
    es = jnp.exp(s)
    inv = pl.reciprocal(jnp.sum(es, axis=-1, keepdims=True), approx=False)
    p = es * inv
    ctx = jnp.einsum("hqk,hkd->hqd", p, vh,
                     preferred_element_type=jnp.float32)  # (NH, S, D)

    # Out-projection fused: accumulate per head directly against the
    # head-sliced out-weight, avoiding the (NH,S,D)->(S,H) transpose/concat.
    acc = jnp.dot(ctx[0], owT_ref[0], preferred_element_type=jnp.float32)
    for hh in range(1, num_heads):
        acc = acc + jnp.dot(ctx[hh], owT_ref[hh],
                            preferred_element_type=jnp.float32)

    y1 = x + acc + ob_ref[...]                           # residual add fused
    y1_ref[0] = y1.astype(y1_ref.dtype)

    # RMSNorm2 + gate logits fused (feeds the MoE router glue).
    h2 = _rmsnorm(y1, n2w_ref[...], eps)
    logits_ref[0] = jnp.dot(h2.astype(mxu_dtype), gw_ref[...].astype(mxu_dtype),
                            preferred_element_type=jnp.float32
                            ).astype(logits_ref.dtype)


def moe_block_kernel(y1_ref, dw_ref, n2w_ref,
                     l1b_ref, l1s_ref, l2b_ref, l2s_ref, l3b_ref, l3s_ref,
                     o_ref, *, knots, order, eps, mxu_dtype):
    """Fused MoE half for one (row-block, expert) grid step.

    out = y1 + sum_e w_e * l3( l1(rmsnorm2(y1)) * l2(rmsnorm2(y1)) )
    accumulated directly into the resident output block over the expert axis.
    """
    e = pl.program_id(1)

    @pl.when(e == 0)
    def _init():
        o_ref[...] = y1_ref[...]                         # residual

    y1 = y1_ref[...]                                     # (tm, H)
    h = _rmsnorm(y1, n2w_ref[...], eps)
    h1 = _kan_apply(h, l1b_ref[0], l1s_ref[0], knots, order, mxu_dtype)
    h2 = _kan_apply(h, l2b_ref[0], l2s_ref[0], knots, order, mxu_dtype)
    y = _kan_apply(h1 * h2, l3b_ref[0], l3s_ref[0], knots, order, mxu_dtype)
    o_ref[...] += dw_ref[0] * y                          # routing weight fused


# ----------------------------- init-time weight prep -------------------------

def _prep_kan_weights(kan):
    """Fold the spline scaler and pre-transpose into matmul-ready layouts."""
    out_f, in_f = kan["base_w"].shape
    scaled = kan["spline_w"] * kan["scaler"][..., None]          # (out, in, nb)
    wsT = jnp.transpose(scaled, (2, 1, 0)).reshape(N_BASIS * in_f, out_f)
    return kan["base_w"].T, wsT                                  # (in,out), (nb*in,out)


def qkv_even_odd_permutation(num_heads, head_dim):
    """Output-column permutation -> [Q_even | Q_odd | K_even | K_odd | V]."""
    q_even, q_odd, k_even, k_odd, v_cols = [], [], [], [], []
    for h in range(num_heads):
        base = 3 * head_dim * h
        q_even += [base + d for d in range(0, head_dim, 2)]
        q_odd += [base + d for d in range(1, head_dim, 2)]
        k_even += [base + head_dim + d for d in range(0, head_dim, 2)]
        k_odd += [base + head_dim + d for d in range(1, head_dim, 2)]
        v_cols += [base + 2 * head_dim + d for d in range(head_dim)]
    return np.asarray(q_even + q_odd + k_even + k_odd + v_cols, dtype=np.int32)


def prepare_params(p):
    """One-time preprocessing (permutation, scaler fold, transposes, expert
    stacking, RoPE tiling) hoisted out of the jitted forward."""
    NH, D, H = p["num_heads"], HEAD_DIM, HIDDEN
    perm = qkv_even_odd_permutation(NH, D)
    qkv = p["qkv"]
    qkv_perm = dict(base_w=qkv["base_w"][perm],
                    spline_w=qkv["spline_w"][perm],
                    scaler=qkv["scaler"][perm])
    qkv_wbT, qkv_wsT = _prep_kan_weights(qkv_perm)

    def stack(layer, idx):
        ws = [_prep_kan_weights(ex[layer]) for ex in p["experts"]]
        return jnp.stack([w[idx] for w in ws], axis=0)

    return dict(
        num_heads=NH, num_experts=p["num_experts"], topk=p["topk"],
        norm1_w=p["norm1_w"].reshape(1, H),
        norm2_w=p["norm2_w"].reshape(1, H),
        qkv_wbT=qkv_wbT,                       # (H, 3H)
        qkv_wsT=qkv_wsT,                       # (N_BASIS*H, 3H)
        cos_t=jnp.tile(p["cos_half"], (1, NH)),
        sin_t=jnp.tile(p["sin_half"], (1, NH)),
        out_wT_heads=p["out_w"].T.reshape(NH, D, H),
        out_b=p["out_b"].reshape(1, H),
        gate_wT=p["gate_w"].T,                 # (H, E)
        l1_wbT=stack("l1", 0), l1_wsT=stack("l1", 1),
        l2_wbT=stack("l2", 0), l2_wsT=stack("l2", 1),
        l3_wbT=stack("l3", 0), l3_wsT=stack("l3", 1),
    )


# ----------------------------- forward (Pallas path) -------------------------

def kan_block_forward(x, pp):
    B, S, H = x.shape
    NH = pp["num_heads"]
    D = H // NH
    E = pp["num_experts"]
    M = B * S

    kern_a = functools.partial(
        attn_block_kernel, num_heads=NH, head_dim=D,
        knots=KNOTS, order=SPLINE_ORDER, eps=RMS_EPS, mxu_dtype=MXU_DTYPE)

    y1, logits = pl.pallas_call(
        kern_a,
        out_shape=(jax.ShapeDtypeStruct((B, S, H), jnp.float32),
                   jax.ShapeDtypeStruct((B, S, E), jnp.float32)),
        grid=(B,),
        in_specs=[
            pl.BlockSpec((1, S, H), lambda b: (b, 0, 0)),            # x
            pl.BlockSpec((1, H), lambda b: (0, 0)),                  # norm1_w
            pl.BlockSpec((1, H), lambda b: (0, 0)),                  # norm2_w
            pl.BlockSpec((H, 3 * H), lambda b: (0, 0)),              # qkv base W^T
            pl.BlockSpec((N_BASIS * H, 3 * H), lambda b: (0, 0)),    # qkv spline W^T
            pl.BlockSpec((S, NH * D // 2), lambda b: (0, 0)),        # cos (tiled)
            pl.BlockSpec((S, NH * D // 2), lambda b: (0, 0)),        # sin (tiled)
            pl.BlockSpec((NH, D, H), lambda b: (0, 0, 0)),           # out W^T / head
            pl.BlockSpec((1, H), lambda b: (0, 0)),                  # out bias
            pl.BlockSpec((H, E), lambda b: (0, 0)),                  # gate W^T
        ],
        out_specs=(pl.BlockSpec((1, S, H), lambda b: (b, 0, 0)),
                   pl.BlockSpec((1, S, E), lambda b: (b, 0, 0))),
        compiler_params=pltpu.CompilerParams(
            dimension_semantics=("parallel",)),
    )(x, pp["norm1_w"], pp["norm2_w"], pp["qkv_wbT"], pp["qkv_wsT"],
      pp["cos_t"], pp["sin_t"], pp["out_wT_heads"], pp["out_b"], pp["gate_wT"])

    # Router (tiny, data-dependent) stays as JAX glue: top-k + softmax -> dense
    # per-expert weights, numerically identical to the PyTorch scatter loop.
    logits2d = logits.reshape(M, E)
    top_w, top_i = jax.lax.top_k(logits2d, pp["topk"])
    top_w = jax.nn.softmax(top_w, axis=-1)
    onehot = jax.nn.one_hot(top_i, E, dtype=jnp.float32)
    dense_w = jnp.einsum("mk,mke->me", top_w, onehot)                # (M, E)
    dw3 = dense_w.T.reshape(E, M, 1)

    tm = 8 if M % 8 == 0 else M
    dff = pp["l1_wbT"].shape[2]
    kern_b = functools.partial(
        moe_block_kernel, knots=KNOTS, order=SPLINE_ORDER, eps=RMS_EPS,
        mxu_dtype=MXU_DTYPE)

    out2d = pl.pallas_call(
        kern_b,
        out_shape=jax.ShapeDtypeStruct((M, H), jnp.float32),
        grid=(M // tm, E),
        in_specs=[
            pl.BlockSpec((tm, H), lambda i, e: (i, 0)),              # residual y1
            pl.BlockSpec((1, tm, 1), lambda i, e: (e, i, 0)),        # routing w
            pl.BlockSpec((1, H), lambda i, e: (0, 0)),               # norm2_w
            pl.BlockSpec((1, H, dff), lambda i, e: (e, 0, 0)),       # l1 base
            pl.BlockSpec((1, N_BASIS * H, dff), lambda i, e: (e, 0, 0)),
            pl.BlockSpec((1, H, dff), lambda i, e: (e, 0, 0)),       # l2 base
            pl.BlockSpec((1, N_BASIS * H, dff), lambda i, e: (e, 0, 0)),
            pl.BlockSpec((1, dff, H), lambda i, e: (e, 0, 0)),       # l3 base
            pl.BlockSpec((1, N_BASIS * dff, H), lambda i, e: (e, 0, 0)),
        ],
        out_specs=pl.BlockSpec((tm, H), lambda i, e: (i, 0)),
        compiler_params=pltpu.CompilerParams(
            dimension_semantics=("parallel", "arbitrary")),
    )(y1.reshape(M, H), dw3, pp["norm2_w"],
      pp["l1_wbT"], pp["l1_wsT"], pp["l2_wbT"], pp["l2_wsT"],
      pp["l3_wbT"], pp["l3_wsT"])

    return out2d.reshape(B, S, H)


# ----------------------------- pure-JAX reference ----------------------------

def b_splines_ref(x, grid, spline_order):
    x = x[..., None]
    bases = ((x >= grid[:, :-1]) & (x < grid[:, 1:])).astype(x.dtype)
    for k in range(1, spline_order + 1):
        left = (x - grid[:, : -(k + 1)]) / (grid[:, k:-1] - grid[:, : -(k + 1)])
        right = (grid[:, k + 1:] - x) / (grid[:, k + 1:] - grid[:, 1:-k])
        bases = left * bases[..., :-1] + right * bases[..., 1:]
    return bases


def kan_linear_ref(x2d, kan):
    basis = b_splines_ref(x2d, kan["grid"], SPLINE_ORDER)
    scaled = kan["spline_w"] * kan["scaler"][..., None]
    out = jax.nn.silu(x2d) @ kan["base_w"].T
    return out + basis.reshape(x2d.shape[0], -1) @ scaled.reshape(
        scaled.shape[0], -1).T


def rmsnorm_ref(x, w, eps=RMS_EPS):
    return w * (x * jax.lax.rsqrt(jnp.mean(x * x, axis=-1, keepdims=True) + eps))


def attention_ref(x3d, p):
    B, S, H = x3d.shape
    NH = p["num_heads"]
    D = H // NH
    qkv = kan_linear_ref(x3d.reshape(B * S, H), p["qkv"])
    qkv = qkv.reshape(B, S, NH, 3 * D).transpose(0, 2, 1, 3)
    q, k, v = qkv[..., :D], qkv[..., D:2 * D], qkv[..., 2 * D:]

    def rope(t):
        tr, ti = t[..., 0::2], t[..., 1::2]
        nr = tr * p["cos_half"] - ti * p["sin_half"]
        ni = tr * p["sin_half"] + ti * p["cos_half"]
        return jnp.stack([nr, ni], axis=-1).reshape(t.shape)

    q_r, k_r = rope(q), rope(k)
    scores = jnp.einsum("bhqd,bhkd->bhqk", q_r, k_r) / (D ** 0.5)
    attn = jax.nn.softmax(scores, axis=-1)
    ctx = jnp.einsum("bhqk,bhkd->bhqd", attn, v)
    ctx = ctx.transpose(0, 2, 1, 3).reshape(B, S, H)
    return ctx @ p["out_w"].T + p["out_b"]


def feedforward_ref(x2d, ex):
    return kan_linear_ref(
        kan_linear_ref(x2d, ex["l1"]) * kan_linear_ref(x2d, ex["l2"]), ex["l3"])


def moe_ref(x3d, p):
    B, S, H = x3d.shape
    x2d = x3d.reshape(B * S, H)
    logits = x2d @ p["gate_w"].T
    top_w, top_i = jax.lax.top_k(logits, p["topk"])
    top_w = jax.nn.softmax(top_w, axis=-1)
    onehot = jax.nn.one_hot(top_i, p["num_experts"], dtype=x2d.dtype)
    dense_w = jnp.einsum("mk,mke->me", top_w, onehot)
    out = jnp.zeros_like(x2d)
    for e in range(p["num_experts"]):
        out = out + dense_w[:, e:e + 1] * feedforward_ref(x2d, p["experts"][e])
    return out.reshape(B, S, H)


def kan_block_ref(x, p):
    x = x + attention_ref(rmsnorm_ref(x, p["norm1_w"]), p)
    x = x + moe_ref(rmsnorm_ref(x, p["norm2_w"]), p)
    return x


# ----------------------------- main ------------------------------------------

def init_kan_linear(key, in_f, out_f):
    k1, k2, k3 = jax.random.split(key, 3)
    knots = jnp.asarray(_KNOTS_F32)
    return dict(
        base_w=jax.random.normal(k1, (out_f, in_f), jnp.float32) / math.sqrt(in_f),
        spline_w=0.1 * jax.random.normal(k2, (out_f, in_f, N_BASIS), jnp.float32),
        scaler=1.0 + 0.1 * jax.random.normal(k3, (out_f, in_f), jnp.float32),
        grid=jnp.tile(knots[None, :], (in_f, 1)),
    )


if __name__ == "__main__":
    B, S = 2, 8
    key = jax.random.PRNGKey(0)
    keys = jax.random.split(key, 12)

    # RoPE rotation matrix exp(i * pos * theta_j), stored as cos/sin halves.
    inv_freq = 1.0 / (10000.0 ** (jnp.arange(0, HEAD_DIM, 2,
                                              dtype=jnp.float32) / HEAD_DIM))
    ang = jnp.arange(S, dtype=jnp.float32)[:, None] * inv_freq[None, :]

    experts = []
    for e in range(NUM_EXPERTS):
        ek = jax.random.fold_in(keys[10], e)
        e1, e2, e3 = jax.random.split(ek, 3)
        experts.append(dict(l1=init_kan_linear(e1, HIDDEN, D_FF),
                            l2=init_kan_linear(e2, HIDDEN, D_FF),
                            l3=init_kan_linear(e3, D_FF, HIDDEN)))

    params = dict(
        num_heads=NUM_HEADS,
        num_experts=NUM_EXPERTS,
        topk=TOPK,
        norm1_w=1.0 + 0.1 * jax.random.normal(keys[0], (HIDDEN,), jnp.float32),
        norm2_w=1.0 + 0.1 * jax.random.normal(keys[1], (HIDDEN,), jnp.float32),
        qkv=init_kan_linear(keys[2], HIDDEN, 3 * HIDDEN),
        out_w=jax.random.normal(keys[3], (HIDDEN, HIDDEN), jnp.float32)
        / math.sqrt(HIDDEN),
        out_b=0.01 * jax.random.normal(keys[4], (HIDDEN,), jnp.float32),
        gate_w=jax.random.normal(keys[5], (NUM_EXPERTS, HIDDEN), jnp.float32)
        / math.sqrt(HIDDEN),
        experts=experts,
        cos_half=jnp.cos(ang),
        sin_half=jnp.sin(ang),
    )

    prepared = prepare_params(params)     # one-time weight preprocessing

    x = 0.5 * jax.random.normal(keys[6], (B, S, HIDDEN), jnp.float32)

    fwd = jax.jit(lambda xx: kan_block_forward(xx, prepared))
    out = jax.block_until_ready(fwd(x))

    ref = kan_block_ref(x, params)
    assert out.shape == (B, S, HIDDEN), out.shape
    max_err = float(jnp.max(jnp.abs(out - ref)))
    assert jnp.allclose(out, ref, atol=1e-3, rtol=1e-3), max_err

    print("KERNEL_OK")
</pallas_src>

<mosaic_0001>
module attributes {stable_mosaic.version = 11 : i64} {
  func.func @attn_block_kernel(%arg0: i32, %arg1: memref<1x8x32xf32, #tpu.memory_space<vmem>>, %arg2: memref<1x32xf32, #tpu.memory_space<vmem>>, %arg3: memref<1x32xf32, #tpu.memory_space<vmem>>, %arg4: memref<32x96xf32, #tpu.memory_space<vmem>>, %arg5: memref<256x96xf32, #tpu.memory_space<vmem>>, %arg6: memref<8x16xf32, #tpu.memory_space<vmem>>, %arg7: memref<8x16xf32, #tpu.memory_space<vmem>>, %arg8: memref<4x8x32xf32, #tpu.memory_space<vmem>>, %arg9: memref<1x32xf32, #tpu.memory_space<vmem>>, %arg10: memref<32x4xf32, #tpu.memory_space<vmem>>, %arg11: memref<1x8x32xf32, #tpu.memory_space<vmem>>, %arg12: memref<1x8x4xf32, #tpu.memory_space<vmem>>) attributes {dimension_semantics = [#tpu.dimension_semantics<parallel>], iteration_bounds = array<i64: 2>, scalar_prefetch = 0 : i64, scratch_operands = 0 : i64, tpu.core_type = #tpu.core_type<tc>, window_params = [{transform_indices = @transform_0, window_bounds = array<i64: 1, 8, 32>}, {pipeline_mode = #tpu.pipeline_mode<synchronous>, transform_indices = @transform_1, window_bounds = array<i64: 1, 32>}, {pipeline_mode = #tpu.pipeline_mode<synchronous>, transform_indices = @transform_2, window_bounds = array<i64: 1, 32>}, {pipeline_mode = #tpu.pipeline_mode<synchronous>, transform_indices = @transform_3, window_bounds = array<i64: 32, 96>}, {pipeline_mode = #tpu.pipeline_mode<synchronous>, transform_indices = @transform_4, window_bounds = array<i64: 256, 96>}, {pipeline_mode = #tpu.pipeline_mode<synchronous>, transform_indices = @transform_5, window_bounds = array<i64: 8, 16>}, {pipeline_mode = #tpu.pipeline_mode<synchronous>, transform_indices = @transform_6, window_bounds = array<i64: 8, 16>}, {pipeline_mode = #tpu.pipeline_mode<synchronous>, transform_indices = @transform_7, window_bounds = array<i64: 4, 8, 32>}, {pipeline_mode = #tpu.pipeline_mode<synchronous>, transform_indices = @transform_8, window_bounds = array<i64: 1, 32>}, {pipeline_mode = #tpu.pipeline_mode<synchronous>, transform_indices = @transform_9, window_bounds = array<i64: 32, 4>}, {transform_indices = @transform_10, window_bounds = array<i64: 1, 8, 32>}, {transform_indices = @transform_11, window_bounds = array<i64: 1, 8, 4>}]} {
    %c0 = arith.constant 0 : index
    %c0_0 = arith.constant 0 : index
    %c0_1 = arith.constant 0 : index
    %0 = vector.load %arg1[%c0, %c0_0, %c0_1] : memref<1x8x32xf32, #tpu.memory_space<vmem>>, vector<1x8x32xf32>
    %1 = vector.shape_cast %0 : vector<1x8x32xf32> to vector<8x32xf32>
    %c0_2 = arith.constant 0 : index
    %c0_3 = arith.constant 0 : index
    %2 = vector.load %arg2[%c0_2, %c0_3] : memref<1x32xf32, #tpu.memory_space<vmem>>, vector<1x32xf32>
    %3 = arith.mulf %1, %1 : vector<8x32xf32>
    %cst = arith.constant dense<0.000000e+00> : vector<8xf32>
    %4 = vector.multi_reduction <add>, %3, %cst [1] : vector<8x32xf32> to vector<8xf32>
    %5 = vector.shape_cast %4 : vector<8xf32> to vector<8x1xf32>
    %cst_4 = arith.constant 3.200000e+01 : f32
    %6 = vector.broadcast %cst_4 : f32 to vector<8x1xf32>
    %7 = arith.divf %5, %6 : vector<8x1xf32>
    %cst_5 = arith.constant 9.99999997E-7 : f32
    %8 = vector.broadcast %cst_5 : f32 to vector<8x1xf32>
    %9 = arith.addf %7, %8 : vector<8x1xf32>
    %10 = math.rsqrt %9 : vector<8x1xf32>
    %11 = vector.broadcast %10 : vector<8x1xf32> to vector<8x32xf32>
    %12 = arith.mulf %1, %11 : vector<8x32xf32>
    %13 = vector.broadcast %2 : vector<1x32xf32> to vector<8x32xf32>
    %14 = arith.mulf %12, %13 : vector<8x32xf32>
    %c0_6 = arith.constant 0 : index
    %c0_7 = arith.constant 0 : index
    %15 = vector.load %arg4[%c0_6, %c0_7] : memref<32x96xf32, #tpu.memory_space<vmem>>, vector<32x96xf32>
    %c0_8 = arith.constant 0 : index
    %c0_9 = arith.constant 0 : index
    %16 = vector.load %arg5[%c0_8, %c0_9] : memref<256x96xf32, #tpu.memory_space<vmem>>, vector<256x96xf32>
    %17 = arith.negf %14 : vector<8x32xf32>
    %18 = math.exp %17 : vector<8x32xf32>
    %cst_10 = arith.constant 1.000000e+00 : f32
    %19 = vector.broadcast %cst_10 : f32 to vector<8x32xf32>
    %20 = arith.addf %19, %18 : vector<8x32xf32>
    %21 = arith.divf %19, %20 : vector<8x32xf32>
    %22 = arith.mulf %14, %21 : vector<8x32xf32>
    %cst_11 = arith.constant dense<0.000000e+00> : vector<8x96xf32>
    %23 = tpu.matmul %22, %15, %cst_11 {dimension_numbers = #tpu.dot_dimension_numbers<[1], [0], [0], [1], [0, 0, 1, 1], [], []>} : vector<8x32xf32>, vector<32x96xf32>, vector<8x96xf32> -> vector<8x96xf32>
    %cst_12 = arith.constant -2.200000e+00 : f32
    %24 = vector.broadcast %cst_12 : f32 to vector<8x32xf32>
    %25 = arith.cmpf oge, %14, %24 : vector<8x32xf32>
    %cst_13 = arith.constant -1.800000e+00 : f32
    %26 = vector.broadcast %cst_13 : f32 to vector<8x32xf32>
    %27 = arith.cmpf olt, %14, %26 : vector<8x32xf32>
    %28 = arith.andi %25, %27 : vector<8x32xi1>
    %cst_14 = arith.constant 1.000000e+00 : f32
    %cst_15 = arith.constant 0.000000e+00 : f32
    %29 = vector.broadcast %cst_14 : f32 to vector<8x32xf32>
    %30 = vector.broadcast %cst_15 : f32 to vector<8x32xf32>
    %31 = arith.select %28, %29, %30 : vector<8x32xi1>, vector<8x32xf32>
    %cst_16 = arith.constant -1.800000e+00 : f32
    %32 = vector.broadcast %cst_16 : f32 to vector<8x32xf32>
    %33 = arith.cmpf oge, %14, %32 : vector<8x32xf32>
    %cst_17 = arith.constant -1.400000e+00 : f32
    %34 = vector.broadcast %cst_17 : f32 to vector<8x32xf32>
    %35 = arith.cmpf olt, %14, %34 : vector<8x32xf32>
    %36 = arith.andi %33, %35 : vector<8x32xi1>
    %cst_18 = arith.constant 1.000000e+00 : f32
    %cst_19 = arith.constant 0.000000e+00 : f32
    %37 = vector.broadcast %cst_18 : f32 to vector<8x32xf32>
    %38 = vector.broadcast %cst_19 : f32 to vector<8x32xf32>
    %39 = arith.select %36, %37, %38 : vector<8x32xi1>, vector<8x32xf32>
    %cst_20 = arith.constant -1.400000e+00 : f32
    %40 = vector.broadcast %cst_20 : f32 to vector<8x32xf32>
    %41 = arith.cmpf oge, %14, %40 : vector<8x32xf32>
    %cst_21 = arith.constant -1.000000e+00 : f32
    %42 = vector.broadcast %cst_21 : f32 to vector<8x32xf32>
    %43 = arith.cmpf olt, %14, %42 : vector<8x32xf32>
    %44 = arith.andi %41, %43 : vector<8x32xi1>
    %cst_22 = arith.constant 1.000000e+00 : f32
    %cst_23 = arith.constant 0.000000e+00 : f32
    %45 = vector.broadcast %cst_22 : f32 to vector<8x32xf32>
    %46 = vector.broadcast %cst_23 : f32 to vector<8x32xf32>
    %47 = arith.select %44, %45, %46 : vector<8x32xi1>, vector<8x32xf32>
    %cst_24 = arith.constant -1.000000e+00 : f32
    %48 = vector.broadcast %cst_24 : f32 to vector<8x32xf32>
    %49 = arith.cmpf oge, %14, %48 : vector<8x32xf32>
    %cst_25 = arith.constant -6.000000e-01 : f32
    %50 = vector.broadcast %cst_25 : f32 to vector<8x32xf32>
    %51 = arith.cmpf olt, %14, %50 : vector<8x32xf32>
    %52 = arith.andi %49, %51 : vector<8x32xi1>
    %cst_26 = arith.constant 1.000000e+00 : f32
    %cst_27 = arith.constant 0.000000e+00 : f32
    %53 = vector.broadcast %cst_26 : f32 to vector<8x32xf32>
    %54 = vector.broadcast %cst_27 : f32 to vector<8x32xf32>
    %55 = arith.select %52, %53, %54 : vector<8x32xi1>, vector<8x32xf32>
    %cst_28 = arith.constant -6.000000e-01 : f32
    %56 = vector.broadcast %cst_28 : f32 to vector<8x32xf32>
    %57 = arith.cmpf oge, %14, %56 : vector<8x32xf32>
    %cst_29 = arith.constant -0.199999988 : f32
    %58 = vector.broadcast %cst_29 : f32 to vector<8x32xf32>
    %59 = arith.cmpf olt, %14, %58 : vector<8x32xf32>
    %60 = arith.andi %57, %59 : vector<8x32xi1>
    %cst_30 = arith.constant 1.000000e+00 : f32
    %cst_31 = arith.constant 0.000000e+00 : f32
    %61 = vector.broadcast %cst_30 : f32 to vector<8x32xf32>
    %62 = vector.broadcast %cst_31 : f32 to vector<8x32xf32>
    %63 = arith.select %60, %61, %62 : vector<8x32xi1>, vector<8x32xf32>
    %cst_32 = arith.constant -0.199999988 : f32
    %64 = vector.broadcast %cst_32 : f32 to vector<8x32xf32>
    %65 = arith.cmpf oge, %14, %64 : vector<8x32xf32>
    %cst_33 = arith.constant 0.200000048 : f32
    %66 = vector.broadcast %cst_33 : f32 to vector<8x32xf32>
    %67 = arith.cmpf olt, %14, %66 : vector<8x32xf32>
    %68 = arith.andi %65, %67 : vector<8x32xi1>
    %cst_34 = arith.constant 1.000000e+00 : f32
    %cst_35 = arith.constant 0.000000e+00 : f32
    %69 = vector.broadcast %cst_34 : f32 to vector<8x32xf32>
    %70 = vector.broadcast %cst_35 : f32 to vector<8x32xf32>
    %71 = arith.select %68, %69, %70 : vector<8x32xi1>, vector<8x32xf32>
    %cst_36 = arith.constant 0.200000048 : f32
    %72 = vector.broadcast %cst_36 : f32 to vector<8x32xf32>
    %73 = arith.cmpf oge, %14, %72 : vector<8x32xf32>
    %cst_37 = arith.constant 6.000000e-01 : f32
    %74 = vector.broadcast %cst_37 : f32 to vector<8x32xf32>
    %75 = arith.cmpf olt, %14, %74 : vector<8x32xf32>
    %76 = arith.andi %73, %75 : vector<8x32xi1>
    %cst_38 = arith.constant 1.000000e+00 : f32
    %cst_39 = arith.constant 0.000000e+00 : f32
    %77 = vector.broadcast %cst_38 : f32 to vector<8x32xf32>
    %78 = vector.broadcast %cst_39 : f32 to vector<8x32xf32>
    %79 = arith.select %76, %77, %78 : vector<8x32xi1>, vector<8x32xf32>
    %cst_40 = arith.constant 6.000000e-01 : f32
    %80 = vector.broadcast %cst_40 : f32 to vector<8x32xf32>
    %81 = arith.cmpf oge, %14, %80 : vector<8x32xf32>
    %cst_41 = arith.constant 1.000000e+00 : f32
    %82 = vector.broadcast %cst_41 : f32 to vector<8x32xf32>
    %83 = arith.cmpf olt, %14, %82 : vector<8x32xf32>
    %84 = arith.andi %81, %83 : vector<8x32xi1>
    %cst_42 = arith.constant 1.000000e+00 : f32
    %cst_43 = arith.constant 0.000000e+00 : f32
    %85 = vector.broadcast %cst_42 : f32 to vector<8x32xf32>
    %86 = vector.broadcast %cst_43 : f32 to vector<8x32xf32>
    %87 = arith.select %84, %85, %86 : vector<8x32xi1>, vector<8x32xf32>
    %cst_44 = arith.constant 1.000000e+00 : f32
    %88 = vector.broadcast %cst_44 : f32 to vector<8x32xf32>
    %89 = arith.cmpf oge, %14, %88 : vector<8x32xf32>
    %cst_45 = arith.constant 1.4000001 : f32
    %90 = vector.broadcast %cst_45 : f32 to vector<8x32xf32>
    %91 = arith.cmpf olt, %14, %90 : vector<8x32xf32>
    %92 = arith.andi %89, %91 : vector<8x32xi1>
    %cst_46 = arith.constant 1.000000e+00 : f32
    %cst_47 = arith.constant 0.000000e+00 : f32
    %93 = vector.broadcast %cst_46 : f32 to vector<8x32xf32>
    %94 = vector.broadcast %cst_47 : f32 to vector<8x32xf32>
    %95 = arith.select %92, %93, %94 : vector<8x32xi1>, vector<8x32xf32>
    %cst_48 = arith.constant 1.4000001 : f32
    %96 = vector.broadcast %cst_48 : f32 to vector<8x32xf32>
    %97 = arith.cmpf oge, %14, %96 : vector<8x32xf32>
    %cst_49 = arith.constant 1.800000e+00 : f32
    %98 = vector.broadcast %cst_49 : f32 to vector<8x32xf32>
    %99 = arith.cmpf olt, %14, %98 : vector<8x32xf32>
    %100 = arith.andi %97, %99 : vector<8x32xi1>
    %cst_50 = arith.constant 1.000000e+00 : f32
    %cst_51 = arith.constant 0.000000e+00 : f32
    %101 = vector.broadcast %cst_50 : f32 to vector<8x32xf32>
    %102 = vector.broadcast %cst_51 : f32 to vector<8x32xf32>
    %103 = arith.select %100, %101, %102 : vector<8x32xi1>, vector<8x32xf32>
    %cst_52 = arith.constant 1.800000e+00 : f32
    %104 = vector.broadcast %cst_52 : f32 to vector<8x32xf32>
    %105 = arith.cmpf oge, %14, %104 : vector<8x32xf32>
    %cst_53 = arith.constant 2.200000e+00 : f32
    %106 = vector.broadcast %cst_53 : f32 to vector<8x32xf32>
    %107 = arith.cmpf olt, %14, %106 : vector<8x32xf32>
    %108 = arith.andi %105, %107 : vector<8x32xi1>
    %cst_54 = arith.constant 1.000000e+00 : f32
    %cst_55 = arith.constant 0.000000e+00 : f32
    %109 = vector.broadcast %cst_54 : f32 to vector<8x32xf32>
    %110 = vector.broadcast %cst_55 : f32 to vector<8x32xf32>
    %111 = arith.select %108, %109, %110 : vector<8x32xi1>, vector<8x32xf32>
    %cst_56 = arith.constant -2.200000e+00 : f32
    %112 = vector.broadcast %cst_56 : f32 to vector<8x32xf32>
    %113 = arith.subf %14, %112 : vector<8x32xf32>
    %cst_57 = arith.constant 2.49999952 : f32
    %114 = vector.broadcast %cst_57 : f32 to vector<8x32xf32>
    %115 = arith.mulf %113, %114 : vector<8x32xf32>
    %116 = arith.mulf %115, %31 : vector<8x32xf32>
    %cst_58 = arith.constant -1.400000e+00 : f32
    %117 = vector.broadcast %cst_58 : f32 to vector<8x32xf32>
    %118 = arith.subf %117, %14 : vector<8x32xf32>
    %cst_59 = arith.constant 2.50000024 : f32
    %119 = vector.broadcast %cst_59 : f32 to vector<8x32xf32>
    %120 = arith.mulf %118, %119 : vector<8x32xf32>
    %121 = arith.mulf %120, %39 : vector<8x32xf32>
    %122 = arith.addf %116, %121 : vector<8x32xf32>
    %cst_60 = arith.constant -1.800000e+00 : f32
    %123 = vector.broadcast %cst_60 : f32 to vector<8x32xf32>
    %124 = arith.subf %14, %123 : vector<8x32xf32>
    %cst_61 = arith.constant 2.50000024 : f32
    %125 = vector.broadcast %cst_61 : f32 to vector<8x32xf32>
    %126 = arith.mulf %124, %125 : vector<8x32xf32>
    %127 = arith.mulf %126, %39 : vector<8x32xf32>
    %cst_62 = arith.constant -1.000000e+00 : f32
    %128 = vector.broadcast %cst_62 : f32 to vector<8x32xf32>
    %129 = arith.subf %128, %14 : vector<8x32xf32>
    %cst_63 = arith.constant 2.50000024 : f32
    %130 = vector.broadcast %cst_63 : f32 to vector<8x32xf32>
    %131 = arith.mulf %129, %130 : vector<8x32xf32>
    %132 = arith.mulf %131, %47 : vector<8x32xf32>
    %133 = arith.addf %127, %132 : vector<8x32xf32>
    %cst_64 = arith.constant -1.400000e+00 : f32
    %134 = vector.broadcast %cst_64 : f32 to vector<8x32xf32>
    %135 = arith.subf %14, %134 : vector<8x32xf32>
    %cst_65 = arith.constant 2.50000024 : f32
    %136 = vector.broadcast %cst_65 : f32 to vector<8x32xf32>
    %137 = arith.mulf %135, %136 : vector<8x32xf32>
    %138 = arith.mulf %137, %47 : vector<8x32xf32>
    %cst_66 = arith.constant -6.000000e-01 : f32
    %139 = vector.broadcast %cst_66 : f32 to vector<8x32xf32>
    %140 = arith.subf %139, %14 : vector<8x32xf32>
    %cst_67 = arith.constant 2.50000024 : f32
    %141 = vector.broadcast %cst_67 : f32 to vector<8x32xf32>
    %142 = arith.mulf %140, %141 : vector<8x32xf32>
    %143 = arith.mulf %142, %55 : vector<8x32xf32>
    %144 = arith.addf %138, %143 : vector<8x32xf32>
    %cst_68 = arith.constant -1.000000e+00 : f32
    %145 = vector.broadcast %cst_68 : f32 to vector<8x32xf32>
    %146 = arith.subf %14, %145 : vector<8x32xf32>
    %cst_69 = arith.constant 2.50000024 : f32
    %147 = vector.broadcast %cst_69 : f32 to vector<8x32xf32>
    %148 = arith.mulf %146, %147 : vector<8x32xf32>
    %149 = arith.mulf %148, %55 : vector<8x32xf32>
    %cst_70 = arith.constant -0.199999988 : f32
    %150 = vector.broadcast %cst_70 : f32 to vector<8x32xf32>
    %151 = arith.subf %150, %14 : vector<8x32xf32>
    %cst_71 = arith.constant 2.49999976 : f32
    %152 = vector.broadcast %cst_71 : f32 to vector<8x32xf32>
    %153 = arith.mulf %151, %152 : vector<8x32xf32>
    %154 = arith.mulf %153, %63 : vector<8x32xf32>
    %155 = arith.addf %149, %154 : vector<8x32xf32>
    %cst_72 = arith.constant -6.000000e-01 : f32
    %156 = vector.broadcast %cst_72 : f32 to vector<8x32xf32>
    %157 = arith.subf %14, %156 : vector<8x32xf32>
    %cst_73 = arith.constant 2.49999976 : f32
    %158 = vector.broadcast %cst_73 : f32 to vector<8x32xf32>
    %159 = arith.mulf %157, %158 : vector<8x32xf32>
    %160 = arith.mulf %159, %63 : vector<8x32xf32>
    %cst_74 = arith.constant 0.200000048 : f32
    %161 = vector.broadcast %cst_74 : f32 to vector<8x32xf32>
    %162 = arith.subf %161, %14 : vector<8x32xf32>
    %cst_75 = arith.constant 2.49999976 : f32
    %163 = vector.broadcast %cst_75 : f32 to vector<8x32xf32>
    %164 = arith.mulf %162, %163 : vector<8x32xf32>
    %165 = arith.mulf %164, %71 : vector<8x32xf32>
    %166 = arith.addf %160, %165 : vector<8x32xf32>
    %cst_76 = arith.constant -0.199999988 : f32
    %167 = vector.broadcast %cst_76 : f32 to vector<8x32xf32>
    %168 = arith.subf %14, %167 : vector<8x32xf32>
    %cst_77 = arith.constant 2.49999976 : f32
    %169 = vector.broadcast %cst_77 : f32 to vector<8x32xf32>
    %170 = arith.mulf %168, %169 : vector<8x32xf32>
    %171 = arith.mulf %170, %71 : vector<8x32xf32>
    %cst_78 = arith.constant 6.000000e-01 : f32
    %172 = vector.broadcast %cst_78 : f32 to vector<8x32xf32>
    %173 = arith.subf %172, %14 : vector<8x32xf32>
    %cst_79 = arith.constant 2.50000024 : f32
    %174 = vector.broadcast %cst_79 : f32 to vector<8x32xf32>
    %175 = arith.mulf %173, %174 : vector<8x32xf32>
    %176 = arith.mulf %175, %79 : vector<8x32xf32>
    %177 = arith.addf %171, %176 : vector<8x32xf32>
    %cst_80 = arith.constant 0.200000048 : f32
    %178 = vector.broadcast %cst_80 : f32 to vector<8x32xf32>
    %179 = arith.subf %14, %178 : vector<8x32xf32>
    %cst_81 = arith.constant 2.50000024 : f32
    %180 = vector.broadcast %cst_81 : f32 to vector<8x32xf32>
    %181 = arith.mulf %179, %180 : vector<8x32xf32>
    %182 = arith.mulf %181, %79 : vector<8x32xf32>
    %cst_82 = arith.constant 1.000000e+00 : f32
    %183 = vector.broadcast %cst_82 : f32 to vector<8x32xf32>
    %184 = arith.subf %183, %14 : vector<8x32xf32>
    %cst_83 = arith.constant 2.50000024 : f32
    %185 = vector.broadcast %cst_83 : f32 to vector<8x32xf32>
    %186 = arith.mulf %184, %185 : vector<8x32xf32>
    %187 = arith.mulf %186, %87 : vector<8x32xf32>
    %188 = arith.addf %182, %187 : vector<8x32xf32>
    %cst_84 = arith.constant 6.000000e-01 : f32
    %189 = vector.broadcast %cst_84 : f32 to vector<8x32xf32>
    %190 = arith.subf %14, %189 : vector<8x32xf32>
    %cst_85 = arith.constant 2.50000024 : f32
    %191 = vector.broadcast %cst_85 : f32 to vector<8x32xf32>
    %192 = arith.mulf %190, %191 : vector<8x32xf32>
    %193 = arith.mulf %192, %87 : vector<8x32xf32>
    %cst_86 = arith.constant 1.4000001 : f32
    %194 = vector.broadcast %cst_86 : f32 to vector<8x32xf32>
    %195 = arith.subf %194, %14 : vector<8x32xf32>
    %cst_87 = arith.constant 2.49999952 : f32
    %196 = vector.broadcast %cst_87 : f32 to vector<8x32xf32>
    %197 = arith.mulf %195, %196 : vector<8x32xf32>
    %198 = arith.mulf %197, %95 : vector<8x32xf32>
    %199 = arith.addf %193, %198 : vector<8x32xf32>
    %cst_88 = arith.constant 1.000000e+00 : f32
    %200 = vector.broadcast %cst_88 : f32 to vector<8x32xf32>
    %201 = arith.subf %14, %200 : vector<8x32xf32>
    %cst_89 = arith.constant 2.49999952 : f32
    %202 = vector.broadcast %cst_89 : f32 to vector<8x32xf32>
    %203 = arith.mulf %201, %202 : vector<8x32xf32>
    %204 = arith.mulf %203, %95 : vector<8x32xf32>
    %cst_90 = arith.constant 1.800000e+00 : f32
    %205 = vector.broadcast %cst_90 : f32 to vector<8x32xf32>
    %206 = arith.subf %205, %14 : vector<8x32xf32>
    %cst_91 = arith.constant 2.50000095 : f32
    %207 = vector.broadcast %cst_91 : f32 to vector<8x32xf32>
    %208 = arith.mulf %206, %207 : vector<8x32xf32>
    %209 = arith.mulf %208, %103 : vector<8x32xf32>
    %210 = arith.addf %204, %209 : vector<8x32xf32>
    %cst_92 = arith.constant 1.4000001 : f32
    %211 = vector.broadcast %cst_92 : f32 to vector<8x32xf32>
    %212 = arith.subf %14, %211 : vector<8x32xf32>
    %cst_93 = arith.constant 2.50000095 : f32
    %213 = vector.broadcast %cst_93 : f32 to vector<8x32xf32>
    %214 = arith.mulf %212, %213 : vector<8x32xf32>
    %215 = arith.mulf %214, %103 : vector<8x32xf32>
    %cst_94 = arith.constant 2.200000e+00 : f32
    %216 = vector.broadcast %cst_94 : f32 to vector<8x32xf32>
    %217 = arith.subf %216, %14 : vector<8x32xf32>
    %cst_95 = arith.constant 2.49999952 : f32
    %218 = vector.broadcast %cst_95 : f32 to vector<8x32xf32>
    %219 = arith.mulf %217, %218 : vector<8x32xf32>
    %220 = arith.mulf %219, %111 : vector<8x32xf32>
    %221 = arith.addf %215, %220 : vector<8x32xf32>
    %cst_96 = arith.constant -2.200000e+00 : f32
    %222 = vector.broadcast %cst_96 : f32 to vector<8x32xf32>
    %223 = arith.subf %14, %222 : vector<8x32xf32>
    %cst_97 = arith.constant 1.24999988 : f32
    %224 = vector.broadcast %cst_97 : f32 to vector<8x32xf32>
    %225 = arith.mulf %223, %224 : vector<8x32xf32>
    %226 = arith.mulf %225, %122 : vector<8x32xf32>
    %cst_98 = arith.constant -1.000000e+00 : f32
    %227 = vector.broadcast %cst_98 : f32 to vector<8x32xf32>
    %228 = arith.subf %227, %14 : vector<8x32xf32>
    %cst_99 = arith.constant 1.25000012 : f32
    %229 = vector.broadcast %cst_99 : f32 to vector<8x32xf32>
    %230 = arith.mulf %228, %229 : vector<8x32xf32>
    %231 = arith.mulf %230, %133 : vector<8x32xf32>
    %232 = arith.addf %226, %231 : vector<8x32xf32>
    %cst_100 = arith.constant -1.800000e+00 : f32
    %233 = vector.broadcast %cst_100 : f32 to vector<8x32xf32>
    %234 = arith.subf %14, %233 : vector<8x32xf32>
    %cst_101 = arith.constant 1.25000012 : f32
    %235 = vector.broadcast %cst_101 : f32 to vector<8x32xf32>
    %236 = arith.mulf %234, %235 : vector<8x32xf32>
    %237 = arith.mulf %236, %133 : vector<8x32xf32>
    %cst_102 = arith.constant -6.000000e-01 : f32
    %238 = vector.broadcast %cst_102 : f32 to vector<8x32xf32>
    %239 = arith.subf %238, %14 : vector<8x32xf32>
    %cst_103 = arith.constant 1.25000012 : f32
    %240 = vector.broadcast %cst_103 : f32 to vector<8x32xf32>
    %241 = arith.mulf %239, %240 : vector<8x32xf32>
    %242 = arith.mulf %241, %144 : vector<8x32xf32>
    %243 = arith.addf %237, %242 : vector<8x32xf32>
    %cst_104 = arith.constant -1.400000e+00 : f32
    %244 = vector.broadcast %cst_104 : f32 to vector<8x32xf32>
    %245 = arith.subf %14, %244 : vector<8x32xf32>
    %cst_105 = arith.constant 1.25000012 : f32
    %246 = vector.broadcast %cst_105 : f32 to vector<8x32xf32>
    %247 = arith.mulf %245, %246 : vector<8x32xf32>
    %248 = arith.mulf %247, %144 : vector<8x32xf32>
    %cst_106 = arith.constant -0.199999988 : f32
    %249 = vector.broadcast %cst_106 : f32 to vector<8x32xf32>
    %250 = arith.subf %249, %14 : vector<8x32xf32>
    %cst_107 = arith.constant 1.250000e+00 : f32
    %251 = vector.broadcast %cst_107 : f32 to vector<8x32xf32>
    %252 = arith.mulf %250, %251 : vector<8x32xf32>
    %253 = arith.mulf %252, %155 : vector<8x32xf32>
    %254 = arith.addf %248, %253 : vector<8x32xf32>
    %cst_108 = arith.constant -1.000000e+00 : f32
    %255 = vector.broadcast %cst_108 : f32 to vector<8x32xf32>
    %256 = arith.subf %14, %255 : vector<8x32xf32>
    %cst_109 = arith.constant 1.250000e+00 : f32
    %257 = vector.broadcast %cst_109 : f32 to vector<8x32xf32>
    %258 = arith.mulf %256, %257 : vector<8x32xf32>
    %259 = arith.mulf %258, %155 : vector<8x32xf32>
    %cst_110 = arith.constant 0.200000048 : f32
    %260 = vector.broadcast %cst_110 : f32 to vector<8x32xf32>
    %261 = arith.subf %260, %14 : vector<8x32xf32>
    %cst_111 = arith.constant 1.24999988 : f32
    %262 = vector.broadcast %cst_111 : f32 to vector<8x32xf32>
    %263 = arith.mulf %261, %262 : vector<8x32xf32>
    %264 = arith.mulf %263, %166 : vector<8x32xf32>
    %265 = arith.addf %259, %264 : vector<8x32xf32>
    %cst_112 = arith.constant -6.000000e-01 : f32
    %266 = vector.broadcast %cst_112 : f32 to vector<8x32xf32>
    %267 = arith.subf %14, %266 : vector<8x32xf32>
    %cst_113 = arith.constant 1.24999988 : f32
    %268 = vector.broadcast %cst_113 : f32 to vector<8x32xf32>
    %269 = arith.mulf %267, %268 : vector<8x32xf32>
    %270 = arith.mulf %269, %166 : vector<8x32xf32>
    %cst_114 = arith.constant 6.000000e-01 : f32
    %271 = vector.broadcast %cst_114 : f32 to vector<8x32xf32>
    %272 = arith.subf %271, %14 : vector<8x32xf32>
    %cst_115 = arith.constant 1.250000e+00 : f32
    %273 = vector.broadcast %cst_115 : f32 to vector<8x32xf32>
    %274 = arith.mulf %272, %273 : vector<8x32xf32>
    %275 = arith.mulf %274, %177 : vector<8x32xf32>
    %276 = arith.addf %270, %275 : vector<8x32xf32>
    %cst_116 = arith.constant -0.199999988 : f32
    %277 = vector.broadcast %cst_116 : f32 to vector<8x32xf32>
    %278 = arith.subf %14, %277 : vector<8x32xf32>
    %cst_117 = arith.constant 1.250000e+00 : f32
    %279 = vector.broadcast %cst_117 : f32 to vector<8x32xf32>
    %280 = arith.mulf %278, %279 : vector<8x32xf32>
    %281 = arith.mulf %280, %177 : vector<8x32xf32>
    %cst_118 = arith.constant 1.000000e+00 : f32
    %282 = vector.broadcast %cst_118 : f32 to vector<8x32xf32>
    %283 = arith.subf %282, %14 : vector<8x32xf32>
    %cst_119 = arith.constant 1.25000012 : f32
    %284 = vector.broadcast %cst_119 : f32 to vector<8x32xf32>
    %285 = arith.mulf %283, %284 : vector<8x32xf32>
    %286 = arith.mulf %285, %188 : vector<8x32xf32>
    %287 = arith.addf %281, %286 : vector<8x32xf32>
    %cst_120 = arith.constant 0.200000048 : f32
    %288 = vector.broadcast %cst_120 : f32 to vector<8x32xf32>
    %289 = arith.subf %14, %288 : vector<8x32xf32>
    %cst_121 = arith.constant 1.25000012 : f32
    %290 = vector.broadcast %cst_121 : f32 to vector<8x32xf32>
    %291 = arith.mulf %289, %290 : vector<8x32xf32>
    %292 = arith.mulf %291, %188 : vector<8x32xf32>
    %cst_122 = arith.constant 1.4000001 : f32
    %293 = vector.broadcast %cst_122 : f32 to vector<8x32xf32>
    %294 = arith.subf %293, %14 : vector<8x32xf32>
    %cst_123 = arith.constant 1.24999988 : f32
    %295 = vector.broadcast %cst_123 : f32 to vector<8x32xf32>
    %296 = arith.mulf %294, %295 : vector<8x32xf32>
    %297 = arith.mulf %296, %199 : vector<8x32xf32>
    %298 = arith.addf %292, %297 : vector<8x32xf32>
    %cst_124 = arith.constant 6.000000e-01 : f32
    %299 = vector.broadcast %cst_124 : f32 to vector<8x32xf32>
    %300 = arith.subf %14, %299 : vector<8x32xf32>
    %cst_125 = arith.constant 1.24999988 : f32
    %301 = vector.broadcast %cst_125 : f32 to vector<8x32xf32>
    %302 = arith.mulf %300, %301 : vector<8x32xf32>
    %303 = arith.mulf %302, %199 : vector<8x32xf32>
    %cst_126 = arith.constant 1.800000e+00 : f32
    %304 = vector.broadcast %cst_126 : f32 to vector<8x32xf32>
    %305 = arith.subf %304, %14 : vector<8x32xf32>
    %cst_127 = arith.constant 1.25000012 : f32
    %306 = vector.broadcast %cst_127 : f32 to vector<8x32xf32>
    %307 = arith.mulf %305, %306 : vector<8x32xf32>
    %308 = arith.mulf %307, %210 : vector<8x32xf32>
    %309 = arith.addf %303, %308 : vector<8x32xf32>
    %cst_128 = arith.constant 1.000000e+00 : f32
    %310 = vector.broadcast %cst_128 : f32 to vector<8x32xf32>
    %311 = arith.subf %14, %310 : vector<8x32xf32>
    %cst_129 = arith.constant 1.25000012 : f32
    %312 = vector.broadcast %cst_129 : f32 to vector<8x32xf32>
    %313 = arith.mulf %311, %312 : vector<8x32xf32>
    %314 = arith.mulf %313, %210 : vector<8x32xf32>
    %cst_130 = arith.constant 2.200000e+00 : f32
    %315 = vector.broadcast %cst_130 : f32 to vector<8x32xf32>
    %316 = arith.subf %315, %14 : vector<8x32xf32>
    %cst_131 = arith.constant 1.25000012 : f32
    %317 = vector.broadcast %cst_131 : f32 to vector<8x32xf32>
    %318 = arith.mulf %316, %317 : vector<8x32xf32>
    %319 = arith.mulf %318, %221 : vector<8x32xf32>
    %320 = arith.addf %314, %319 : vector<8x32xf32>
    %cst_132 = arith.constant -2.200000e+00 : f32
    %321 = vector.broadcast %cst_132 : f32 to vector<8x32xf32>
    %322 = arith.subf %14, %321 : vector<8x32xf32>
    %cst_133 = arith.constant 0.833333313 : f32
    %323 = vector.broadcast %cst_133 : f32 to vector<8x32xf32>
    %324 = arith.mulf %322, %323 : vector<8x32xf32>
    %325 = arith.mulf %324, %232 : vector<8x32xf32>
    %cst_134 = arith.constant -6.000000e-01 : f32
    %326 = vector.broadcast %cst_134 : f32 to vector<8x32xf32>
    %327 = arith.subf %326, %14 : vector<8x32xf32>
    %cst_135 = arith.constant 0.833333373 : f32
    %328 = vector.broadcast %cst_135 : f32 to vector<8x32xf32>
    %329 = arith.mulf %327, %328 : vector<8x32xf32>
    %330 = arith.mulf %329, %243 : vector<8x32xf32>
    %331 = arith.addf %325, %330 : vector<8x32xf32>
    %cst_136 = arith.constant -1.800000e+00 : f32
    %332 = vector.broadcast %cst_136 : f32 to vector<8x32xf32>
    %333 = arith.subf %14, %332 : vector<8x32xf32>
    %cst_137 = arith.constant 0.833333373 : f32
    %334 = vector.broadcast %cst_137 : f32 to vector<8x32xf32>
    %335 = arith.mulf %333, %334 : vector<8x32xf32>
    %336 = arith.mulf %335, %243 : vector<8x32xf32>
    %cst_138 = arith.constant -0.199999988 : f32
    %337 = vector.broadcast %cst_138 : f32 to vector<8x32xf32>
    %338 = arith.subf %337, %14 : vector<8x32xf32>
    %cst_139 = arith.constant 0.833333313 : f32
    %339 = vector.broadcast %cst_139 : f32 to vector<8x32xf32>
    %340 = arith.mulf %338, %339 : vector<8x32xf32>
    %341 = arith.mulf %340, %254 : vector<8x32xf32>
    %342 = arith.addf %336, %341 : vector<8x32xf32>
    %cst_140 = arith.constant -1.400000e+00 : f32
    %343 = vector.broadcast %cst_140 : f32 to vector<8x32xf32>
    %344 = arith.subf %14, %343 : vector<8x32xf32>
    %cst_141 = arith.constant 0.833333313 : f32
    %345 = vector.broadcast %cst_141 : f32 to vector<8x32xf32>
    %346 = arith.mulf %344, %345 : vector<8x32xf32>
    %347 = arith.mulf %346, %254 : vector<8x32xf32>
    %cst_142 = arith.constant 0.200000048 : f32
    %348 = vector.broadcast %cst_142 : f32 to vector<8x32xf32>
    %349 = arith.subf %348, %14 : vector<8x32xf32>
    %cst_143 = arith.constant 0.833333313 : f32
    %350 = vector.broadcast %cst_143 : f32 to vector<8x32xf32>
    %351 = arith.mulf %349, %350 : vector<8x32xf32>
    %352 = arith.mulf %351, %265 : vector<8x32xf32>
    %353 = arith.addf %347, %352 : vector<8x32xf32>
    %cst_144 = arith.constant -1.000000e+00 : f32
    %354 = vector.broadcast %cst_144 : f32 to vector<8x32xf32>
    %355 = arith.subf %14, %354 : vector<8x32xf32>
    %cst_145 = arith.constant 0.833333313 : f32
    %356 = vector.broadcast %cst_145 : f32 to vector<8x32xf32>
    %357 = arith.mulf %355, %356 : vector<8x32xf32>
    %358 = arith.mulf %357, %265 : vector<8x32xf32>
    %cst_146 = arith.constant 6.000000e-01 : f32
    %359 = vector.broadcast %cst_146 : f32 to vector<8x32xf32>
    %360 = arith.subf %359, %14 : vector<8x32xf32>
    %cst_147 = arith.constant 0.833333313 : f32
    %361 = vector.broadcast %cst_147 : f32 to vector<8x32xf32>
    %362 = arith.mulf %360, %361 : vector<8x32xf32>
    %363 = arith.mulf %362, %276 : vector<8x32xf32>
    %364 = arith.addf %358, %363 : vector<8x32xf32>
    %cst_148 = arith.constant -6.000000e-01 : f32
    %365 = vector.broadcast %cst_148 : f32 to vector<8x32xf32>
    %366 = arith.subf %14, %365 : vector<8x32xf32>
    %cst_149 = arith.constant 0.833333313 : f32
    %367 = vector.broadcast %cst_149 : f32 to vector<8x32xf32>
    %368 = arith.mulf %366, %367 : vector<8x32xf32>
    %369 = arith.mulf %368, %276 : vector<8x32xf32>
    %cst_150 = arith.constant 1.000000e+00 : f32
    %370 = vector.broadcast %cst_150 : f32 to vector<8x32xf32>
    %371 = arith.subf %370, %14 : vector<8x32xf32>
    %cst_151 = arith.constant 0.833333313 : f32
    %372 = vector.broadcast %cst_151 : f32 to vector<8x32xf32>
    %373 = arith.mulf %371, %372 : vector<8x32xf32>
    %374 = arith.mulf %373, %287 : vector<8x32xf32>
    %375 = arith.addf %369, %374 : vector<8x32xf32>
    %cst_152 = arith.constant -0.199999988 : f32
    %376 = vector.broadcast %cst_152 : f32 to vector<8x32xf32>
    %377 = arith.subf %14, %376 : vector<8x32xf32>
    %cst_153 = arith.constant 0.833333313 : f32
    %378 = vector.broadcast %cst_153 : f32 to vector<8x32xf32>
    %379 = arith.mulf %377, %378 : vector<8x32xf32>
    %380 = arith.mulf %379, %287 : vector<8x32xf32>
    %cst_154 = arith.constant 1.4000001 : f32
    %381 = vector.broadcast %cst_154 : f32 to vector<8x32xf32>
    %382 = arith.subf %381, %14 : vector<8x32xf32>
    %cst_155 = arith.constant 0.833333313 : f32
    %383 = vector.broadcast %cst_155 : f32 to vector<8x32xf32>
    %384 = arith.mulf %382, %383 : vector<8x32xf32>
    %385 = arith.mulf %384, %298 : vector<8x32xf32>
    %386 = arith.addf %380, %385 : vector<8x32xf32>
    %cst_156 = arith.constant 0.200000048 : f32
    %387 = vector.broadcast %cst_156 : f32 to vector<8x32xf32>
    %388 = arith.subf %14, %387 : vector<8x32xf32>
    %cst_157 = arith.constant 0.833333313 : f32
    %389 = vector.broadcast %cst_157 : f32 to vector<8x32xf32>
    %390 = arith.mulf %388, %389 : vector<8x32xf32>
    %391 = arith.mulf %390, %298 : vector<8x32xf32>
    %cst_158 = arith.constant 1.800000e+00 : f32
    %392 = vector.broadcast %cst_158 : f32 to vector<8x32xf32>
    %393 = arith.subf %392, %14 : vector<8x32xf32>
    %cst_159 = arith.constant 0.833333373 : f32
    %394 = vector.broadcast %cst_159 : f32 to vector<8x32xf32>
    %395 = arith.mulf %393, %394 : vector<8x32xf32>
    %396 = arith.mulf %395, %309 : vector<8x32xf32>
    %397 = arith.addf %391, %396 : vector<8x32xf32>
    %cst_160 = arith.constant 6.000000e-01 : f32
    %398 = vector.broadcast %cst_160 : f32 to vector<8x32xf32>
    %399 = arith.subf %14, %398 : vector<8x32xf32>
    %cst_161 = arith.constant 0.833333373 : f32
    %400 = vector.broadcast %cst_161 : f32 to vector<8x32xf32>
    %401 = arith.mulf %399, %400 : vector<8x32xf32>
    %402 = arith.mulf %401, %309 : vector<8x32xf32>
    %cst_162 = arith.constant 2.200000e+00 : f32
    %403 = vector.broadcast %cst_162 : f32 to vector<8x32xf32>
    %404 = arith.subf %403, %14 : vector<8x32xf32>
    %cst_163 = arith.constant 0.833333313 : f32
    %405 = vector.broadcast %cst_163 : f32 to vector<8x32xf32>
    %406 = arith.mulf %404, %405 : vector<8x32xf32>
    %407 = arith.mulf %406, %320 : vector<8x32xf32>
    %408 = arith.addf %402, %407 : vector<8x32xf32>
    %409 = tpu.concatenate %331, %342, %353, %364, %375, %386, %397, %408 in 1 : vector<8x32xf32>, vector<8x32xf32>, vector<8x32xf32>, vector<8x32xf32>, vector<8x32xf32>, vector<8x32xf32>, vector<8x32xf32>, vector<8x32xf32> -> vector<8x256xf32>
    %cst_164 = arith.constant dense<0.000000e+00> : vector<8x96xf32>
    %410 = tpu.matmul %409, %16, %cst_164 {dimension_numbers = #tpu.dot_dimension_numbers<[1], [0], [0], [1], [0, 0, 1, 1], [], []>} : vector<8x256xf32>, vector<256x96xf32>, vector<8x96xf32> -> vector<8x96xf32>
    %411 = arith.addf %23, %410 : vector<8x96xf32>
    %c0_165 = arith.constant 0 : index
    %c0_166 = arith.constant 0 : index
    %412 = vector.load %arg6[%c0_165, %c0_166] : memref<8x16xf32, #tpu.memory_space<vmem>>, vector<8x16xf32>
    %c0_167 = arith.constant 0 : index
    %c0_168 = arith.constant 0 : index
    %413 = vector.load %arg7[%c0_167, %c0_168] : memref<8x16xf32, #tpu.memory_space<vmem>>, vector<8x16xf32>
    %414 = vector.extract_strided_slice %411 {offsets = [0, 0], sizes = [8, 16], strides = [1, 1]} : vector<8x96xf32> to vector<8x16xf32>
    %415 = vector.extract_strided_slice %411 {offsets = [0, 16], sizes = [8, 16], strides = [1, 1]} : vector<8x96xf32> to vector<8x16xf32>
    %416 = vector.extract_strided_slice %411 {offsets = [0, 32], sizes = [8, 16], strides = [1, 1]} : vector<8x96xf32> to vector<8x16xf32>
    %417 = vector.extract_strided_slice %411 {offsets = [0, 48], sizes = [8, 16], strides = [1, 1]} : vector<8x96xf32> to vector<8x16xf32>
    %418 = vector.extract_strided_slice %411 {offsets = [0, 64], sizes = [8, 32], strides = [1, 1]} : vector<8x96xf32> to vector<8x32xf32>
    %419 = arith.mulf %414, %412 : vector<8x16xf32>
    %420 = arith.mulf %415, %413 : vector<8x16xf32>
    %421 = arith.subf %419, %420 : vector<8x16xf32>
    %422 = arith.mulf %414, %413 : vector<8x16xf32>
    %423 = arith.mulf %415, %412 : vector<8x16xf32>
    %424 = arith.addf %422, %423 : vector<8x16xf32>
    %425 = arith.mulf %416, %412 : vector<8x16xf32>
    %426 = arith.mulf %417, %413 : vector<8x16xf32>
    %427 = arith.subf %425, %426 : vector<8x16xf32>
    %428 = arith.mulf %416, %413 : vector<8x16xf32>
    %429 = arith.mulf %417, %412 : vector<8x16xf32>
    %430 = arith.addf %428, %429 : vector<8x16xf32>
    %431 = vector.extract_strided_slice %421 {offsets = [0, 0], sizes = [8, 4], strides = [1, 1]} : vector<8x16xf32> to vector<8x4xf32>
    %432 = vector.extract_strided_slice %421 {offsets = [0, 4], sizes = [8, 4], strides = [1, 1]} : vector<8x16xf32> to vector<8x4xf32>
    %433 = vector.extract_strided_slice %421 {offsets = [0, 8], sizes = [8, 4], strides = [1, 1]} : vector<8x16xf32> to vector<8x4xf32>
    %434 = vector.extract_strided_slice %421 {offsets = [0, 12], sizes = [8, 4], strides = [1, 1]} : vector<8x16xf32> to vector<8x4xf32>
    %435 = vector.shape_cast %431 : vector<8x4xf32> to vector<1x8x4xf32>
    %436 = vector.shape_cast %432 : vector<8x4xf32> to vector<1x8x4xf32>
    %437 = vector.shape_cast %433 : vector<8x4xf32> to vector<1x8x4xf32>
    %438 = vector.shape_cast %434 : vector<8x4xf32> to vector<1x8x4xf32>
    %439 = tpu.concatenate %435, %436, %437, %438 in 0 : vector<1x8x4xf32>, vector<1x8x4xf32>, vector<1x8x4xf32>, vector<1x8x4xf32> -> vector<4x8x4xf32>
    %440 = vector.extract_strided_slice %424 {offsets = [0, 0], sizes = [8, 4], strides = [1, 1]} : vector<8x16xf32> to vector<8x4xf32>
    %441 = vector.extract_strided_slice %424 {offsets = [0, 4], sizes = [8, 4], strides = [1, 1]} : vector<8x16xf32> to vector<8x4xf32>
    %442 = vector.extract_strided_slice %424 {offsets = [0, 8], sizes = [8, 4], strides = [1, 1]} : vector<8x16xf32> to vector<8x4xf32>
    %443 = vector.extract_strided_slice %424 {offsets = [0, 12], sizes = [8, 4], strides = [1, 1]} : vector<8x16xf32> to vector<8x4xf32>
    %444 = vector.shape_cast %440 : vector<8x4xf32> to vector<1x8x4xf32>
    %445 = vector.shape_cast %441 : vector<8x4xf32> to vector<1x8x4xf32>
    %446 = vector.shape_cast %442 : vector<8x4xf32> to vector<1x8x4xf32>
    %447 = vector.shape_cast %443 : vector<8x4xf32> to vector<1x8x4xf32>
    %448 = tpu.concatenate %444, %445, %446, %447 in 0 : vector<1x8x4xf32>, vector<1x8x4xf32>, vector<1x8x4xf32>, vector<1x8x4xf32> -> vector<4x8x4xf32>
    %449 = tpu.concatenate %439, %448 in 2 : vector<4x8x4xf32>, vector<4x8x4xf32> -> vector<4x8x8xf32>
    %450 = vector.extract_strided_slice %427 {offsets = [0, 0], sizes = [8, 4], strides = [1, 1]} : vector<8x16xf32> to vector<8x4xf32>
    %451 = vector.extract_strided_slice %427 {offsets = [0, 4], sizes = [8, 4], strides = [1, 1]} : vector<8x16xf32> to vector<8x4xf32>
    %452 = vector.extract_strided_slice %427 {offsets = [0, 8], sizes = [8, 4], strides = [1, 1]} : vector<8x16xf32> to vector<8x4xf32>
    %453 = vector.extract_strided_slice %427 {offsets = [0, 12], sizes = [8, 4], strides = [1, 1]} : vector<8x16xf32> to vector<8x4xf32>
    %454 = vector.shape_cast %450 : vector<8x4xf32> to vector<1x8x4xf32>
    %455 = vector.shape_cast %451 : vector<8x4xf32> to vector<1x8x4xf32>
    %456 = vector.shape_cast %452 : vector<8x4xf32> to vector<1x8x4xf32>
    %457 = vector.shape_cast %453 : vector<8x4xf32> to vector<1x8x4xf32>
    %458 = tpu.concatenate %454, %455, %456, %457 in 0 : vector<1x8x4xf32>, vector<1x8x4xf32>, vector<1x8x4xf32>, vector<1x8x4xf32> -> vector<4x8x4xf32>
    %459 = vector.extract_strided_slice %430 {offsets = [0, 0], sizes = [8, 4], strides = [1, 1]} : vector<8x16xf32> to vector<8x4xf32>
    %460 = vector.extract_strided_slice %430 {offsets = [0, 4], sizes = [8, 4], strides = [1, 1]} : vector<8x16xf32> to vector<8x4xf32>
    %461 = vector.extract_strided_slice %430 {offsets = [0, 8], sizes = [8, 4], strides = [1, 1]} : vector<8x16xf32> to vector<8x4xf32>
    %462 = vector.extract_strided_slice %430 {offsets = [0, 12], sizes = [8, 4], strides = [1, 1]} : vector<8x16xf32> to vector<8x4xf32>
    %463 = vector.shape_cast %459 : vector<8x4xf32> to vector<1x8x4xf32>
    %464 = vector.shape_cast %460 : vector<8x4xf32> to vector<1x8x4xf32>
    %465 = vector.shape_cast %461 : vector<8x4xf32> to vector<1x8x4xf32>
    %466 = vector.shape_cast %462 : vector<8x4xf32> to vector<1x8x4xf32>
    %467 = tpu.concatenate %463, %464, %465, %466 in 0 : vector<1x8x4xf32>, vector<1x8x4xf32>, vector<1x8x4xf32>, vector<1x8x4xf32> -> vector<4x8x4xf32>
    %468 = tpu.concatenate %458, %467 in 2 : vector<4x8x4xf32>, vector<4x8x4xf32> -> vector<4x8x8xf32>
    %469 = vector.extract_strided_slice %418 {offsets = [0, 0], sizes = [8, 8], strides = [1, 1]} : vector<8x32xf32> to vector<8x8xf32>
    %470 = vector.extract_strided_slice %418 {offsets = [0, 8], sizes = [8, 8], strides = [1, 1]} : vector<8x32xf32> to vector<8x8xf32>
    %471 = vector.extract_strided_slice %418 {offsets = [0, 16], sizes = [8, 8], strides = [1, 1]} : vector<8x32xf32> to vector<8x8xf32>
    %472 = vector.extract_strided_slice %418 {offsets = [0, 24], sizes = [8, 8], strides = [1, 1]} : vector<8x32xf32> to vector<8x8xf32>
    %473 = vector.shape_cast %469 : vector<8x8xf32> to vector<1x8x8xf32>
    %474 = vector.shape_cast %470 : vector<8x8xf32> to vector<1x8x8xf32>
    %475 = vector.shape_cast %471 : vector<8x8xf32> to vector<1x8x8xf32>
    %476 = vector.shape_cast %472 : vector<8x8xf32> to vector<1x8x8xf32>
    %477 = tpu.concatenate %473, %474, %475, %476 in 0 : vector<1x8x8xf32>, vector<1x8x8xf32>, vector<1x8x8xf32>, vector<1x8x8xf32> -> vector<4x8x8xf32>
    "tpu.trace_start"() <{level = 10 : i32, message = "hqd,hkd->hqk"}> : () -> ()
    %cst_169 = arith.constant dense<0.000000e+00> : vector<4x8x8xf32>
    %478 = tpu.matmul %449, %468, %cst_169 {dimension_numbers = #tpu.dot_dimension_numbers<[2], [2], [1], [1], [0, 0, 0, 1, 1, 1], [0], [0]>} : vector<4x8x8xf32>, vector<4x8x8xf32>, vector<4x8x8xf32> -> vector<4x8x8xf32>
    "tpu.trace_stop"() : () -> ()
    %cst_170 = arith.constant 0.353553385 : f32
    %479 = vector.broadcast %cst_170 : f32 to vector<4x8x8xf32>
    %480 = arith.mulf %478, %479 : vector<4x8x8xf32>
    %cst_171 = arith.constant dense<0xFF800000> : vector<4x8xf32>
    %481 = vector.multi_reduction <maximumf>, %480, %cst_171 [2] : vector<4x8x8xf32> to vector<4x8xf32>
    %482 = vector.shape_cast %481 : vector<4x8xf32> to vector<4x8x1xf32>
    %483 = vector.broadcast %482 : vector<4x8x1xf32> to vector<4x8x8xf32>
    %484 = arith.subf %480, %483 : vector<4x8x8xf32>
    %485 = math.exp %484 : vector<4x8x8xf32>
    %cst_172 = arith.constant dense<0.000000e+00> : vector<4x8xf32>
    %486 = vector.multi_reduction <add>, %485, %cst_172 [2] : vector<4x8x8xf32> to vector<4x8xf32>
    %487 = vector.shape_cast %486 : vector<4x8xf32> to vector<4x8x1xf32>
    %488 = tpu.reciprocal %487 : vector<4x8x1xf32> -> vector<4x8x1xf32>
    %489 = vector.broadcast %488 : vector<4x8x1xf32> to vector<4x8x8xf32>
    %490 = arith.mulf %485, %489 : vector<4x8x8xf32>
    "tpu.trace_start"() <{level = 10 : i32, message = "hqk,hkd->hqd"}> : () -> ()
    %cst_173 = arith.constant dense<0.000000e+00> : vector<4x8x8xf32>
    %491 = tpu.matmul %490, %477, %cst_173 {dimension_numbers = #tpu.dot_dimension_numbers<[2], [1], [1], [2], [0, 0, 0, 1, 1, 2], [0], [0]>} : vector<4x8x8xf32>, vector<4x8x8xf32>, vector<4x8x8xf32> -> vector<4x8x8xf32>
    "tpu.trace_stop"() : () -> ()
    %492 = vector.extract_strided_slice %491 {offsets = [0, 0, 0], sizes = [1, 8, 8], strides = [1, 1, 1]} : vector<4x8x8xf32> to vector<1x8x8xf32>
    %493 = vector.shape_cast %492 : vector<1x8x8xf32> to vector<8x8xf32>
    %c0_174 = arith.constant 0 : index
    %c0_175 = arith.constant 0 : index
    %c0_176 = arith.constant 0 : index
    %494 = vector.load %arg8[%c0_174, %c0_175, %c0_176] : memref<4x8x32xf32, #tpu.memory_space<vmem>>, vector<1x8x32xf32>
    %495 = vector.shape_cast %494 : vector<1x8x32xf32> to vector<8x32xf32>
    %cst_177 = arith.constant dense<0.000000e+00> : vector<8x32xf32>
    %496 = tpu.matmul %493, %495, %cst_177 {dimension_numbers = #tpu.dot_dimension_numbers<[1], [0], [0], [1], [0, 0, 1, 1], [], []>} : vector<8x8xf32>, vector<8x32xf32>, vector<8x32xf32> -> vector<8x32xf32>
    %497 = vector.extract_strided_slice %491 {offsets = [1, 0, 0], sizes = [1, 8, 8], strides = [1, 1, 1]} : vector<4x8x8xf32> to vector<1x8x8xf32>
    %498 = vector.shape_cast %497 : vector<1x8x8xf32> to vector<8x8xf32>
    %c1 = arith.constant 1 : index
    %c0_178 = arith.constant 0 : index
    %c0_179 = arith.constant 0 : index
    %499 = vector.load %arg8[%c1, %c0_178, %c0_179] : memref<4x8x32xf32, #tpu.memory_space<vmem>>, vector<1x8x32xf32>
    %500 = vector.shape_cast %499 : vector<1x8x32xf32> to vector<8x32xf32>
    %cst_180 = arith.constant dense<0.000000e+00> : vector<8x32xf32>
    %501 = tpu.matmul %498, %500, %cst_180 {dimension_numbers = #tpu.dot_dimension_numbers<[1], [0], [0], [1], [0, 0, 1, 1], [], []>} : vector<8x8xf32>, vector<8x32xf32>, vector<8x32xf32> -> vector<8x32xf32>
    %502 = arith.addf %496, %501 : vector<8x32xf32>
    %503 = vector.extract_strided_slice %491 {offsets = [2, 0, 0], sizes = [1, 8, 8], strides = [1, 1, 1]} : vector<4x8x8xf32> to vector<1x8x8xf32>
    %504 = vector.shape_cast %503 : vector<1x8x8xf32> to vector<8x8xf32>
    %c2 = arith.constant 2 : index
    %c0_181 = arith.constant 0 : index
    %c0_182 = arith.constant 0 : index
    %505 = vector.load %arg8[%c2, %c0_181, %c0_182] : memref<4x8x32xf32, #tpu.memory_space<vmem>>, vector<1x8x32xf32>
    %506 = vector.shape_cast %505 : vector<1x8x32xf32> to vector<8x32xf32>
    %cst_183 = arith.constant dense<0.000000e+00> : vector<8x32xf32>
    %507 = tpu.matmul %504, %506, %cst_183 {dimension_numbers = #tpu.dot_dimension_numbers<[1], [0], [0], [1], [0, 0, 1, 1], [], []>} : vector<8x8xf32>, vector<8x32xf32>, vector<8x32xf32> -> vector<8x32xf32>
    %508 = arith.addf %502, %507 : vector<8x32xf32>
    %509 = vector.extract_strided_slice %491 {offsets = [3, 0, 0], sizes = [1, 8, 8], strides = [1, 1, 1]} : vector<4x8x8xf32> to vector<1x8x8xf32>
    %510 = vector.shape_cast %509 : vector<1x8x8xf32> to vector<8x8xf32>
    %c3 = arith.constant 3 : index
    %c0_184 = arith.constant 0 : index
    %c0_185 = arith.constant 0 : index
    %511 = vector.load %arg8[%c3, %c0_184, %c0_185] : memref<4x8x32xf32, #tpu.memory_space<vmem>>, vector<1x8x32xf32>
    %512 = vector.shape_cast %511 : vector<1x8x32xf32> to vector<8x32xf32>
    %cst_186 = arith.constant dense<0.000000e+00> : vector<8x32xf32>
    %513 = tpu.matmul %510, %512, %cst_186 {dimension_numbers = #tpu.dot_dimension_numbers<[1], [0], [0], [1], [0, 0, 1, 1], [], []>} : vector<8x8xf32>, vector<8x32xf32>, vector<8x32xf32> -> vector<8x32xf32>
    %514 = arith.addf %508, %513 : vector<8x32xf32>
    %515 = arith.addf %1, %514 : vector<8x32xf32>
    %c0_187 = arith.constant 0 : index
    %c0_188 = arith.constant 0 : index
    %516 = vector.load %arg9[%c0_187, %c0_188] : memref<1x32xf32, #tpu.memory_space<vmem>>, vector<1x32xf32>
    %517 = vector.broadcast %516 : vector<1x32xf32> to vector<8x32xf32>
    %518 = arith.addf %515, %517 : vector<8x32xf32>
    %c0_189 = arith.constant 0 : index
    %c0_190 = arith.constant 0 : index
    %c0_191 = arith.constant 0 : index
    %519 = vector.load %arg11[%c0_189, %c0_190, %c0_191] : memref<1x8x32xf32, #tpu.memory_space<vmem>>, vector<1x8x32xf32>
    %520 = vector.shape_cast %519 : vector<1x8x32xf32> to vector<8x32xf32>
    %521 = vector.shape_cast %518 : vector<8x32xf32> to vector<1x8x32xf32>
    tpu.vector_store %arg11[%c0_189, %c0_190, %c0_191], %521 {strides = array<i32>} : memref<1x8x32xf32, #tpu.memory_space<vmem>>, vector<1x8x32xf32>,
    %c0_192 = arith.constant 0 : index
    %c0_193 = arith.constant 0 : index
    %522 = vector.load %arg3[%c0_192, %c0_193] : memref<1x32xf32, #tpu.memory_space<vmem>>, vector<1x32xf32>
    %523 = arith.mulf %518, %518 : vector<8x32xf32>
    %cst_194 = arith.constant dense<0.000000e+00> : vector<8xf32>
    %524 = vector.multi_reduction <add>, %523, %cst_194 [1] : vector<8x32xf32> to vector<8xf32>
    %525 = vector.shape_cast %524 : vector<8xf32> to vector<8x1xf32>
    %cst_195 = arith.constant 3.200000e+01 : f32
    %526 = vector.broadcast %cst_195 : f32 to vector<8x1xf32>
    %527 = arith.divf %525, %526 : vector<8x1xf32>
    %cst_196 = arith.constant 9.99999997E-7 : f32
    %528 = vector.broadcast %cst_196 : f32 to vector<8x1xf32>
    %529 = arith.addf %527, %528 : vector<8x1xf32>
    %530 = math.rsqrt %529 : vector<8x1xf32>
    %531 = vector.broadcast %530 : vector<8x1xf32> to vector<8x32xf32>
    %532 = arith.mulf %518, %531 : vector<8x32xf32>
    %533 = vector.broadcast %522 : vector<1x32xf32> to vector<8x32xf32>
    %534 = arith.mulf %532, %533 : vector<8x32xf32>
    %c0_197 = arith.constant 0 : index
    %c0_198 = arith.constant 0 : index
    %535 = vector.load %arg10[%c0_197, %c0_198] : memref<32x4xf32, #tpu.memory_space<vmem>>, vector<32x4xf32>
    %cst_199 = arith.constant dense<0.000000e+00> : vector<8x4xf32>
    %536 = tpu.matmul %534, %535, %cst_199 {dimension_numbers = #tpu.dot_dimension_numbers<[1], [0], [0], [1], [0, 0, 1, 1], [], []>} : vector<8x32xf32>, vector<32x4xf32>, vector<8x4xf32> -> vector<8x4xf32>
    %c0_200 = arith.constant 0 : index
    %c0_201 = arith.constant 0 : index
    %c0_202 = arith.constant 0 : index
    %537 = vector.load %arg12[%c0_200, %c0_201, %c0_202] : memref<1x8x4xf32, #tpu.memory_space<vmem>>, vector<1x8x4xf32>
    %538 = vector.shape_cast %537 : vector<1x8x4xf32> to vector<8x4xf32>
    %539 = vector.shape_cast %536 : vector<8x4xf32> to vector<1x8x4xf32>
    tpu.vector_store %arg12[%c0_200, %c0_201, %c0_202], %539 {strides = array<i32>} : memref<1x8x4xf32, #tpu.memory_space<vmem>>, vector<1x8x4xf32>,
    return
  }
  func.func @transform_0(%arg0: i32) -> (i32, i32, i32) {
    %c0_i32 = arith.constant 0 : i32
    %c0_i32_0 = arith.constant 0 : i32
    %c0_i32_1 = arith.constant 0 : i32
    return %arg0, %c0_i32, %c0_i32_0 : i32, i32, i32
  }
  func.func @transform_1(%arg0: i32) -> (i32, i32) {
    %c0_i32 = arith.constant 0 : i32
    %c0_i32_0 = arith.constant 0 : i32
    %c0_i32_1 = arith.constant 0 : i32
    return %c0_i32, %c0_i32_0 : i32, i32
  }
  func.func @transform_2(%arg0: i32) -> (i32, i32) {
    %c0_i32 = arith.constant 0 : i32
    %c0_i32_0 = arith.constant 0 : i32
    %c0_i32_1 = arith.constant 0 : i32
    return %c0_i32, %c0_i32_0 : i32, i32
  }
  func.func @transform_3(%arg0: i32) -> (i32, i32) {
    %c0_i32 = arith.constant 0 : i32
    %c0_i32_0 = arith.constant 0 : i32
    %c0_i32_1 = arith.constant 0 : i32
    return %c0_i32, %c0_i32_0 : i32, i32
  }
  func.func @transform_4(%arg0: i32) -> (i32, i32) {
    %c0_i32 = arith.constant 0 : i32
    %c0_i32_0 = arith.constant 0 : i32
    %c0_i32_1 = arith.constant 0 : i32
    return %c0_i32, %c0_i32_0 : i32, i32
  }
  func.func @transform_5(%arg0: i32) -> (i32, i32) {
    %c0_i32 = arith.constant 0 : i32
    %c0_i32_0 = arith.constant 0 : i32
    %c0_i32_1 = arith.constant 0 : i32
    return %c0_i32, %c0_i32_0 : i32, i32
  }
  func.func @transform_6(%arg0: i32) -> (i32, i32) {
    %c0_i32 = arith.constant 0 : i32
    %c0_i32_0 = arith.constant 0 : i32
    %c0_i32_1 = arith.constant 0 : i32
    return %c0_i32, %c0_i32_0 : i32, i32
  }
  func.func @transform_7(%arg0: i32) -> (i32, i32, i32) {
    %c0_i32 = arith.constant 0 : i32
    %c0_i32_0 = arith.constant 0 : i32
    %c0_i32_1 = arith.constant 0 : i32
    %c0_i32_2 = arith.constant 0 : i32
    return %c0_i32, %c0_i32_0, %c0_i32_1 : i32, i32, i32
  }
  func.func @transform_8(%arg0: i32) -> (i32, i32) {
    %c0_i32 = arith.constant 0 : i32
    %c0_i32_0 = arith.constant 0 : i32
    %c0_i32_1 = arith.constant 0 : i32
    return %c0_i32, %c0_i32_0 : i32, i32
  }
  func.func @transform_9(%arg0: i32) -> (i32, i32) {
    %c0_i32 = arith.constant 0 : i32
    %c0_i32_0 = arith.constant 0 : i32
    %c0_i32_1 = arith.constant 0 : i32
    return %c0_i32, %c0_i32_0 : i32, i32
  }
  func.func @transform_10(%arg0: i32) -> (i32, i32, i32) {
    %c0_i32 = arith.constant 0 : i32
    %c0_i32_0 = arith.constant 0 : i32
    %c0_i32_1 = arith.constant 0 : i32
    return %arg0, %c0_i32, %c0_i32_0 : i32, i32, i32
  }
  func.func @transform_11(%arg0: i32) -> (i32, i32, i32) {
    %c0_i32 = arith.constant 0 : i32
    %c0_i32_0 = arith.constant 0 : i32
    %c0_i32_1 = arith.constant 0 : i32
    return %arg0, %c0_i32, %c0_i32_0 : i32, i32, i32
  }
}

module attributes {stable_mosaic.version = 11 : i64} {
  func.func @moe_block_kernel(%arg0: i32, %arg1: i32, %arg2: memref<8x32xf32, #tpu.memory_space<vmem>>, %arg3: memref<1x8x1xf32, #tpu.memory_space<vmem>>, %arg4: memref<1x32xf32, #tpu.memory_space<vmem>>, %arg5: memref<1x32x64xf32, #tpu.memory_space<vmem>>, %arg6: memref<1x256x64xf32, #tpu.memory_space<vmem>>, %arg7: memref<1x32x64xf32, #tpu.memory_space<vmem>>, %arg8: memref<1x256x64xf32, #tpu.memory_space<vmem>>, %arg9: memref<1x64x32xf32, #tpu.memory_space<vmem>>, %arg10: memref<1x512x32xf32, #tpu.memory_space<vmem>>, %arg11: memref<8x32xf32, #tpu.memory_space<vmem>>) attributes {dimension_semantics = [#tpu.dimension_semantics<parallel>, #tpu.dimension_semantics<arbitrary>], iteration_bounds = array<i64: 2, 4>, scalar_prefetch = 0 : i64, scratch_operands = 0 : i64, tpu.core_type = #tpu.core_type<tc>, window_params = [{transform_indices = @transform_0, window_bounds = array<i64: 8, 32>}, {transform_indices = @transform_1, window_bounds = array<i64: 1, 8, 1>}, {pipeline_mode = #tpu.pipeline_mode<synchronous>, transform_indices = @transform_2, window_bounds = array<i64: 1, 32>}, {transform_indices = @transform_3, window_bounds = array<i64: 1, 32, 64>}, {transform_indices = @transform_4, window_bounds = array<i64: 1, 256, 64>}, {transform_indices = @transform_5, window_bounds = array<i64: 1, 32, 64>}, {transform_indices = @transform_6, window_bounds = array<i64: 1, 256, 64>}, {transform_indices = @transform_7, window_bounds = array<i64: 1, 64, 32>}, {transform_indices = @transform_8, window_bounds = array<i64: 1, 512, 32>}, {transform_indices = @transform_9, window_bounds = array<i64: 8, 32>}]} {
    %c0_i32 = arith.constant 0 : i32
    %0 = arith.cmpi eq, %arg1, %c0_i32 : i32
    %1 = arith.extui %0 : i1 to i32
    %c0_i32_0 = arith.constant 0 : i32
    %2 = arith.cmpi ne, %1, %c0_i32_0 : i32
    scf.if %2 {
      %c0_496 = arith.constant 0 : index
      %c0_497 = arith.constant 0 : index
      %1222 = vector.load %arg2[%c0_496, %c0_497] : memref<8x32xf32, #tpu.memory_space<vmem>>, vector<8x32xf32>
      %c0_498 = arith.constant 0 : index
      %c0_499 = arith.constant 0 : index
      %1223 = vector.load %arg11[%c0_498, %c0_499] : memref<8x32xf32, #tpu.memory_space<vmem>>, vector<8x32xf32>
      tpu.vector_store %arg11[%c0_498, %c0_499], %1222 {strides = array<i32>} : memref<8x32xf32, #tpu.memory_space<vmem>>, vector<8x32xf32>,
    } else {
    }
    %c0 = arith.constant 0 : index
    %c0_1 = arith.constant 0 : index
    %3 = vector.load %arg2[%c0, %c0_1] : memref<8x32xf32, #tpu.memory_space<vmem>>, vector<8x32xf32>
    %c0_2 = arith.constant 0 : index
    %c0_3 = arith.constant 0 : index
    %4 = vector.load %arg4[%c0_2, %c0_3] : memref<1x32xf32, #tpu.memory_space<vmem>>, vector<1x32xf32>
    %5 = arith.mulf %3, %3 : vector<8x32xf32>
    %cst = arith.constant dense<0.000000e+00> : vector<8xf32>
    %6 = vector.multi_reduction <add>, %5, %cst [1] : vector<8x32xf32> to vector<8xf32>
    %7 = vector.shape_cast %6 : vector<8xf32> to vector<8x1xf32>
    %cst_4 = arith.constant 3.200000e+01 : f32
    %8 = vector.broadcast %cst_4 : f32 to vector<8x1xf32>
    %9 = arith.divf %7, %8 : vector<8x1xf32>
    %cst_5 = arith.constant 9.99999997E-7 : f32
    %10 = vector.broadcast %cst_5 : f32 to vector<8x1xf32>
    %11 = arith.addf %9, %10 : vector<8x1xf32>
    %12 = math.rsqrt %11 : vector<8x1xf32>
    %13 = vector.broadcast %12 : vector<8x1xf32> to vector<8x32xf32>
    %14 = arith.mulf %3, %13 : vector<8x32xf32>
    %15 = vector.broadcast %4 : vector<1x32xf32> to vector<8x32xf32>
    %16 = arith.mulf %14, %15 : vector<8x32xf32>
    %c0_6 = arith.constant 0 : index
    %c0_7 = arith.constant 0 : index
    %c0_8 = arith.constant 0 : index
    %17 = vector.load %arg5[%c0_6, %c0_7, %c0_8] : memref<1x32x64xf32, #tpu.memory_space<vmem>>, vector<1x32x64xf32>
    %18 = vector.shape_cast %17 : vector<1x32x64xf32> to vector<32x64xf32>
    %c0_9 = arith.constant 0 : index
    %c0_10 = arith.constant 0 : index
    %c0_11 = arith.constant 0 : index
    %19 = vector.load %arg6[%c0_9, %c0_10, %c0_11] : memref<1x256x64xf32, #tpu.memory_space<vmem>>, vector<1x256x64xf32>
    %20 = vector.shape_cast %19 : vector<1x256x64xf32> to vector<256x64xf32>
    %21 = arith.negf %16 : vector<8x32xf32>
    %22 = math.exp %21 : vector<8x32xf32>
    %cst_12 = arith.constant 1.000000e+00 : f32
    %23 = vector.broadcast %cst_12 : f32 to vector<8x32xf32>
    %24 = arith.addf %23, %22 : vector<8x32xf32>
    %25 = arith.divf %23, %24 : vector<8x32xf32>
    %26 = arith.mulf %16, %25 : vector<8x32xf32>
    %cst_13 = arith.constant dense<0.000000e+00> : vector<8x64xf32>
    %27 = tpu.matmul %26, %18, %cst_13 {dimension_numbers = #tpu.dot_dimension_numbers<[1], [0], [0], [1], [0, 0, 1, 1], [], []>} : vector<8x32xf32>, vector<32x64xf32>, vector<8x64xf32> -> vector<8x64xf32>
    %cst_14 = arith.constant -2.200000e+00 : f32
    %28 = vector.broadcast %cst_14 : f32 to vector<8x32xf32>
    %29 = arith.cmpf oge, %16, %28 : vector<8x32xf32>
    %cst_15 = arith.constant -1.800000e+00 : f32
    %30 = vector.broadcast %cst_15 : f32 to vector<8x32xf32>
    %31 = arith.cmpf olt, %16, %30 : vector<8x32xf32>
    %32 = arith.andi %29, %31 : vector<8x32xi1>
    %cst_16 = arith.constant 1.000000e+00 : f32
    %cst_17 = arith.constant 0.000000e+00 : f32
    %33 = vector.broadcast %cst_16 : f32 to vector<8x32xf32>
    %34 = vector.broadcast %cst_17 : f32 to vector<8x32xf32>
    %35 = arith.select %32, %33, %34 : vector<8x32xi1>, vector<8x32xf32>
    %cst_18 = arith.constant -1.800000e+00 : f32
    %36 = vector.broadcast %cst_18 : f32 to vector<8x32xf32>
    %37 = arith.cmpf oge, %16, %36 : vector<8x32xf32>
    %cst_19 = arith.constant -1.400000e+00 : f32
    %38 = vector.broadcast %cst_19 : f32 to vector<8x32xf32>
    %39 = arith.cmpf olt, %16, %38 : vector<8x32xf32>
    %40 = arith.andi %37, %39 : vector<8x32xi1>
    %cst_20 = arith.constant 1.000000e+00 : f32
    %cst_21 = arith.constant 0.000000e+00 : f32
    %41 = vector.broadcast %cst_20 : f32 to vector<8x32xf32>
    %42 = vector.broadcast %cst_21 : f32 to vector<8x32xf32>
    %43 = arith.select %40, %41, %42 : vector<8x32xi1>, vector<8x32xf32>
    %cst_22 = arith.constant -1.400000e+00 : f32
    %44 = vector.broadcast %cst_22 : f32 to vector<8x32xf32>
    %45 = arith.cmpf oge, %16, %44 : vector<8x32xf32>
    %cst_23 = arith.constant -1.000000e+00 : f32
    %46 = vector.broadcast %cst_23 : f32 to vector<8x32xf32>
    %47 = arith.cmpf olt, %16, %46 : vector<8x32xf32>
    %48 = arith.andi %45, %47 : vector<8x32xi1>
    %cst_24 = arith.constant 1.000000e+00 : f32
    %cst_25 = arith.constant 0.000000e+00 : f32
    %49 = vector.broadcast %cst_24 : f32 to vector<8x32xf32>
    %50 = vector.broadcast %cst_25 : f32 to vector<8x32xf32>
    %51 = arith.select %48, %49, %50 : vector<8x32xi1>, vector<8x32xf32>
    %cst_26 = arith.constant -1.000000e+00 : f32
    %52 = vector.broadcast %cst_26 : f32 to vector<8x32xf32>
    %53 = arith.cmpf oge, %16, %52 : vector<8x32xf32>
    %cst_27 = arith.constant -6.000000e-01 : f32
    %54 = vector.broadcast %cst_27 : f32 to vector<8x32xf32>
    %55 = arith.cmpf olt, %16, %54 : vector<8x32xf32>
    %56 = arith.andi %53, %55 : vector<8x32xi1>
    %cst_28 = arith.constant 1.000000e+00 : f32
    %cst_29 = arith.constant 0.000000e+00 : f32
    %57 = vector.broadcast %cst_28 : f32 to vector<8x32xf32>
    %58 = vector.broadcast %cst_29 : f32 to vector<8x32xf32>
    %59 = arith.select %56, %57, %58 : vector<8x32xi1>, vector<8x32xf32>
    %cst_30 = arith.constant -6.000000e-01 : f32
    %60 = vector.broadcast %cst_30 : f32 to vector<8x32xf32>
    %61 = arith.cmpf oge, %16, %60 : vector<8x32xf32>
    %cst_31 = arith.constant -0.199999988 : f32
    %62 = vector.broadcast %cst_31 : f32 to vector<8x32xf32>
    %63 = arith.cmpf olt, %16, %62 : vector<8x32xf32>
    %64 = arith.andi %61, %63 : vector<8x32xi1>
    %cst_32 = arith.constant 1.000000e+00 : f32
    %cst_33 = arith.constant 0.000000e+00 : f32
    %65 = vector.broadcast %cst_32 : f32 to vector<8x32xf32>
    %66 = vector.broadcast %cst_33 : f32 to vector<8x32xf32>
    %67 = arith.select %64, %65, %66 : vector<8x32xi1>, vector<8x32xf32>
    %cst_34 = arith.constant -0.199999988 : f32
    %68 = vector.broadcast %cst_34 : f32 to vector<8x32xf32>
    %69 = arith.cmpf oge, %16, %68 : vector<8x32xf32>
    %cst_35 = arith.constant 0.200000048 : f32
    %70 = vector.broadcast %cst_35 : f32 to vector<8x32xf32>
    %71 = arith.cmpf olt, %16, %70 : vector<8x32xf32>
    %72 = arith.andi %69, %71 : vector<8x32xi1>
    %cst_36 = arith.constant 1.000000e+00 : f32
    %cst_37 = arith.constant 0.000000e+00 : f32
    %73 = vector.broadcast %cst_36 : f32 to vector<8x32xf32>
    %74 = vector.broadcast %cst_37 : f32 to vector<8x32xf32>
    %75 = arith.select %72, %73, %74 : vector<8x32xi1>, vector<8x32xf32>
    %cst_38 = arith.constant 0.200000048 : f32
    %76 = vector.broadcast %cst_38 : f32 to vector<8x32xf32>
    %77 = arith.cmpf oge, %16, %76 : vector<8x32xf32>
    %cst_39 = arith.constant 6.000000e-01 : f32
    %78 = vector.broadcast %cst_39 : f32 to vector<8x32xf32>
    %79 = arith.cmpf olt, %16, %78 : vector<8x32xf32>
    %80 = arith.andi %77, %79 : vector<8x32xi1>
    %cst_40 = arith.constant 1.000000e+00 : f32
    %cst_41 = arith.constant 0.000000e+00 : f32
    %81 = vector.broadcast %cst_40 : f32 to vector<8x32xf32>
    %82 = vector.broadcast %cst_41 : f32 to vector<8x32xf32>
    %83 = arith.select %80, %81, %82 : vector<8x32xi1>, vector<8x32xf32>
    %cst_42 = arith.constant 6.000000e-01 : f32
    %84 = vector.broadcast %cst_42 : f32 to vector<8x32xf32>
    %85 = arith.cmpf oge, %16, %84 : vector<8x32xf32>
    %cst_43 = arith.constant 1.000000e+00 : f32
    %86 = vector.broadcast %cst_43 : f32 to vector<8x32xf32>
    %87 = arith.cmpf olt, %16, %86 : vector<8x32xf32>
    %88 = arith.andi %85, %87 : vector<8x32xi1>
    %cst_44 = arith.constant 1.000000e+00 : f32
    %cst_45 = arith.constant 0.000000e+00 : f32
    %89 = vector.broadcast %cst_44 : f32 to vector<8x32xf32>
    %90 = vector.broadcast %cst_45 : f32 to vector<8x32xf32>
    %91 = arith.select %88, %89, %90 : vector<8x32xi1>, vector<8x32xf32>
    %cst_46 = arith.constant 1.000000e+00 : f32
    %92 = vector.broadcast %cst_46 : f32 to vector<8x32xf32>
    %93 = arith.cmpf oge, %16, %92 : vector<8x32xf32>
    %cst_47 = arith.constant 1.4000001 : f32
    %94 = vector.broadcast %cst_47 : f32 to vector<8x32xf32>
    %95 = arith.cmpf olt, %16, %94 : vector<8x32xf32>
    %96 = arith.andi %93, %95 : vector<8x32xi1>
    %cst_48 = arith.constant 1.000000e+00 : f32
    %cst_49 = arith.constant 0.000000e+00 : f32
    %97 = vector.broadcast %cst_48 : f32 to vector<8x32xf32>
    %98 = vector.broadcast %cst_49 : f32 to vector<8x32xf32>
    %99 = arith.select %96, %97, %98 : vector<8x32xi1>, vector<8x32xf32>
    %cst_50 = arith.constant 1.4000001 : f32
    %100 = vector.broadcast %cst_50 : f32 to vector<8x32xf32>
    %101 = arith.cmpf oge, %16, %100 : vector<8x32xf32>
    %cst_51 = arith.constant 1.800000e+00 : f32
    %102 = vector.broadcast %cst_51 : f32 to vector<8x32xf32>
    %103 = arith.cmpf olt, %16, %102 : vector<8x32xf32>
    %104 = arith.andi %101, %103 : vector<8x32xi1>
    %cst_52 = arith.constant 1.000000e+00 : f32
    %cst_53 = arith.constant 0.000000e+00 : f32
    %105 = vector.broadcast %cst_52 : f32 to vector<8x32xf32>
    %106 = vector.broadcast %cst_53 : f32 to vector<8x32xf32>
    %107 = arith.select %104, %105, %106 : vector<8x32xi1>, vector<8x32xf32>
    %cst_54 = arith.constant 1.800000e+00 : f32
    %108 = vector.broadcast %cst_54 : f32 to vector<8x32xf32>
    %109 = arith.cmpf oge, %16, %108 : vector<8x32xf32>
    %cst_55 = arith.constant 2.200000e+00 : f32
    %110 = vector.broadcast %cst_55 : f32 to vector<8x32xf32>
    %111 = arith.cmpf olt, %16, %110 : vector<8x32xf32>
    %112 = arith.andi %109, %111 : vector<8x32xi1>
    %cst_56 = arith.constant 1.000000e+00 : f32
    %cst_57 = arith.constant 0.000000e+00 : f32
    %113 = vector.broadcast %cst_56 : f32 to vector<8x32xf32>
    %114 = vector.broadcast %cst_57 : f32 to vector<8x32xf32>
    %115 = arith.select %112, %113, %114 : vector<8x32xi1>, vector<8x32xf32>
    %cst_58 = arith.constant -2.200000e+00 : f32
    %116 = vector.broadcast %cst_58 : f32 to vector<8x32xf32>
    %117 = arith.subf %16, %116 : vector<8x32xf32>
    %cst_59 = arith.constant 2.49999952 : f32
    %118 = vector.broadcast %cst_59 : f32 to vector<8x32xf32>
    %119 = arith.mulf %117, %118 : vector<8x32xf32>
    %120 = arith.mulf %119, %35 : vector<8x32xf32>
    %cst_60 = arith.constant -1.400000e+00 : f32
    %121 = vector.broadcast %cst_60 : f32 to vector<8x32xf32>
    %122 = arith.subf %121, %16 : vector<8x32xf32>
    %cst_61 = arith.constant 2.50000024 : f32
    %123 = vector.broadcast %cst_61 : f32 to vector<8x32xf32>
    %124 = arith.mulf %122, %123 : vector<8x32xf32>
    %125 = arith.mulf %124, %43 : vector<8x32xf32>
    %126 = arith.addf %120, %125 : vector<8x32xf32>
    %cst_62 = arith.constant -1.800000e+00 : f32
    %127 = vector.broadcast %cst_62 : f32 to vector<8x32xf32>
    %128 = arith.subf %16, %127 : vector<8x32xf32>
    %cst_63 = arith.constant 2.50000024 : f32
    %129 = vector.broadcast %cst_63 : f32 to vector<8x32xf32>
    %130 = arith.mulf %128, %129 : vector<8x32xf32>
    %131 = arith.mulf %130, %43 : vector<8x32xf32>
    %cst_64 = arith.constant -1.000000e+00 : f32
    %132 = vector.broadcast %cst_64 : f32 to vector<8x32xf32>
    %133 = arith.subf %132, %16 : vector<8x32xf32>
    %cst_65 = arith.constant 2.50000024 : f32
    %134 = vector.broadcast %cst_65 : f32 to vector<8x32xf32>
    %135 = arith.mulf %133, %134 : vector<8x32xf32>
    %136 = arith.mulf %135, %51 : vector<8x32xf32>
    %137 = arith.addf %131, %136 : vector<8x32xf32>
    %cst_66 = arith.constant -1.400000e+00 : f32
    %138 = vector.broadcast %cst_66 : f32 to vector<8x32xf32>
    %139 = arith.subf %16, %138 : vector<8x32xf32>
    %cst_67 = arith.constant 2.50000024 : f32
    %140 = vector.broadcast %cst_67 : f32 to vector<8x32xf32>
    %141 = arith.mulf %139, %140 : vector<8x32xf32>
    %142 = arith.mulf %141, %51 : vector<8x32xf32>
    %cst_68 = arith.constant -6.000000e-01 : f32
    %143 = vector.broadcast %cst_68 : f32 to vector<8x32xf32>
    %144 = arith.subf %143, %16 : vector<8x32xf32>
    %cst_69 = arith.constant 2.50000024 : f32
    %145 = vector.broadcast %cst_69 : f32 to vector<8x32xf32>
    %146 = arith.mulf %144, %145 : vector<8x32xf32>
    %147 = arith.mulf %146, %59 : vector<8x32xf32>
    %148 = arith.addf %142, %147 : vector<8x32xf32>
    %cst_70 = arith.constant -1.000000e+00 : f32
    %149 = vector.broadcast %cst_70 : f32 to vector<8x32xf32>
    %150 = arith.subf %16, %149 : vector<8x32xf32>
    %cst_71 = arith.constant 2.50000024 : f32
    %151 = vector.broadcast %cst_71 : f32 to vector<8x32xf32>
    %152 = arith.mulf %150, %151 : vector<8x32xf32>
    %153 = arith.mulf %152, %59 : vector<8x32xf32>
    %cst_72 = arith.constant -0.199999988 : f32
    %154 = vector.broadcast %cst_72 : f32 to vector<8x32xf32>
    %155 = arith.subf %154, %16 : vector<8x32xf32>
    %cst_73 = arith.constant 2.49999976 : f32
    %156 = vector.broadcast %cst_73 : f32 to vector<8x32xf32>
    %157 = arith.mulf %155, %156 : vector<8x32xf32>
    %158 = arith.mulf %157, %67 : vector<8x32xf32>
    %159 = arith.addf %153, %158 : vector<8x32xf32>
    %cst_74 = arith.constant -6.000000e-01 : f32
    %160 = vector.broadcast %cst_74 : f32 to vector<8x32xf32>
    %161 = arith.subf %16, %160 : vector<8x32xf32>
    %cst_75 = arith.constant 2.49999976 : f32
    %162 = vector.broadcast %cst_75 : f32 to vector<8x32xf32>
    %163 = arith.mulf %161, %162 : vector<8x32xf32>
    %164 = arith.mulf %163, %67 : vector<8x32xf32>
    %cst_76 = arith.constant 0.200000048 : f32
    %165 = vector.broadcast %cst_76 : f32 to vector<8x32xf32>
    %166 = arith.subf %165, %16 : vector<8x32xf32>
    %cst_77 = arith.constant 2.49999976 : f32
    %167 = vector.broadcast %cst_77 : f32 to vector<8x32xf32>
    %168 = arith.mulf %166, %167 : vector<8x32xf32>
    %169 = arith.mulf %168, %75 : vector<8x32xf32>
    %170 = arith.addf %164, %169 : vector<8x32xf32>
    %cst_78 = arith.constant -0.199999988 : f32
    %171 = vector.broadcast %cst_78 : f32 to vector<8x32xf32>
    %172 = arith.subf %16, %171 : vector<8x32xf32>
    %cst_79 = arith.constant 2.49999976 : f32
    %173 = vector.broadcast %cst_79 : f32 to vector<8x32xf32>
    %174 = arith.mulf %172, %173 : vector<8x32xf32>
    %175 = arith.mulf %174, %75 : vector<8x32xf32>
    %cst_80 = arith.constant 6.000000e-01 : f32
    %176 = vector.broadcast %cst_80 : f32 to vector<8x32xf32>
    %177 = arith.subf %176, %16 : vector<8x32xf32>
    %cst_81 = arith.constant 2.50000024 : f32
    %178 = vector.broadcast %cst_81 : f32 to vector<8x32xf32>
    %179 = arith.mulf %177, %178 : vector<8x32xf32>
    %180 = arith.mulf %179, %83 : vector<8x32xf32>
    %181 = arith.addf %175, %180 : vector<8x32xf32>
    %cst_82 = arith.constant 0.200000048 : f32
    %182 = vector.broadcast %cst_82 : f32 to vector<8x32xf32>
    %183 = arith.subf %16, %182 : vector<8x32xf32>
    %cst_83 = arith.constant 2.50000024 : f32
    %184 = vector.broadcast %cst_83 : f32 to vector<8x32xf32>
    %185 = arith.mulf %183, %184 : vector<8x32xf32>
    %186 = arith.mulf %185, %83 : vector<8x32xf32>
    %cst_84 = arith.constant 1.000000e+00 : f32
    %187 = vector.broadcast %cst_84 : f32 to vector<8x32xf32>
    %188 = arith.subf %187, %16 : vector<8x32xf32>
    %cst_85 = arith.constant 2.50000024 : f32
    %189 = vector.broadcast %cst_85 : f32 to vector<8x32xf32>
    %190 = arith.mulf %188, %189 : vector<8x32xf32>
    %191 = arith.mulf %190, %91 : vector<8x32xf32>
    %192 = arith.addf %186, %191 : vector<8x32xf32>
    %cst_86 = arith.constant 6.000000e-01 : f32
    %193 = vector.broadcast %cst_86 : f32 to vector<8x32xf32>
    %194 = arith.subf %16, %193 : vector<8x32xf32>
    %cst_87 = arith.constant 2.50000024 : f32
    %195 = vector.broadcast %cst_87 : f32 to vector<8x32xf32>
    %196 = arith.mulf %194, %195 : vector<8x32xf32>
    %197 = arith.mulf %196, %91 : vector<8x32xf32>
    %cst_88 = arith.constant 1.4000001 : f32
    %198 = vector.broadcast %cst_88 : f32 to vector<8x32xf32>
    %199 = arith.subf %198, %16 : vector<8x32xf32>
    %cst_89 = arith.constant 2.49999952 : f32
    %200 = vector.broadcast %cst_89 : f32 to vector<8x32xf32>
    %201 = arith.mulf %199, %200 : vector<8x32xf32>
    %202 = arith.mulf %201, %99 : vector<8x32xf32>
    %203 = arith.addf %197, %202 : vector<8x32xf32>
    %cst_90 = arith.constant 1.000000e+00 : f32
    %204 = vector.broadcast %cst_90 : f32 to vector<8x32xf32>
    %205 = arith.subf %16, %204 : vector<8x32xf32>
    %cst_91 = arith.constant 2.49999952 : f32
    %206 = vector.broadcast %cst_91 : f32 to vector<8x32xf32>
    %207 = arith.mulf %205, %206 : vector<8x32xf32>
    %208 = arith.mulf %207, %99 : vector<8x32xf32>
    %cst_92 = arith.constant 1.800000e+00 : f32
    %209 = vector.broadcast %cst_92 : f32 to vector<8x32xf32>
    %210 = arith.subf %209, %16 : vector<8x32xf32>
    %cst_93 = arith.constant 2.50000095 : f32
    %211 = vector.broadcast %cst_93 : f32 to vector<8x32xf32>
    %212 = arith.mulf %210, %211 : vector<8x32xf32>
    %213 = arith.mulf %212, %107 : vector<8x32xf32>
    %214 = arith.addf %208, %213 : vector<8x32xf32>
    %cst_94 = arith.constant 1.4000001 : f32
    %215 = vector.broadcast %cst_94 : f32 to vector<8x32xf32>
    %216 = arith.subf %16, %215 : vector<8x32xf32>
    %cst_95 = arith.constant 2.50000095 : f32
    %217 = vector.broadcast %cst_95 : f32 to vector<8x32xf32>
    %218 = arith.mulf %216, %217 : vector<8x32xf32>
    %219 = arith.mulf %218, %107 : vector<8x32xf32>
    %cst_96 = arith.constant 2.200000e+00 : f32
    %220 = vector.broadcast %cst_96 : f32 to vector<8x32xf32>
    %221 = arith.subf %220, %16 : vector<8x32xf32>
    %cst_97 = arith.constant 2.49999952 : f32
    %222 = vector.broadcast %cst_97 : f32 to vector<8x32xf32>
    %223 = arith.mulf %221, %222 : vector<8x32xf32>
    %224 = arith.mulf %223, %115 : vector<8x32xf32>
    %225 = arith.addf %219, %224 : vector<8x32xf32>
    %cst_98 = arith.constant -2.200000e+00 : f32
    %226 = vector.broadcast %cst_98 : f32 to vector<8x32xf32>
    %227 = arith.subf %16, %226 : vector<8x32xf32>
    %cst_99 = arith.constant 1.24999988 : f32
    %228 = vector.broadcast %cst_99 : f32 to vector<8x32xf32>
    %229 = arith.mulf %227, %228 : vector<8x32xf32>
    %230 = arith.mulf %229, %126 : vector<8x32xf32>
    %cst_100 = arith.constant -1.000000e+00 : f32
    %231 = vector.broadcast %cst_100 : f32 to vector<8x32xf32>
    %232 = arith.subf %231, %16 : vector<8x32xf32>
    %cst_101 = arith.constant 1.25000012 : f32
    %233 = vector.broadcast %cst_101 : f32 to vector<8x32xf32>
    %234 = arith.mulf %232, %233 : vector<8x32xf32>
    %235 = arith.mulf %234, %137 : vector<8x32xf32>
    %236 = arith.addf %230, %235 : vector<8x32xf32>
    %cst_102 = arith.constant -1.800000e+00 : f32
    %237 = vector.broadcast %cst_102 : f32 to vector<8x32xf32>
    %238 = arith.subf %16, %237 : vector<8x32xf32>
    %cst_103 = arith.constant 1.25000012 : f32
    %239 = vector.broadcast %cst_103 : f32 to vector<8x32xf32>
    %240 = arith.mulf %238, %239 : vector<8x32xf32>
    %241 = arith.mulf %240, %137 : vector<8x32xf32>
    %cst_104 = arith.constant -6.000000e-01 : f32
    %242 = vector.broadcast %cst_104 : f32 to vector<8x32xf32>
    %243 = arith.subf %242, %16 : vector<8x32xf32>
    %cst_105 = arith.constant 1.25000012 : f32
    %244 = vector.broadcast %cst_105 : f32 to vector<8x32xf32>
    %245 = arith.mulf %243, %244 : vector<8x32xf32>
    %246 = arith.mulf %245, %148 : vector<8x32xf32>
    %247 = arith.addf %241, %246 : vector<8x32xf32>
    %cst_106 = arith.constant -1.400000e+00 : f32
    %248 = vector.broadcast %cst_106 : f32 to vector<8x32xf32>
    %249 = arith.subf %16, %248 : vector<8x32xf32>
    %cst_107 = arith.constant 1.25000012 : f32
    %250 = vector.broadcast %cst_107 : f32 to vector<8x32xf32>
    %251 = arith.mulf %249, %250 : vector<8x32xf32>
    %252 = arith.mulf %251, %148 : vector<8x32xf32>
    %cst_108 = arith.constant -0.199999988 : f32
    %253 = vector.broadcast %cst_108 : f32 to vector<8x32xf32>
    %254 = arith.subf %253, %16 : vector<8x32xf32>
    %cst_109 = arith.constant 1.250000e+00 : f32
    %255 = vector.broadcast %cst_109 : f32 to vector<8x32xf32>
    %256 = arith.mulf %254, %255 : vector<8x32xf32>
    %257 = arith.mulf %256, %159 : vector<8x32xf32>
    %258 = arith.addf %252, %257 : vector<8x32xf32>
    %cst_110 = arith.constant -1.000000e+00 : f32
    %259 = vector.broadcast %cst_110 : f32 to vector<8x32xf32>
    %260 = arith.subf %16, %259 : vector<8x32xf32>
    %cst_111 = arith.constant 1.250000e+00 : f32
    %261 = vector.broadcast %cst_111 : f32 to vector<8x32xf32>
    %262 = arith.mulf %260, %261 : vector<8x32xf32>
    %263 = arith.mulf %262, %159 : vector<8x32xf32>
    %cst_112 = arith.constant 0.200000048 : f32
    %264 = vector.broadcast %cst_112 : f32 to vector<8x32xf32>
    %265 = arith.subf %264, %16 : vector<8x32xf32>
    %cst_113 = arith.constant 1.24999988 : f32
    %266 = vector.broadcast %cst_113 : f32 to vector<8x32xf32>
    %267 = arith.mulf %265, %266 : vector<8x32xf32>
    %268 = arith.mulf %267, %170 : vector<8x32xf32>
    %269 = arith.addf %263, %268 : vector<8x32xf32>
    %cst_114 = arith.constant -6.000000e-01 : f32
    %270 = vector.broadcast %cst_114 : f32 to vector<8x32xf32>
    %271 = arith.subf %16, %270 : vector<8x32xf32>
    %cst_115 = arith.constant 1.24999988 : f32
    %272 = vector.broadcast %cst_115 : f32 to vector<8x32xf32>
    %273 = arith.mulf %271, %272 : vector<8x32xf32>
    %274 = arith.mulf %273, %170 : vector<8x32xf32>
    %cst_116 = arith.constant 6.000000e-01 : f32
    %275 = vector.broadcast %cst_116 : f32 to vector<8x32xf32>
    %276 = arith.subf %275, %16 : vector<8x32xf32>
    %cst_117 = arith.constant 1.250000e+00 : f32
    %277 = vector.broadcast %cst_117 : f32 to vector<8x32xf32>
    %278 = arith.mulf %276, %277 : vector<8x32xf32>
    %279 = arith.mulf %278, %181 : vector<8x32xf32>
    %280 = arith.addf %274, %279 : vector<8x32xf32>
    %cst_118 = arith.constant -0.199999988 : f32
    %281 = vector.broadcast %cst_118 : f32 to vector<8x32xf32>
    %282 = arith.subf %16, %281 : vector<8x32xf32>
    %cst_119 = arith.constant 1.250000e+00 : f32
    %283 = vector.broadcast %cst_119 : f32 to vector<8x32xf32>
    %284 = arith.mulf %282, %283 : vector<8x32xf32>
    %285 = arith.mulf %284, %181 : vector<8x32xf32>
    %cst_120 = arith.constant 1.000000e+00 : f32
    %286 = vector.broadcast %cst_120 : f32 to vector<8x32xf32>
    %287 = arith.subf %286, %16 : vector<8x32xf32>
    %cst_121 = arith.constant 1.25000012 : f32
    %288 = vector.broadcast %cst_121 : f32 to vector<8x32xf32>
    %289 = arith.mulf %287, %288 : vector<8x32xf32>
    %290 = arith.mulf %289, %192 : vector<8x32xf32>
    %291 = arith.addf %285, %290 : vector<8x32xf32>
    %cst_122 = arith.constant 0.200000048 : f32
    %292 = vector.broadcast %cst_122 : f32 to vector<8x32xf32>
    %293 = arith.subf %16, %292 : vector<8x32xf32>
    %cst_123 = arith.constant 1.25000012 : f32
    %294 = vector.broadcast %cst_123 : f32 to vector<8x32xf32>
    %295 = arith.mulf %293, %294 : vector<8x32xf32>
    %296 = arith.mulf %295, %192 : vector<8x32xf32>
    %cst_124 = arith.constant 1.4000001 : f32
    %297 = vector.broadcast %cst_124 : f32 to vector<8x32xf32>
    %298 = arith.subf %297, %16 : vector<8x32xf32>
    %cst_125 = arith.constant 1.24999988 : f32
    %299 = vector.broadcast %cst_125 : f32 to vector<8x32xf32>
    %300 = arith.mulf %298, %299 : vector<8x32xf32>
    %301 = arith.mulf %300, %203 : vector<8x32xf32>
    %302 = arith.addf %296, %301 : vector<8x32xf32>
    %cst_126 = arith.constant 6.000000e-01 : f32
    %303 = vector.broadcast %cst_126 : f32 to vector<8x32xf32>
    %304 = arith.subf %16, %303 : vector<8x32xf32>
    %cst_127 = arith.constant 1.24999988 : f32
    %305 = vector.broadcast %cst_127 : f32 to vector<8x32xf32>
    %306 = arith.mulf %304, %305 : vector<8x32xf32>
    %307 = arith.mulf %306, %203 : vector<8x32xf32>
    %cst_128 = arith.constant 1.800000e+00 : f32
    %308 = vector.broadcast %cst_128 : f32 to vector<8x32xf32>
    %309 = arith.subf %308, %16 : vector<8x32xf32>
    %cst_129 = arith.constant 1.25000012 : f32
    %310 = vector.broadcast %cst_129 : f32 to vector<8x32xf32>
    %311 = arith.mulf %309, %310 : vector<8x32xf32>
    %312 = arith.mulf %311, %214 : vector<8x32xf32>
    %313 = arith.addf %307, %312 : vector<8x32xf32>
    %cst_130 = arith.constant 1.000000e+00 : f32
    %314 = vector.broadcast %cst_130 : f32 to vector<8x32xf32>
    %315 = arith.subf %16, %314 : vector<8x32xf32>
    %cst_131 = arith.constant 1.25000012 : f32
    %316 = vector.broadcast %cst_131 : f32 to vector<8x32xf32>
    %317 = arith.mulf %315, %316 : vector<8x32xf32>
    %318 = arith.mulf %317, %214 : vector<8x32xf32>
    %cst_132 = arith.constant 2.200000e+00 : f32
    %319 = vector.broadcast %cst_132 : f32 to vector<8x32xf32>
    %320 = arith.subf %319, %16 : vector<8x32xf32>
    %cst_133 = arith.constant 1.25000012 : f32
    %321 = vector.broadcast %cst_133 : f32 to vector<8x32xf32>
    %322 = arith.mulf %320, %321 : vector<8x32xf32>
    %323 = arith.mulf %322, %225 : vector<8x32xf32>
    %324 = arith.addf %318, %323 : vector<8x32xf32>
    %cst_134 = arith.constant -2.200000e+00 : f32
    %325 = vector.broadcast %cst_134 : f32 to vector<8x32xf32>
    %326 = arith.subf %16, %325 : vector<8x32xf32>
    %cst_135 = arith.constant 0.833333313 : f32
    %327 = vector.broadcast %cst_135 : f32 to vector<8x32xf32>
    %328 = arith.mulf %326, %327 : vector<8x32xf32>
    %329 = arith.mulf %328, %236 : vector<8x32xf32>
    %cst_136 = arith.constant -6.000000e-01 : f32
    %330 = vector.broadcast %cst_136 : f32 to vector<8x32xf32>
    %331 = arith.subf %330, %16 : vector<8x32xf32>
    %cst_137 = arith.constant 0.833333373 : f32
    %332 = vector.broadcast %cst_137 : f32 to vector<8x32xf32>
    %333 = arith.mulf %331, %332 : vector<8x32xf32>
    %334 = arith.mulf %333, %247 : vector<8x32xf32>
    %335 = arith.addf %329, %334 : vector<8x32xf32>
    %cst_138 = arith.constant -1.800000e+00 : f32
    %336 = vector.broadcast %cst_138 : f32 to vector<8x32xf32>
    %337 = arith.subf %16, %336 : vector<8x32xf32>
    %cst_139 = arith.constant 0.833333373 : f32
    %338 = vector.broadcast %cst_139 : f32 to vector<8x32xf32>
    %339 = arith.mulf %337, %338 : vector<8x32xf32>
    %340 = arith.mulf %339, %247 : vector<8x32xf32>
    %cst_140 = arith.constant -0.199999988 : f32
    %341 = vector.broadcast %cst_140 : f32 to vector<8x32xf32>
    %342 = arith.subf %341, %16 : vector<8x32xf32>
    %cst_141 = arith.constant 0.833333313 : f32
    %343 = vector.broadcast %cst_141 : f32 to vector<8x32xf32>
    %344 = arith.mulf %342, %343 : vector<8x32xf32>
    %345 = arith.mulf %344, %258 : vector<8x32xf32>
    %346 = arith.addf %340, %345 : vector<8x32xf32>
    %cst_142 = arith.constant -1.400000e+00 : f32
    %347 = vector.broadcast %cst_142 : f32 to vector<8x32xf32>
    %348 = arith.subf %16, %347 : vector<8x32xf32>
    %cst_143 = arith.constant 0.833333313 : f32
    %349 = vector.broadcast %cst_143 : f32 to vector<8x32xf32>
    %350 = arith.mulf %348, %349 : vector<8x32xf32>
    %351 = arith.mulf %350, %258 : vector<8x32xf32>
    %cst_144 = arith.constant 0.200000048 : f32
    %352 = vector.broadcast %cst_144 : f32 to vector<8x32xf32>
    %353 = arith.subf %352, %16 : vector<8x32xf32>
    %cst_145 = arith.constant 0.833333313 : f32
    %354 = vector.broadcast %cst_145 : f32 to vector<8x32xf32>
    %355 = arith.mulf %353, %354 : vector<8x32xf32>
    %356 = arith.mulf %355, %269 : vector<8x32xf32>
    %357 = arith.addf %351, %356 : vector<8x32xf32>
    %cst_146 = arith.constant -1.000000e+00 : f32
    %358 = vector.broadcast %cst_146 : f32 to vector<8x32xf32>
    %359 = arith.subf %16, %358 : vector<8x32xf32>
    %cst_147 = arith.constant 0.833333313 : f32
    %360 = vector.broadcast %cst_147 : f32 to vector<8x32xf32>
    %361 = arith.mulf %359, %360 : vector<8x32xf32>
    %362 = arith.mulf %361, %269 : vector<8x32xf32>
    %cst_148 = arith.constant 6.000000e-01 : f32
    %363 = vector.broadcast %cst_148 : f32 to vector<8x32xf32>
    %364 = arith.subf %363, %16 : vector<8x32xf32>
    %cst_149 = arith.constant 0.833333313 : f32
    %365 = vector.broadcast %cst_149 : f32 to vector<8x32xf32>
    %366 = arith.mulf %364, %365 : vector<8x32xf32>
    %367 = arith.mulf %366, %280 : vector<8x32xf32>
    %368 = arith.addf %362, %367 : vector<8x32xf32>
    %cst_150 = arith.constant -6.000000e-01 : f32
    %369 = vector.broadcast %cst_150 : f32 to vector<8x32xf32>
    %370 = arith.subf %16, %369 : vector<8x32xf32>
    %cst_151 = arith.constant 0.833333313 : f32
    %371 = vector.broadcast %cst_151 : f32 to vector<8x32xf32>
    %372 = arith.mulf %370, %371 : vector<8x32xf32>
    %373 = arith.mulf %372, %280 : vector<8x32xf32>
    %cst_152 = arith.constant 1.000000e+00 : f32
    %374 = vector.broadcast %cst_152 : f32 to vector<8x32xf32>
    %375 = arith.subf %374, %16 : vector<8x32xf32>
    %cst_153 = arith.constant 0.833333313 : f32
    %376 = vector.broadcast %cst_153 : f32 to vector<8x32xf32>
    %377 = arith.mulf %375, %376 : vector<8x32xf32>
    %378 = arith.mulf %377, %291 : vector<8x32xf32>
    %379 = arith.addf %373, %378 : vector<8x32xf32>
    %cst_154 = arith.constant -0.199999988 : f32
    %380 = vector.broadcast %cst_154 : f32 to vector<8x32xf32>
    %381 = arith.subf %16, %380 : vector<8x32xf32>
    %cst_155 = arith.constant 0.833333313 : f32
    %382 = vector.broadcast %cst_155 : f32 to vector<8x32xf32>
    %383 = arith.mulf %381, %382 : vector<8x32xf32>
    %384 = arith.mulf %383, %291 : vector<8x32xf32>
    %cst_156 = arith.constant 1.4000001 : f32
    %385 = vector.broadcast %cst_156 : f32 to vector<8x32xf32>
    %386 = arith.subf %385, %16 : vector<8x32xf32>
    %cst_157 = arith.constant 0.833333313 : f32
    %387 = vector.broadcast %cst_157 : f32 to vector<8x32xf32>
    %388 = arith.mulf %386, %387 : vector<8x32xf32>
    %389 = arith.mulf %388, %302 : vector<8x32xf32>
    %390 = arith.addf %384, %389 : vector<8x32xf32>
    %cst_158 = arith.constant 0.200000048 : f32
    %391 = vector.broadcast %cst_158 : f32 to vector<8x32xf32>
    %392 = arith.subf %16, %391 : vector<8x32xf32>
    %cst_159 = arith.constant 0.833333313 : f32
    %393 = vector.broadcast %cst_159 : f32 to vector<8x32xf32>
    %394 = arith.mulf %392, %393 : vector<8x32xf32>
    %395 = arith.mulf %394, %302 : vector<8x32xf32>
    %cst_160 = arith.constant 1.800000e+00 : f32
    %396 = vector.broadcast %cst_160 : f32 to vector<8x32xf32>
    %397 = arith.subf %396, %16 : vector<8x32xf32>
    %cst_161 = arith.constant 0.833333373 : f32
    %398 = vector.broadcast %cst_161 : f32 to vector<8x32xf32>
    %399 = arith.mulf %397, %398 : vector<8x32xf32>
    %400 = arith.mulf %399, %313 : vector<8x32xf32>
    %401 = arith.addf %395, %400 : vector<8x32xf32>
    %cst_162 = arith.constant 6.000000e-01 : f32
    %402 = vector.broadcast %cst_162 : f32 to vector<8x32xf32>
    %403 = arith.subf %16, %402 : vector<8x32xf32>
    %cst_163 = arith.constant 0.833333373 : f32
    %404 = vector.broadcast %cst_163 : f32 to vector<8x32xf32>
    %405 = arith.mulf %403, %404 : vector<8x32xf32>
    %406 = arith.mulf %405, %313 : vector<8x32xf32>
    %cst_164 = arith.constant 2.200000e+00 : f32
    %407 = vector.broadcast %cst_164 : f32 to vector<8x32xf32>
    %408 = arith.subf %407, %16 : vector<8x32xf32>
    %cst_165 = arith.constant 0.833333313 : f32
    %409 = vector.broadcast %cst_165 : f32 to vector<8x32xf32>
    %410 = arith.mulf %408, %409 : vector<8x32xf32>
    %411 = arith.mulf %410, %324 : vector<8x32xf32>
    %412 = arith.addf %406, %411 : vector<8x32xf32>
    %413 = tpu.concatenate %335, %346, %357, %368, %379, %390, %401, %412 in 1 : vector<8x32xf32>, vector<8x32xf32>, vector<8x32xf32>, vector<8x32xf32>, vector<8x32xf32>, vector<8x32xf32>, vector<8x32xf32>, vector<8x32xf32> -> vector<8x256xf32>
    %cst_166 = arith.constant dense<0.000000e+00> : vector<8x64xf32>
    %414 = tpu.matmul %413, %20, %cst_166 {dimension_numbers = #tpu.dot_dimension_numbers<[1], [0], [0], [1], [0, 0, 1, 1], [], []>} : vector<8x256xf32>, vector<256x64xf32>, vector<8x64xf32> -> vector<8x64xf32>
    %415 = arith.addf %27, %414 : vector<8x64xf32>
    %c0_167 = arith.constant 0 : index
    %c0_168 = arith.constant 0 : index
    %c0_169 = arith.constant 0 : index
    %416 = vector.load %arg7[%c0_167, %c0_168, %c0_169] : memref<1x32x64xf32, #tpu.memory_space<vmem>>, vector<1x32x64xf32>
    %417 = vector.shape_cast %416 : vector<1x32x64xf32> to vector<32x64xf32>
    %c0_170 = arith.constant 0 : index
    %c0_171 = arith.constant 0 : index
    %c0_172 = arith.constant 0 : index
    %418 = vector.load %arg8[%c0_170, %c0_171, %c0_172] : memref<1x256x64xf32, #tpu.memory_space<vmem>>, vector<1x256x64xf32>
    %419 = vector.shape_cast %418 : vector<1x256x64xf32> to vector<256x64xf32>
    %420 = arith.negf %16 : vector<8x32xf32>
    %421 = math.exp %420 : vector<8x32xf32>
    %cst_173 = arith.constant 1.000000e+00 : f32
    %422 = vector.broadcast %cst_173 : f32 to vector<8x32xf32>
    %423 = arith.addf %422, %421 : vector<8x32xf32>
    %424 = arith.divf %422, %423 : vector<8x32xf32>
    %425 = arith.mulf %16, %424 : vector<8x32xf32>
    %cst_174 = arith.constant dense<0.000000e+00> : vector<8x64xf32>
    %426 = tpu.matmul %425, %417, %cst_174 {dimension_numbers = #tpu.dot_dimension_numbers<[1], [0], [0], [1], [0, 0, 1, 1], [], []>} : vector<8x32xf32>, vector<32x64xf32>, vector<8x64xf32> -> vector<8x64xf32>
    %cst_175 = arith.constant -2.200000e+00 : f32
    %427 = vector.broadcast %cst_175 : f32 to vector<8x32xf32>
    %428 = arith.cmpf oge, %16, %427 : vector<8x32xf32>
    %cst_176 = arith.constant -1.800000e+00 : f32
    %429 = vector.broadcast %cst_176 : f32 to vector<8x32xf32>
    %430 = arith.cmpf olt, %16, %429 : vector<8x32xf32>
    %431 = arith.andi %428, %430 : vector<8x32xi1>
    %cst_177 = arith.constant 1.000000e+00 : f32
    %cst_178 = arith.constant 0.000000e+00 : f32
    %432 = vector.broadcast %cst_177 : f32 to vector<8x32xf32>
    %433 = vector.broadcast %cst_178 : f32 to vector<8x32xf32>
    %434 = arith.select %431, %432, %433 : vector<8x32xi1>, vector<8x32xf32>
    %cst_179 = arith.constant -1.800000e+00 : f32
    %435 = vector.broadcast %cst_179 : f32 to vector<8x32xf32>
    %436 = arith.cmpf oge, %16, %435 : vector<8x32xf32>
    %cst_180 = arith.constant -1.400000e+00 : f32
    %437 = vector.broadcast %cst_180 : f32 to vector<8x32xf32>
    %438 = arith.cmpf olt, %16, %437 : vector<8x32xf32>
    %439 = arith.andi %436, %438 : vector<8x32xi1>
    %cst_181 = arith.constant 1.000000e+00 : f32
    %cst_182 = arith.constant 0.000000e+00 : f32
    %440 = vector.broadcast %cst_181 : f32 to vector<8x32xf32>
    %441 = vector.broadcast %cst_182 : f32 to vector<8x32xf32>
    %442 = arith.select %439, %440, %441 : vector<8x32xi1>, vector<8x32xf32>
    %cst_183 = arith.constant -1.400000e+00 : f32
    %443 = vector.broadcast %cst_183 : f32 to vector<8x32xf32>
    %444 = arith.cmpf oge, %16, %443 : vector<8x32xf32>
    %cst_184 = arith.constant -1.000000e+00 : f32
    %445 = vector.broadcast %cst_184 : f32 to vector<8x32xf32>
    %446 = arith.cmpf olt, %16, %445 : vector<8x32xf32>
    %447 = arith.andi %444, %446 : vector<8x32xi1>
    %cst_185 = arith.constant 1.000000e+00 : f32
    %cst_186 = arith.constant 0.000000e+00 : f32
    %448 = vector.broadcast %cst_185 : f32 to vector<8x32xf32>
    %449 = vector.broadcast %cst_186 : f32 to vector<8x32xf32>
    %450 = arith.select %447, %448, %449 : vector<8x32xi1>, vector<8x32xf32>
    %cst_187 = arith.constant -1.000000e+00 : f32
    %451 = vector.broadcast %cst_187 : f32 to vector<8x32xf32>
    %452 = arith.cmpf oge, %16, %451 : vector<8x32xf32>
    %cst_188 = arith.constant -6.000000e-01 : f32
    %453 = vector.broadcast %cst_188 : f32 to vector<8x32xf32>
    %454 = arith.cmpf olt, %16, %453 : vector<8x32xf32>
    %455 = arith.andi %452, %454 : vector<8x32xi1>
    %cst_189 = arith.constant 1.000000e+00 : f32
    %cst_190 = arith.constant 0.000000e+00 : f32
    %456 = vector.broadcast %cst_189 : f32 to vector<8x32xf32>
    %457 = vector.broadcast %cst_190 : f32 to vector<8x32xf32>
    %458 = arith.select %455, %456, %457 : vector<8x32xi1>, vector<8x32xf32>
    %cst_191 = arith.constant -6.000000e-01 : f32
    %459 = vector.broadcast %cst_191 : f32 to vector<8x32xf32>
    %460 = arith.cmpf oge, %16, %459 : vector<8x32xf32>
    %cst_192 = arith.constant -0.199999988 : f32
    %461 = vector.broadcast %cst_192 : f32 to vector<8x32xf32>
    %462 = arith.cmpf olt, %16, %461 : vector<8x32xf32>
    %463 = arith.andi %460, %462 : vector<8x32xi1>
    %cst_193 = arith.constant 1.000000e+00 : f32
    %cst_194 = arith.constant 0.000000e+00 : f32
    %464 = vector.broadcast %cst_193 : f32 to vector<8x32xf32>
    %465 = vector.broadcast %cst_194 : f32 to vector<8x32xf32>
    %466 = arith.select %463, %464, %465 : vector<8x32xi1>, vector<8x32xf32>
    %cst_195 = arith.constant -0.199999988 : f32
    %467 = vector.broadcast %cst_195 : f32 to vector<8x32xf32>
    %468 = arith.cmpf oge, %16, %467 : vector<8x32xf32>
    %cst_196 = arith.constant 0.200000048 : f32
    %469 = vector.broadcast %cst_196 : f32 to vector<8x32xf32>
    %470 = arith.cmpf olt, %16, %469 : vector<8x32xf32>
    %471 = arith.andi %468, %470 : vector<8x32xi1>
    %cst_197 = arith.constant 1.000000e+00 : f32
    %cst_198 = arith.constant 0.000000e+00 : f32
    %472 = vector.broadcast %cst_197 : f32 to vector<8x32xf32>
    %473 = vector.broadcast %cst_198 : f32 to vector<8x32xf32>
    %474 = arith.select %471, %472, %473 : vector<8x32xi1>, vector<8x32xf32>
    %cst_199 = arith.constant 0.200000048 : f32
    %475 = vector.broadcast %cst_199 : f32 to vector<8x32xf32>
    %476 = arith.cmpf oge, %16, %475 : vector<8x32xf32>
    %cst_200 = arith.constant 6.000000e-01 : f32
    %477 = vector.broadcast %cst_200 : f32 to vector<8x32xf32>
    %478 = arith.cmpf olt, %16, %477 : vector<8x32xf32>
    %479 = arith.andi %476, %478 : vector<8x32xi1>
    %cst_201 = arith.constant 1.000000e+00 : f32
    %cst_202 = arith.constant 0.000000e+00 : f32
    %480 = vector.broadcast %cst_201 : f32 to vector<8x32xf32>
    %481 = vector.broadcast %cst_202 : f32 to vector<8x32xf32>
    %482 = arith.select %479, %480, %481 : vector<8x32xi1>, vector<8x32xf32>
    %cst_203 = arith.constant 6.000000e-01 : f32
    %483 = vector.broadcast %cst_203 : f32 to vector<8x32xf32>
    %484 = arith.cmpf oge, %16, %483 : vector<8x32xf32>
    %cst_204 = arith.constant 1.000000e+00 : f32
    %485 = vector.broadcast %cst_204 : f32 to vector<8x32xf32>
    %486 = arith.cmpf olt, %16, %485 : vector<8x32xf32>
    %487 = arith.andi %484, %486 : vector<8x32xi1>
    %cst_205 = arith.constant 1.000000e+00 : f32
    %cst_206 = arith.constant 0.000000e+00 : f32
    %488 = vector.broadcast %cst_205 : f32 to vector<8x32xf32>
    %489 = vector.broadcast %cst_206 : f32 to vector<8x32xf32>
    %490 = arith.select %487, %488, %489 : vector<8x32xi1>, vector<8x32xf32>
    %cst_207 = arith.constant 1.000000e+00 : f32
    %491 = vector.broadcast %cst_207 : f32 to vector<8x32xf32>
    %492 = arith.cmpf oge, %16, %491 : vector<8x32xf32>
    %cst_208 = arith.constant 1.4000001 : f32
    %493 = vector.broadcast %cst_208 : f32 to vector<8x32xf32>
    %494 = arith.cmpf olt, %16, %493 : vector<8x32xf32>
    %495 = arith.andi %492, %494 : vector<8x32xi1>
    %cst_209 = arith.constant 1.000000e+00 : f32
    %cst_210 = arith.constant 0.000000e+00 : f32
    %496 = vector.broadcast %cst_209 : f32 to vector<8x32xf32>
    %497 = vector.broadcast %cst_210 : f32 to vector<8x32xf32>
    %498 = arith.select %495, %496, %497 : vector<8x32xi1>, vector<8x32xf32>
    %cst_211 = arith.constant 1.4000001 : f32
    %499 = vector.broadcast %cst_211 : f32 to vector<8x32xf32>
    %500 = arith.cmpf oge, %16, %499 : vector<8x32xf32>
    %cst_212 = arith.constant 1.800000e+00 : f32
    %501 = vector.broadcast %cst_212 : f32 to vector<8x32xf32>
    %502 = arith.cmpf olt, %16, %501 : vector<8x32xf32>
    %503 = arith.andi %500, %502 : vector<8x32xi1>
    %cst_213 = arith.constant 1.000000e+00 : f32
    %cst_214 = arith.constant 0.000000e+00 : f32
    %504 = vector.broadcast %cst_213 : f32 to vector<8x32xf32>
    %505 = vector.broadcast %cst_214 : f32 to vector<8x32xf32>
    %506 = arith.select %503, %504, %505 : vector<8x32xi1>, vector<8x32xf32>
    %cst_215 = arith.constant 1.800000e+00 : f32
    %507 = vector.broadcast %cst_215 : f32 to vector<8x32xf32>
    %508 = arith.cmpf oge, %16, %507 : vector<8x32xf32>
    %cst_216 = arith.constant 2.200000e+00 : f32
    %509 = vector.broadcast %cst_216 : f32 to vector<8x32xf32>
    %510 = arith.cmpf olt, %16, %509 : vector<8x32xf32>
    %511 = arith.andi %508, %510 : vector<8x32xi1>
    %cst_217 = arith.constant 1.000000e+00 : f32
    %cst_218 = arith.constant 0.000000e+00 : f32
    %512 = vector.broadcast %cst_217 : f32 to vector<8x32xf32>
    %513 = vector.broadcast %cst_218 : f32 to vector<8x32xf32>
    %514 = arith.select %511, %512, %513 : vector<8x32xi1>, vector<8x32xf32>
    %cst_219 = arith.constant -2.200000e+00 : f32
    %515 = vector.broadcast %cst_219 : f32 to vector<8x32xf32>
    %516 = arith.subf %16, %515 : vector<8x32xf32>
    %cst_220 = arith.constant 2.49999952 : f32
    %517 = vector.broadcast %cst_220 : f32 to vector<8x32xf32>
    %518 = arith.mulf %516, %517 : vector<8x32xf32>
    %519 = arith.mulf %518, %434 : vector<8x32xf32>
    %cst_221 = arith.constant -1.400000e+00 : f32
    %520 = vector.broadcast %cst_221 : f32 to vector<8x32xf32>
    %521 = arith.subf %520, %16 : vector<8x32xf32>
    %cst_222 = arith.constant 2.50000024 : f32
    %522 = vector.broadcast %cst_222 : f32 to vector<8x32xf32>
    %523 = arith.mulf %521, %522 : vector<8x32xf32>
    %524 = arith.mulf %523, %442 : vector<8x32xf32>
    %525 = arith.addf %519, %524 : vector<8x32xf32>
    %cst_223 = arith.constant -1.800000e+00 : f32
    %526 = vector.broadcast %cst_223 : f32 to vector<8x32xf32>
    %527 = arith.subf %16, %526 : vector<8x32xf32>
    %cst_224 = arith.constant 2.50000024 : f32
    %528 = vector.broadcast %cst_224 : f32 to vector<8x32xf32>
    %529 = arith.mulf %527, %528 : vector<8x32xf32>
    %530 = arith.mulf %529, %442 : vector<8x32xf32>
    %cst_225 = arith.constant -1.000000e+00 : f32
    %531 = vector.broadcast %cst_225 : f32 to vector<8x32xf32>
    %532 = arith.subf %531, %16 : vector<8x32xf32>
    %cst_226 = arith.constant 2.50000024 : f32
    %533 = vector.broadcast %cst_226 : f32 to vector<8x32xf32>
    %534 = arith.mulf %532, %533 : vector<8x32xf32>
    %535 = arith.mulf %534, %450 : vector<8x32xf32>
    %536 = arith.addf %530, %535 : vector<8x32xf32>
    %cst_227 = arith.constant -1.400000e+00 : f32
    %537 = vector.broadcast %cst_227 : f32 to vector<8x32xf32>
    %538 = arith.subf %16, %537 : vector<8x32xf32>
    %cst_228 = arith.constant 2.50000024 : f32
    %539 = vector.broadcast %cst_228 : f32 to vector<8x32xf32>
    %540 = arith.mulf %538, %539 : vector<8x32xf32>
    %541 = arith.mulf %540, %450 : vector<8x32xf32>
    %cst_229 = arith.constant -6.000000e-01 : f32
    %542 = vector.broadcast %cst_229 : f32 to vector<8x32xf32>
    %543 = arith.subf %542, %16 : vector<8x32xf32>
    %cst_230 = arith.constant 2.50000024 : f32
    %544 = vector.broadcast %cst_230 : f32 to vector<8x32xf32>
    %545 = arith.mulf %543, %544 : vector<8x32xf32>
    %546 = arith.mulf %545, %458 : vector<8x32xf32>
    %547 = arith.addf %541, %546 : vector<8x32xf32>
    %cst_231 = arith.constant -1.000000e+00 : f32
    %548 = vector.broadcast %cst_231 : f32 to vector<8x32xf32>
    %549 = arith.subf %16, %548 : vector<8x32xf32>
    %cst_232 = arith.constant 2.50000024 : f32
    %550 = vector.broadcast %cst_232 : f32 to vector<8x32xf32>
    %551 = arith.mulf %549, %550 : vector<8x32xf32>
    %552 = arith.mulf %551, %458 : vector<8x32xf32>
    %cst_233 = arith.constant -0.199999988 : f32
    %553 = vector.broadcast %cst_233 : f32 to vector<8x32xf32>
    %554 = arith.subf %553, %16 : vector<8x32xf32>
    %cst_234 = arith.constant 2.49999976 : f32
    %555 = vector.broadcast %cst_234 : f32 to vector<8x32xf32>
    %556 = arith.mulf %554, %555 : vector<8x32xf32>
    %557 = arith.mulf %556, %466 : vector<8x32xf32>
    %558 = arith.addf %552, %557 : vector<8x32xf32>
    %cst_235 = arith.constant -6.000000e-01 : f32
    %559 = vector.broadcast %cst_235 : f32 to vector<8x32xf32>
    %560 = arith.subf %16, %559 : vector<8x32xf32>
    %cst_236 = arith.constant 2.49999976 : f32
    %561 = vector.broadcast %cst_236 : f32 to vector<8x32xf32>
    %562 = arith.mulf %560, %561 : vector<8x32xf32>
    %563 = arith.mulf %562, %466 : vector<8x32xf32>
    %cst_237 = arith.constant 0.200000048 : f32
    %564 = vector.broadcast %cst_237 : f32 to vector<8x32xf32>
    %565 = arith.subf %564, %16 : vector<8x32xf32>
    %cst_238 = arith.constant 2.49999976 : f32
    %566 = vector.broadcast %cst_238 : f32 to vector<8x32xf32>
    %567 = arith.mulf %565, %566 : vector<8x32xf32>
    %568 = arith.mulf %567, %474 : vector<8x32xf32>
    %569 = arith.addf %563, %568 : vector<8x32xf32>
    %cst_239 = arith.constant -0.199999988 : f32
    %570 = vector.broadcast %cst_239 : f32 to vector<8x32xf32>
    %571 = arith.subf %16, %570 : vector<8x32xf32>
    %cst_240 = arith.constant 2.49999976 : f32
    %572 = vector.broadcast %cst_240 : f32 to vector<8x32xf32>
    %573 = arith.mulf %571, %572 : vector<8x32xf32>
    %574 = arith.mulf %573, %474 : vector<8x32xf32>
    %cst_241 = arith.constant 6.000000e-01 : f32
    %575 = vector.broadcast %cst_241 : f32 to vector<8x32xf32>
    %576 = arith.subf %575, %16 : vector<8x32xf32>
    %cst_242 = arith.constant 2.50000024 : f32
    %577 = vector.broadcast %cst_242 : f32 to vector<8x32xf32>
    %578 = arith.mulf %576, %577 : vector<8x32xf32>
    %579 = arith.mulf %578, %482 : vector<8x32xf32>
    %580 = arith.addf %574, %579 : vector<8x32xf32>
    %cst_243 = arith.constant 0.200000048 : f32
    %581 = vector.broadcast %cst_243 : f32 to vector<8x32xf32>
    %582 = arith.subf %16, %581 : vector<8x32xf32>
    %cst_244 = arith.constant 2.50000024 : f32
    %583 = vector.broadcast %cst_244 : f32 to vector<8x32xf32>
    %584 = arith.mulf %582, %583 : vector<8x32xf32>
    %585 = arith.mulf %584, %482 : vector<8x32xf32>
    %cst_245 = arith.constant 1.000000e+00 : f32
    %586 = vector.broadcast %cst_245 : f32 to vector<8x32xf32>
    %587 = arith.subf %586, %16 : vector<8x32xf32>
    %cst_246 = arith.constant 2.50000024 : f32
    %588 = vector.broadcast %cst_246 : f32 to vector<8x32xf32>
    %589 = arith.mulf %587, %588 : vector<8x32xf32>
    %590 = arith.mulf %589, %490 : vector<8x32xf32>
    %591 = arith.addf %585, %590 : vector<8x32xf32>
    %cst_247 = arith.constant 6.000000e-01 : f32
    %592 = vector.broadcast %cst_247 : f32 to vector<8x32xf32>
    %593 = arith.subf %16, %592 : vector<8x32xf32>
    %cst_248 = arith.constant 2.50000024 : f32
    %594 = vector.broadcast %cst_248 : f32 to vector<8x32xf32>
    %595 = arith.mulf %593, %594 : vector<8x32xf32>
    %596 = arith.mulf %595, %490 : vector<8x32xf32>
    %cst_249 = arith.constant 1.4000001 : f32
    %597 = vector.broadcast %cst_249 : f32 to vector<8x32xf32>
    %598 = arith.subf %597, %16 : vector<8x32xf32>
    %cst_250 = arith.constant 2.49999952 : f32
    %599 = vector.broadcast %cst_250 : f32 to vector<8x32xf32>
    %600 = arith.mulf %598, %599 : vector<8x32xf32>
    %601 = arith.mulf %600, %498 : vector<8x32xf32>
    %602 = arith.addf %596, %601 : vector<8x32xf32>
    %cst_251 = arith.constant 1.000000e+00 : f32
    %603 = vector.broadcast %cst_251 : f32 to vector<8x32xf32>
    %604 = arith.subf %16, %603 : vector<8x32xf32>
    %cst_252 = arith.constant 2.49999952 : f32
    %605 = vector.broadcast %cst_252 : f32 to vector<8x32xf32>
    %606 = arith.mulf %604, %605 : vector<8x32xf32>
    %607 = arith.mulf %606, %498 : vector<8x32xf32>
    %cst_253 = arith.constant 1.800000e+00 : f32
    %608 = vector.broadcast %cst_253 : f32 to vector<8x32xf32>
    %609 = arith.subf %608, %16 : vector<8x32xf32>
    %cst_254 = arith.constant 2.50000095 : f32
    %610 = vector.broadcast %cst_254 : f32 to vector<8x32xf32>
    %611 = arith.mulf %609, %610 : vector<8x32xf32>
    %612 = arith.mulf %611, %506 : vector<8x32xf32>
    %613 = arith.addf %607, %612 : vector<8x32xf32>
    %cst_255 = arith.constant 1.4000001 : f32
    %614 = vector.broadcast %cst_255 : f32 to vector<8x32xf32>
    %615 = arith.subf %16, %614 : vector<8x32xf32>
    %cst_256 = arith.constant 2.50000095 : f32
    %616 = vector.broadcast %cst_256 : f32 to vector<8x32xf32>
    %617 = arith.mulf %615, %616 : vector<8x32xf32>
    %618 = arith.mulf %617, %506 : vector<8x32xf32>
    %cst_257 = arith.constant 2.200000e+00 : f32
    %619 = vector.broadcast %cst_257 : f32 to vector<8x32xf32>
    %620 = arith.subf %619, %16 : vector<8x32xf32>
    %cst_258 = arith.constant 2.49999952 : f32
    %621 = vector.broadcast %cst_258 : f32 to vector<8x32xf32>
    %622 = arith.mulf %620, %621 : vector<8x32xf32>
    %623 = arith.mulf %622, %514 : vector<8x32xf32>
    %624 = arith.addf %618, %623 : vector<8x32xf32>
    %cst_259 = arith.constant -2.200000e+00 : f32
    %625 = vector.broadcast %cst_259 : f32 to vector<8x32xf32>
    %626 = arith.subf %16, %625 : vector<8x32xf32>
    %cst_260 = arith.constant 1.24999988 : f32
    %627 = vector.broadcast %cst_260 : f32 to vector<8x32xf32>
    %628 = arith.mulf %626, %627 : vector<8x32xf32>
    %629 = arith.mulf %628, %525 : vector<8x32xf32>
    %cst_261 = arith.constant -1.000000e+00 : f32
    %630 = vector.broadcast %cst_261 : f32 to vector<8x32xf32>
    %631 = arith.subf %630, %16 : vector<8x32xf32>
    %cst_262 = arith.constant 1.25000012 : f32
    %632 = vector.broadcast %cst_262 : f32 to vector<8x32xf32>
    %633 = arith.mulf %631, %632 : vector<8x32xf32>
    %634 = arith.mulf %633, %536 : vector<8x32xf32>
    %635 = arith.addf %629, %634 : vector<8x32xf32>
    %cst_263 = arith.constant -1.800000e+00 : f32
    %636 = vector.broadcast %cst_263 : f32 to vector<8x32xf32>
    %637 = arith.subf %16, %636 : vector<8x32xf32>
    %cst_264 = arith.constant 1.25000012 : f32
    %638 = vector.broadcast %cst_264 : f32 to vector<8x32xf32>
    %639 = arith.mulf %637, %638 : vector<8x32xf32>
    %640 = arith.mulf %639, %536 : vector<8x32xf32>
    %cst_265 = arith.constant -6.000000e-01 : f32
    %641 = vector.broadcast %cst_265 : f32 to vector<8x32xf32>
    %642 = arith.subf %641, %16 : vector<8x32xf32>
    %cst_266 = arith.constant 1.25000012 : f32
    %643 = vector.broadcast %cst_266 : f32 to vector<8x32xf32>
    %644 = arith.mulf %642, %643 : vector<8x32xf32>
    %645 = arith.mulf %644, %547 : vector<8x32xf32>
    %646 = arith.addf %640, %645 : vector<8x32xf32>
    %cst_267 = arith.constant -1.400000e+00 : f32
    %647 = vector.broadcast %cst_267 : f32 to vector<8x32xf32>
    %648 = arith.subf %16, %647 : vector<8x32xf32>
    %cst_268 = arith.constant 1.25000012 : f32
    %649 = vector.broadcast %cst_268 : f32 to vector<8x32xf32>
    %650 = arith.mulf %648, %649 : vector<8x32xf32>
    %651 = arith.mulf %650, %547 : vector<8x32xf32>
    %cst_269 = arith.constant -0.199999988 : f32
    %652 = vector.broadcast %cst_269 : f32 to vector<8x32xf32>
    %653 = arith.subf %652, %16 : vector<8x32xf32>
    %cst_270 = arith.constant 1.250000e+00 : f32
    %654 = vector.broadcast %cst_270 : f32 to vector<8x32xf32>
    %655 = arith.mulf %653, %654 : vector<8x32xf32>
    %656 = arith.mulf %655, %558 : vector<8x32xf32>
    %657 = arith.addf %651, %656 : vector<8x32xf32>
    %cst_271 = arith.constant -1.000000e+00 : f32
    %658 = vector.broadcast %cst_271 : f32 to vector<8x32xf32>
    %659 = arith.subf %16, %658 : vector<8x32xf32>
    %cst_272 = arith.constant 1.250000e+00 : f32
    %660 = vector.broadcast %cst_272 : f32 to vector<8x32xf32>
    %661 = arith.mulf %659, %660 : vector<8x32xf32>
    %662 = arith.mulf %661, %558 : vector<8x32xf32>
    %cst_273 = arith.constant 0.200000048 : f32
    %663 = vector.broadcast %cst_273 : f32 to vector<8x32xf32>
    %664 = arith.subf %663, %16 : vector<8x32xf32>
    %cst_274 = arith.constant 1.24999988 : f32
    %665 = vector.broadcast %cst_274 : f32 to vector<8x32xf32>
    %666 = arith.mulf %664, %665 : vector<8x32xf32>
    %667 = arith.mulf %666, %569 : vector<8x32xf32>
    %668 = arith.addf %662, %667 : vector<8x32xf32>
    %cst_275 = arith.constant -6.000000e-01 : f32
    %669 = vector.broadcast %cst_275 : f32 to vector<8x32xf32>
    %670 = arith.subf %16, %669 : vector<8x32xf32>
    %cst_276 = arith.constant 1.24999988 : f32
    %671 = vector.broadcast %cst_276 : f32 to vector<8x32xf32>
    %672 = arith.mulf %670, %671 : vector<8x32xf32>
    %673 = arith.mulf %672, %569 : vector<8x32xf32>
    %cst_277 = arith.constant 6.000000e-01 : f32
    %674 = vector.broadcast %cst_277 : f32 to vector<8x32xf32>
    %675 = arith.subf %674, %16 : vector<8x32xf32>
    %cst_278 = arith.constant 1.250000e+00 : f32
    %676 = vector.broadcast %cst_278 : f32 to vector<8x32xf32>
    %677 = arith.mulf %675, %676 : vector<8x32xf32>
    %678 = arith.mulf %677, %580 : vector<8x32xf32>
    %679 = arith.addf %673, %678 : vector<8x32xf32>
    %cst_279 = arith.constant -0.199999988 : f32
    %680 = vector.broadcast %cst_279 : f32 to vector<8x32xf32>
    %681 = arith.subf %16, %680 : vector<8x32xf32>
    %cst_280 = arith.constant 1.250000e+00 : f32
    %682 = vector.broadcast %cst_280 : f32 to vector<8x32xf32>
    %683 = arith.mulf %681, %682 : vector<8x32xf32>
    %684 = arith.mulf %683, %580 : vector<8x32xf32>
    %cst_281 = arith.constant 1.000000e+00 : f32
    %685 = vector.broadcast %cst_281 : f32 to vector<8x32xf32>
    %686 = arith.subf %685, %16 : vector<8x32xf32>
    %cst_282 = arith.constant 1.25000012 : f32
    %687 = vector.broadcast %cst_282 : f32 to vector<8x32xf32>
    %688 = arith.mulf %686, %687 : vector<8x32xf32>
    %689 = arith.mulf %688, %591 : vector<8x32xf32>
    %690 = arith.addf %684, %689 : vector<8x32xf32>
    %cst_283 = arith.constant 0.200000048 : f32
    %691 = vector.broadcast %cst_283 : f32 to vector<8x32xf32>
    %692 = arith.subf %16, %691 : vector<8x32xf32>
    %cst_284 = arith.constant 1.25000012 : f32
    %693 = vector.broadcast %cst_284 : f32 to vector<8x32xf32>
    %694 = arith.mulf %692, %693 : vector<8x32xf32>
    %695 = arith.mulf %694, %591 : vector<8x32xf32>
    %cst_285 = arith.constant 1.4000001 : f32
    %696 = vector.broadcast %cst_285 : f32 to vector<8x32xf32>
    %697 = arith.subf %696, %16 : vector<8x32xf32>
    %cst_286 = arith.constant 1.24999988 : f32
    %698 = vector.broadcast %cst_286 : f32 to vector<8x32xf32>
    %699 = arith.mulf %697, %698 : vector<8x32xf32>
    %700 = arith.mulf %699, %602 : vector<8x32xf32>
    %701 = arith.addf %695, %700 : vector<8x32xf32>
    %cst_287 = arith.constant 6.000000e-01 : f32
    %702 = vector.broadcast %cst_287 : f32 to vector<8x32xf32>
    %703 = arith.subf %16, %702 : vector<8x32xf32>
    %cst_288 = arith.constant 1.24999988 : f32
    %704 = vector.broadcast %cst_288 : f32 to vector<8x32xf32>
    %705 = arith.mulf %703, %704 : vector<8x32xf32>
    %706 = arith.mulf %705, %602 : vector<8x32xf32>
    %cst_289 = arith.constant 1.800000e+00 : f32
    %707 = vector.broadcast %cst_289 : f32 to vector<8x32xf32>
    %708 = arith.subf %707, %16 : vector<8x32xf32>
    %cst_290 = arith.constant 1.25000012 : f32
    %709 = vector.broadcast %cst_290 : f32 to vector<8x32xf32>
    %710 = arith.mulf %708, %709 : vector<8x32xf32>
    %711 = arith.mulf %710, %613 : vector<8x32xf32>
    %712 = arith.addf %706, %711 : vector<8x32xf32>
    %cst_291 = arith.constant 1.000000e+00 : f32
    %713 = vector.broadcast %cst_291 : f32 to vector<8x32xf32>
    %714 = arith.subf %16, %713 : vector<8x32xf32>
    %cst_292 = arith.constant 1.25000012 : f32
    %715 = vector.broadcast %cst_292 : f32 to vector<8x32xf32>
    %716 = arith.mulf %714, %715 : vector<8x32xf32>
    %717 = arith.mulf %716, %613 : vector<8x32xf32>
    %cst_293 = arith.constant 2.200000e+00 : f32
    %718 = vector.broadcast %cst_293 : f32 to vector<8x32xf32>
    %719 = arith.subf %718, %16 : vector<8x32xf32>
    %cst_294 = arith.constant 1.25000012 : f32
    %720 = vector.broadcast %cst_294 : f32 to vector<8x32xf32>
    %721 = arith.mulf %719, %720 : vector<8x32xf32>
    %722 = arith.mulf %721, %624 : vector<8x32xf32>
    %723 = arith.addf %717, %722 : vector<8x32xf32>
    %cst_295 = arith.constant -2.200000e+00 : f32
    %724 = vector.broadcast %cst_295 : f32 to vector<8x32xf32>
    %725 = arith.subf %16, %724 : vector<8x32xf32>
    %cst_296 = arith.constant 0.833333313 : f32
    %726 = vector.broadcast %cst_296 : f32 to vector<8x32xf32>
    %727 = arith.mulf %725, %726 : vector<8x32xf32>
    %728 = arith.mulf %727, %635 : vector<8x32xf32>
    %cst_297 = arith.constant -6.000000e-01 : f32
    %729 = vector.broadcast %cst_297 : f32 to vector<8x32xf32>
    %730 = arith.subf %729, %16 : vector<8x32xf32>
    %cst_298 = arith.constant 0.833333373 : f32
    %731 = vector.broadcast %cst_298 : f32 to vector<8x32xf32>
    %732 = arith.mulf %730, %731 : vector<8x32xf32>
    %733 = arith.mulf %732, %646 : vector<8x32xf32>
    %734 = arith.addf %728, %733 : vector<8x32xf32>
    %cst_299 = arith.constant -1.800000e+00 : f32
    %735 = vector.broadcast %cst_299 : f32 to vector<8x32xf32>
    %736 = arith.subf %16, %735 : vector<8x32xf32>
    %cst_300 = arith.constant 0.833333373 : f32
    %737 = vector.broadcast %cst_300 : f32 to vector<8x32xf32>
    %738 = arith.mulf %736, %737 : vector<8x32xf32>
    %739 = arith.mulf %738, %646 : vector<8x32xf32>
    %cst_301 = arith.constant -0.199999988 : f32
    %740 = vector.broadcast %cst_301 : f32 to vector<8x32xf32>
    %741 = arith.subf %740, %16 : vector<8x32xf32>
    %cst_302 = arith.constant 0.833333313 : f32
    %742 = vector.broadcast %cst_302 : f32 to vector<8x32xf32>
    %743 = arith.mulf %741, %742 : vector<8x32xf32>
    %744 = arith.mulf %743, %657 : vector<8x32xf32>
    %745 = arith.addf %739, %744 : vector<8x32xf32>
    %cst_303 = arith.constant -1.400000e+00 : f32
    %746 = vector.broadcast %cst_303 : f32 to vector<8x32xf32>
    %747 = arith.subf %16, %746 : vector<8x32xf32>
    %cst_304 = arith.constant 0.833333313 : f32
    %748 = vector.broadcast %cst_304 : f32 to vector<8x32xf32>
    %749 = arith.mulf %747, %748 : vector<8x32xf32>
    %750 = arith.mulf %749, %657 : vector<8x32xf32>
    %cst_305 = arith.constant 0.200000048 : f32
    %751 = vector.broadcast %cst_305 : f32 to vector<8x32xf32>
    %752 = arith.subf %751, %16 : vector<8x32xf32>
    %cst_306 = arith.constant 0.833333313 : f32
    %753 = vector.broadcast %cst_306 : f32 to vector<8x32xf32>
    %754 = arith.mulf %752, %753 : vector<8x32xf32>
    %755 = arith.mulf %754, %668 : vector<8x32xf32>
    %756 = arith.addf %750, %755 : vector<8x32xf32>
    %cst_307 = arith.constant -1.000000e+00 : f32
    %757 = vector.broadcast %cst_307 : f32 to vector<8x32xf32>
    %758 = arith.subf %16, %757 : vector<8x32xf32>
    %cst_308 = arith.constant 0.833333313 : f32
    %759 = vector.broadcast %cst_308 : f32 to vector<8x32xf32>
    %760 = arith.mulf %758, %759 : vector<8x32xf32>
    %761 = arith.mulf %760, %668 : vector<8x32xf32>
    %cst_309 = arith.constant 6.000000e-01 : f32
    %762 = vector.broadcast %cst_309 : f32 to vector<8x32xf32>
    %763 = arith.subf %762, %16 : vector<8x32xf32>
    %cst_310 = arith.constant 0.833333313 : f32
    %764 = vector.broadcast %cst_310 : f32 to vector<8x32xf32>
    %765 = arith.mulf %763, %764 : vector<8x32xf32>
    %766 = arith.mulf %765, %679 : vector<8x32xf32>
    %767 = arith.addf %761, %766 : vector<8x32xf32>
    %cst_311 = arith.constant -6.000000e-01 : f32
    %768 = vector.broadcast %cst_311 : f32 to vector<8x32xf32>
    %769 = arith.subf %16, %768 : vector<8x32xf32>
    %cst_312 = arith.constant 0.833333313 : f32
    %770 = vector.broadcast %cst_312 : f32 to vector<8x32xf32>
    %771 = arith.mulf %769, %770 : vector<8x32xf32>
    %772 = arith.mulf %771, %679 : vector<8x32xf32>
    %cst_313 = arith.constant 1.000000e+00 : f32
    %773 = vector.broadcast %cst_313 : f32 to vector<8x32xf32>
    %774 = arith.subf %773, %16 : vector<8x32xf32>
    %cst_314 = arith.constant 0.833333313 : f32
    %775 = vector.broadcast %cst_314 : f32 to vector<8x32xf32>
    %776 = arith.mulf %774, %775 : vector<8x32xf32>
    %777 = arith.mulf %776, %690 : vector<8x32xf32>
    %778 = arith.addf %772, %777 : vector<8x32xf32>
    %cst_315 = arith.constant -0.199999988 : f32
    %779 = vector.broadcast %cst_315 : f32 to vector<8x32xf32>
    %780 = arith.subf %16, %779 : vector<8x32xf32>
    %cst_316 = arith.constant 0.833333313 : f32
    %781 = vector.broadcast %cst_316 : f32 to vector<8x32xf32>
    %782 = arith.mulf %780, %781 : vector<8x32xf32>
    %783 = arith.mulf %782, %690 : vector<8x32xf32>
    %cst_317 = arith.constant 1.4000001 : f32
    %784 = vector.broadcast %cst_317 : f32 to vector<8x32xf32>
    %785 = arith.subf %784, %16 : vector<8x32xf32>
    %cst_318 = arith.constant 0.833333313 : f32
    %786 = vector.broadcast %cst_318 : f32 to vector<8x32xf32>
    %787 = arith.mulf %785, %786 : vector<8x32xf32>
    %788 = arith.mulf %787, %701 : vector<8x32xf32>
    %789 = arith.addf %783, %788 : vector<8x32xf32>
    %cst_319 = arith.constant 0.200000048 : f32
    %790 = vector.broadcast %cst_319 : f32 to vector<8x32xf32>
    %791 = arith.subf %16, %790 : vector<8x32xf32>
    %cst_320 = arith.constant 0.833333313 : f32
    %792 = vector.broadcast %cst_320 : f32 to vector<8x32xf32>
    %793 = arith.mulf %791, %792 : vector<8x32xf32>
    %794 = arith.mulf %793, %701 : vector<8x32xf32>
    %cst_321 = arith.constant 1.800000e+00 : f32
    %795 = vector.broadcast %cst_321 : f32 to vector<8x32xf32>
    %796 = arith.subf %795, %16 : vector<8x32xf32>
    %cst_322 = arith.constant 0.833333373 : f32
    %797 = vector.broadcast %cst_322 : f32 to vector<8x32xf32>
    %798 = arith.mulf %796, %797 : vector<8x32xf32>
    %799 = arith.mulf %798, %712 : vector<8x32xf32>
    %800 = arith.addf %794, %799 : vector<8x32xf32>
    %cst_323 = arith.constant 6.000000e-01 : f32
    %801 = vector.broadcast %cst_323 : f32 to vector<8x32xf32>
    %802 = arith.subf %16, %801 : vector<8x32xf32>
    %cst_324 = arith.constant 0.833333373 : f32
    %803 = vector.broadcast %cst_324 : f32 to vector<8x32xf32>
    %804 = arith.mulf %802, %803 : vector<8x32xf32>
    %805 = arith.mulf %804, %712 : vector<8x32xf32>
    %cst_325 = arith.constant 2.200000e+00 : f32
    %806 = vector.broadcast %cst_325 : f32 to vector<8x32xf32>
    %807 = arith.subf %806, %16 : vector<8x32xf32>
    %cst_326 = arith.constant 0.833333313 : f32
    %808 = vector.broadcast %cst_326 : f32 to vector<8x32xf32>
    %809 = arith.mulf %807, %808 : vector<8x32xf32>
    %810 = arith.mulf %809, %723 : vector<8x32xf32>
    %811 = arith.addf %805, %810 : vector<8x32xf32>
    %812 = tpu.concatenate %734, %745, %756, %767, %778, %789, %800, %811 in 1 : vector<8x32xf32>, vector<8x32xf32>, vector<8x32xf32>, vector<8x32xf32>, vector<8x32xf32>, vector<8x32xf32>, vector<8x32xf32>, vector<8x32xf32> -> vector<8x256xf32>
    %cst_327 = arith.constant dense<0.000000e+00> : vector<8x64xf32>
    %813 = tpu.matmul %812, %419, %cst_327 {dimension_numbers = #tpu.dot_dimension_numbers<[1], [0], [0], [1], [0, 0, 1, 1], [], []>} : vector<8x256xf32>, vector<256x64xf32>, vector<8x64xf32> -> vector<8x64xf32>
    %814 = arith.addf %426, %813 : vector<8x64xf32>
    %815 = arith.mulf %415, %814 : vector<8x64xf32>
    %c0_328 = arith.constant 0 : index
    %c0_329 = arith.constant 0 : index
    %c0_330 = arith.constant 0 : index
    %816 = vector.load %arg9[%c0_328, %c0_329, %c0_330] : memref<1x64x32xf32, #tpu.memory_space<vmem>>, vector<1x64x32xf32>
    %817 = vector.shape_cast %816 : vector<1x64x32xf32> to vector<64x32xf32>
    %c0_331 = arith.constant 0 : index
    %c0_332 = arith.constant 0 : index
    %c0_333 = arith.constant 0 : index
    %818 = vector.load %arg10[%c0_331, %c0_332, %c0_333] : memref<1x512x32xf32, #tpu.memory_space<vmem>>, vector<1x512x32xf32>
    %819 = vector.shape_cast %818 : vector<1x512x32xf32> to vector<512x32xf32>
    %820 = arith.negf %815 : vector<8x64xf32>
    %821 = math.exp %820 : vector<8x64xf32>
    %cst_334 = arith.constant 1.000000e+00 : f32
    %822 = vector.broadcast %cst_334 : f32 to vector<8x64xf32>
    %823 = arith.addf %822, %821 : vector<8x64xf32>
    %824 = arith.divf %822, %823 : vector<8x64xf32>
    %825 = arith.mulf %815, %824 : vector<8x64xf32>
    %cst_335 = arith.constant dense<0.000000e+00> : vector<8x32xf32>
    %826 = tpu.matmul %825, %817, %cst_335 {dimension_numbers = #tpu.dot_dimension_numbers<[1], [0], [0], [1], [0, 0, 1, 1], [], []>} : vector<8x64xf32>, vector<64x32xf32>, vector<8x32xf32> -> vector<8x32xf32>
    %cst_336 = arith.constant -2.200000e+00 : f32
    %827 = vector.broadcast %cst_336 : f32 to vector<8x64xf32>
    %828 = arith.cmpf oge, %815, %827 : vector<8x64xf32>
    %cst_337 = arith.constant -1.800000e+00 : f32
    %829 = vector.broadcast %cst_337 : f32 to vector<8x64xf32>
    %830 = arith.cmpf olt, %815, %829 : vector<8x64xf32>
    %831 = arith.andi %828, %830 : vector<8x64xi1>
    %cst_338 = arith.constant 1.000000e+00 : f32
    %cst_339 = arith.constant 0.000000e+00 : f32
    %832 = vector.broadcast %cst_338 : f32 to vector<8x64xf32>
    %833 = vector.broadcast %cst_339 : f32 to vector<8x64xf32>
    %834 = arith.select %831, %832, %833 : vector<8x64xi1>, vector<8x64xf32>
    %cst_340 = arith.constant -1.800000e+00 : f32
    %835 = vector.broadcast %cst_340 : f32 to vector<8x64xf32>
    %836 = arith.cmpf oge, %815, %835 : vector<8x64xf32>
    %cst_341 = arith.constant -1.400000e+00 : f32
    %837 = vector.broadcast %cst_341 : f32 to vector<8x64xf32>
    %838 = arith.cmpf olt, %815, %837 : vector<8x64xf32>
    %839 = arith.andi %836, %838 : vector<8x64xi1>
    %cst_342 = arith.constant 1.000000e+00 : f32
    %cst_343 = arith.constant 0.000000e+00 : f32
    %840 = vector.broadcast %cst_342 : f32 to vector<8x64xf32>
    %841 = vector.broadcast %cst_343 : f32 to vector<8x64xf32>
    %842 = arith.select %839, %840, %841 : vector<8x64xi1>, vector<8x64xf32>
    %cst_344 = arith.constant -1.400000e+00 : f32
    %843 = vector.broadcast %cst_344 : f32 to vector<8x64xf32>
    %844 = arith.cmpf oge, %815, %843 : vector<8x64xf32>
    %cst_345 = arith.constant -1.000000e+00 : f32
    %845 = vector.broadcast %cst_345 : f32 to vector<8x64xf32>
    %846 = arith.cmpf olt, %815, %845 : vector<8x64xf32>
    %847 = arith.andi %844, %846 : vector<8x64xi1>
    %cst_346 = arith.constant 1.000000e+00 : f32
    %cst_347 = arith.constant 0.000000e+00 : f32
    %848 = vector.broadcast %cst_346 : f32 to vector<8x64xf32>
    %849 = vector.broadcast %cst_347 : f32 to vector<8x64xf32>
    %850 = arith.select %847, %848, %849 : vector<8x64xi1>, vector<8x64xf32>
    %cst_348 = arith.constant -1.000000e+00 : f32
    %851 = vector.broadcast %cst_348 : f32 to vector<8x64xf32>
    %852 = arith.cmpf oge, %815, %851 : vector<8x64xf32>
    %cst_349 = arith.constant -6.000000e-01 : f32
    %853 = vector.broadcast %cst_349 : f32 to vector<8x64xf32>
    %854 = arith.cmpf olt, %815, %853 : vector<8x64xf32>
    %855 = arith.andi %852, %854 : vector<8x64xi1>
    %cst_350 = arith.constant 1.000000e+00 : f32
    %cst_351 = arith.constant 0.000000e+00 : f32
    %856 = vector.broadcast %cst_350 : f32 to vector<8x64xf32>
    %857 = vector.broadcast %cst_351 : f32 to vector<8x64xf32>
    %858 = arith.select %855, %856, %857 : vector<8x64xi1>, vector<8x64xf32>
    %cst_352 = arith.constant -6.000000e-01 : f32
    %859 = vector.broadcast %cst_352 : f32 to vector<8x64xf32>
    %860 = arith.cmpf oge, %815, %859 : vector<8x64xf32>
    %cst_353 = arith.constant -0.199999988 : f32
    %861 = vector.broadcast %cst_353 : f32 to vector<8x64xf32>
    %862 = arith.cmpf olt, %815, %861 : vector<8x64xf32>
    %863 = arith.andi %860, %862 : vector<8x64xi1>
    %cst_354 = arith.constant 1.000000e+00 : f32
    %cst_355 = arith.constant 0.000000e+00 : f32
    %864 = vector.broadcast %cst_354 : f32 to vector<8x64xf32>
    %865 = vector.broadcast %cst_355 : f32 to vector<8x64xf32>
    %866 = arith.select %863, %864, %865 : vector<8x64xi1>, vector<8x64xf32>
    %cst_356 = arith.constant -0.199999988 : f32
    %867 = vector.broadcast %cst_356 : f32 to vector<8x64xf32>
    %868 = arith.cmpf oge, %815, %867 : vector<8x64xf32>
    %cst_357 = arith.constant 0.200000048 : f32
    %869 = vector.broadcast %cst_357 : f32 to vector<8x64xf32>
    %870 = arith.cmpf olt, %815, %869 : vector<8x64xf32>
    %871 = arith.andi %868, %870 : vector<8x64xi1>
    %cst_358 = arith.constant 1.000000e+00 : f32
    %cst_359 = arith.constant 0.000000e+00 : f32
    %872 = vector.broadcast %cst_358 : f32 to vector<8x64xf32>
    %873 = vector.broadcast %cst_359 : f32 to vector<8x64xf32>
    %874 = arith.select %871, %872, %873 : vector<8x64xi1>, vector<8x64xf32>
    %cst_360 = arith.constant 0.200000048 : f32
    %875 = vector.broadcast %cst_360 : f32 to vector<8x64xf32>
    %876 = arith.cmpf oge, %815, %875 : vector<8x64xf32>
    %cst_361 = arith.constant 6.000000e-01 : f32
    %877 = vector.broadcast %cst_361 : f32 to vector<8x64xf32>
    %878 = arith.cmpf olt, %815, %877 : vector<8x64xf32>
    %879 = arith.andi %876, %878 : vector<8x64xi1>
    %cst_362 = arith.constant 1.000000e+00 : f32
    %cst_363 = arith.constant 0.000000e+00 : f32
    %880 = vector.broadcast %cst_362 : f32 to vector<8x64xf32>
    %881 = vector.broadcast %cst_363 : f32 to vector<8x64xf32>
    %882 = arith.select %879, %880, %881 : vector<8x64xi1>, vector<8x64xf32>
    %cst_364 = arith.constant 6.000000e-01 : f32
    %883 = vector.broadcast %cst_364 : f32 to vector<8x64xf32>
    %884 = arith.cmpf oge, %815, %883 : vector<8x64xf32>
    %cst_365 = arith.constant 1.000000e+00 : f32
    %885 = vector.broadcast %cst_365 : f32 to vector<8x64xf32>
    %886 = arith.cmpf olt, %815, %885 : vector<8x64xf32>
    %887 = arith.andi %884, %886 : vector<8x64xi1>
    %cst_366 = arith.constant 1.000000e+00 : f32
    %cst_367 = arith.constant 0.000000e+00 : f32
    %888 = vector.broadcast %cst_366 : f32 to vector<8x64xf32>
    %889 = vector.broadcast %cst_367 : f32 to vector<8x64xf32>
    %890 = arith.select %887, %888, %889 : vector<8x64xi1>, vector<8x64xf32>
    %cst_368 = arith.constant 1.000000e+00 : f32
    %891 = vector.broadcast %cst_368 : f32 to vector<8x64xf32>
    %892 = arith.cmpf oge, %815, %891 : vector<8x64xf32>
    %cst_369 = arith.constant 1.4000001 : f32
    %893 = vector.broadcast %cst_369 : f32 to vector<8x64xf32>
    %894 = arith.cmpf olt, %815, %893 : vector<8x64xf32>
    %895 = arith.andi %892, %894 : vector<8x64xi1>
    %cst_370 = arith.constant 1.000000e+00 : f32
    %cst_371 = arith.constant 0.000000e+00 : f32
    %896 = vector.broadcast %cst_370 : f32 to vector<8x64xf32>
    %897 = vector.broadcast %cst_371 : f32 to vector<8x64xf32>
    %898 = arith.select %895, %896, %897 : vector<8x64xi1>, vector<8x64xf32>
    %cst_372 = arith.constant 1.4000001 : f32
    %899 = vector.broadcast %cst_372 : f32 to vector<8x64xf32>
    %900 = arith.cmpf oge, %815, %899 : vector<8x64xf32>
    %cst_373 = arith.constant 1.800000e+00 : f32
    %901 = vector.broadcast %cst_373 : f32 to vector<8x64xf32>
    %902 = arith.cmpf olt, %815, %901 : vector<8x64xf32>
    %903 = arith.andi %900, %902 : vector<8x64xi1>
    %cst_374 = arith.constant 1.000000e+00 : f32
    %cst_375 = arith.constant 0.000000e+00 : f32
    %904 = vector.broadcast %cst_374 : f32 to vector<8x64xf32>
    %905 = vector.broadcast %cst_375 : f32 to vector<8x64xf32>
    %906 = arith.select %903, %904, %905 : vector<8x64xi1>, vector<8x64xf32>
    %cst_376 = arith.constant 1.800000e+00 : f32
    %907 = vector.broadcast %cst_376 : f32 to vector<8x64xf32>
    %908 = arith.cmpf oge, %815, %907 : vector<8x64xf32>
    %cst_377 = arith.constant 2.200000e+00 : f32
    %909 = vector.broadcast %cst_377 : f32 to vector<8x64xf32>
    %910 = arith.cmpf olt, %815, %909 : vector<8x64xf32>
    %911 = arith.andi %908, %910 : vector<8x64xi1>
    %cst_378 = arith.constant 1.000000e+00 : f32
    %cst_379 = arith.constant 0.000000e+00 : f32
    %912 = vector.broadcast %cst_378 : f32 to vector<8x64xf32>
    %913 = vector.broadcast %cst_379 : f32 to vector<8x64xf32>
    %914 = arith.select %911, %912, %913 : vector<8x64xi1>, vector<8x64xf32>
    %cst_380 = arith.constant -2.200000e+00 : f32
    %915 = vector.broadcast %cst_380 : f32 to vector<8x64xf32>
    %916 = arith.subf %815, %915 : vector<8x64xf32>
    %cst_381 = arith.constant 2.49999952 : f32
    %917 = vector.broadcast %cst_381 : f32 to vector<8x64xf32>
    %918 = arith.mulf %916, %917 : vector<8x64xf32>
    %919 = arith.mulf %918, %834 : vector<8x64xf32>
    %cst_382 = arith.constant -1.400000e+00 : f32
    %920 = vector.broadcast %cst_382 : f32 to vector<8x64xf32>
    %921 = arith.subf %920, %815 : vector<8x64xf32>
    %cst_383 = arith.constant 2.50000024 : f32
    %922 = vector.broadcast %cst_383 : f32 to vector<8x64xf32>
    %923 = arith.mulf %921, %922 : vector<8x64xf32>
    %924 = arith.mulf %923, %842 : vector<8x64xf32>
    %925 = arith.addf %919, %924 : vector<8x64xf32>
    %cst_384 = arith.constant -1.800000e+00 : f32
    %926 = vector.broadcast %cst_384 : f32 to vector<8x64xf32>
    %927 = arith.subf %815, %926 : vector<8x64xf32>
    %cst_385 = arith.constant 2.50000024 : f32
    %928 = vector.broadcast %cst_385 : f32 to vector<8x64xf32>
    %929 = arith.mulf %927, %928 : vector<8x64xf32>
    %930 = arith.mulf %929, %842 : vector<8x64xf32>
    %cst_386 = arith.constant -1.000000e+00 : f32
    %931 = vector.broadcast %cst_386 : f32 to vector<8x64xf32>
    %932 = arith.subf %931, %815 : vector<8x64xf32>
    %cst_387 = arith.constant 2.50000024 : f32
    %933 = vector.broadcast %cst_387 : f32 to vector<8x64xf32>
    %934 = arith.mulf %932, %933 : vector<8x64xf32>
    %935 = arith.mulf %934, %850 : vector<8x64xf32>
    %936 = arith.addf %930, %935 : vector<8x64xf32>
    %cst_388 = arith.constant -1.400000e+00 : f32
    %937 = vector.broadcast %cst_388 : f32 to vector<8x64xf32>
    %938 = arith.subf %815, %937 : vector<8x64xf32>
    %cst_389 = arith.constant 2.50000024 : f32
    %939 = vector.broadcast %cst_389 : f32 to vector<8x64xf32>
    %940 = arith.mulf %938, %939 : vector<8x64xf32>
    %941 = arith.mulf %940, %850 : vector<8x64xf32>
    %cst_390 = arith.constant -6.000000e-01 : f32
    %942 = vector.broadcast %cst_390 : f32 to vector<8x64xf32>
    %943 = arith.subf %942, %815 : vector<8x64xf32>
    %cst_391 = arith.constant 2.50000024 : f32
    %944 = vector.broadcast %cst_391 : f32 to vector<8x64xf32>
    %945 = arith.mulf %943, %944 : vector<8x64xf32>
    %946 = arith.mulf %945, %858 : vector<8x64xf32>
    %947 = arith.addf %941, %946 : vector<8x64xf32>
    %cst_392 = arith.constant -1.000000e+00 : f32
    %948 = vector.broadcast %cst_392 : f32 to vector<8x64xf32>
    %949 = arith.subf %815, %948 : vector<8x64xf32>
    %cst_393 = arith.constant 2.50000024 : f32
    %950 = vector.broadcast %cst_393 : f32 to vector<8x64xf32>
    %951 = arith.mulf %949, %950 : vector<8x64xf32>
    %952 = arith.mulf %951, %858 : vector<8x64xf32>
    %cst_394 = arith.constant -0.199999988 : f32
    %953 = vector.broadcast %cst_394 : f32 to vector<8x64xf32>
    %954 = arith.subf %953, %815 : vector<8x64xf32>
    %cst_395 = arith.constant 2.49999976 : f32
    %955 = vector.broadcast %cst_395 : f32 to vector<8x64xf32>
    %956 = arith.mulf %954, %955 : vector<8x64xf32>
    %957 = arith.mulf %956, %866 : vector<8x64xf32>
    %958 = arith.addf %952, %957 : vector<8x64xf32>
    %cst_396 = arith.constant -6.000000e-01 : f32
    %959 = vector.broadcast %cst_396 : f32 to vector<8x64xf32>
    %960 = arith.subf %815, %959 : vector<8x64xf32>
    %cst_397 = arith.constant 2.49999976 : f32
    %961 = vector.broadcast %cst_397 : f32 to vector<8x64xf32>
    %962 = arith.mulf %960, %961 : vector<8x64xf32>
    %963 = arith.mulf %962, %866 : vector<8x64xf32>
    %cst_398 = arith.constant 0.200000048 : f32
    %964 = vector.broadcast %cst_398 : f32 to vector<8x64xf32>
    %965 = arith.subf %964, %815 : vector<8x64xf32>
    %cst_399 = arith.constant 2.49999976 : f32
    %966 = vector.broadcast %cst_399 : f32 to vector<8x64xf32>
    %967 = arith.mulf %965, %966 : vector<8x64xf32>
    %968 = arith.mulf %967, %874 : vector<8x64xf32>
    %969 = arith.addf %963, %968 : vector<8x64xf32>
    %cst_400 = arith.constant -0.199999988 : f32
    %970 = vector.broadcast %cst_400 : f32 to vector<8x64xf32>
    %971 = arith.subf %815, %970 : vector<8x64xf32>
    %cst_401 = arith.constant 2.49999976 : f32
    %972 = vector.broadcast %cst_401 : f32 to vector<8x64xf32>
    %973 = arith.mulf %971, %972 : vector<8x64xf32>
    %974 = arith.mulf %973, %874 : vector<8x64xf32>
    %cst_402 = arith.constant 6.000000e-01 : f32
    %975 = vector.broadcast %cst_402 : f32 to vector<8x64xf32>
    %976 = arith.subf %975, %815 : vector<8x64xf32>
    %cst_403 = arith.constant 2.50000024 : f32
    %977 = vector.broadcast %cst_403 : f32 to vector<8x64xf32>
    %978 = arith.mulf %976, %977 : vector<8x64xf32>
    %979 = arith.mulf %978, %882 : vector<8x64xf32>
    %980 = arith.addf %974, %979 : vector<8x64xf32>
    %cst_404 = arith.constant 0.200000048 : f32
    %981 = vector.broadcast %cst_404 : f32 to vector<8x64xf32>
    %982 = arith.subf %815, %981 : vector<8x64xf32>
    %cst_405 = arith.constant 2.50000024 : f32
    %983 = vector.broadcast %cst_405 : f32 to vector<8x64xf32>
    %984 = arith.mulf %982, %983 : vector<8x64xf32>
    %985 = arith.mulf %984, %882 : vector<8x64xf32>
    %cst_406 = arith.constant 1.000000e+00 : f32
    %986 = vector.broadcast %cst_406 : f32 to vector<8x64xf32>
    %987 = arith.subf %986, %815 : vector<8x64xf32>
    %cst_407 = arith.constant 2.50000024 : f32
    %988 = vector.broadcast %cst_407 : f32 to vector<8x64xf32>
    %989 = arith.mulf %987, %988 : vector<8x64xf32>
    %990 = arith.mulf %989, %890 : vector<8x64xf32>
    %991 = arith.addf %985, %990 : vector<8x64xf32>
    %cst_408 = arith.constant 6.000000e-01 : f32
    %992 = vector.broadcast %cst_408 : f32 to vector<8x64xf32>
    %993 = arith.subf %815, %992 : vector<8x64xf32>
    %cst_409 = arith.constant 2.50000024 : f32
    %994 = vector.broadcast %cst_409 : f32 to vector<8x64xf32>
    %995 = arith.mulf %993, %994 : vector<8x64xf32>
    %996 = arith.mulf %995, %890 : vector<8x64xf32>
    %cst_410 = arith.constant 1.4000001 : f32
    %997 = vector.broadcast %cst_410 : f32 to vector<8x64xf32>
    %998 = arith.subf %997, %815 : vector<8x64xf32>
    %cst_411 = arith.constant 2.49999952 : f32
    %999 = vector.broadcast %cst_411 : f32 to vector<8x64xf32>
    %1000 = arith.mulf %998, %999 : vector<8x64xf32>
    %1001 = arith.mulf %1000, %898 : vector<8x64xf32>
    %1002 = arith.addf %996, %1001 : vector<8x64xf32>
    %cst_412 = arith.constant 1.000000e+00 : f32
    %1003 = vector.broadcast %cst_412 : f32 to vector<8x64xf32>
    %1004 = arith.subf %815, %1003 : vector<8x64xf32>
    %cst_413 = arith.constant 2.49999952 : f32
    %1005 = vector.broadcast %cst_413 : f32 to vector<8x64xf32>
    %1006 = arith.mulf %1004, %1005 : vector<8x64xf32>
    %1007 = arith.mulf %1006, %898 : vector<8x64xf32>
    %cst_414 = arith.constant 1.800000e+00 : f32
    %1008 = vector.broadcast %cst_414 : f32 to vector<8x64xf32>
    %1009 = arith.subf %1008, %815 : vector<8x64xf32>
    %cst_415 = arith.constant 2.50000095 : f32
    %1010 = vector.broadcast %cst_415 : f32 to vector<8x64xf32>
    %1011 = arith.mulf %1009, %1010 : vector<8x64xf32>
    %1012 = arith.mulf %1011, %906 : vector<8x64xf32>
    %1013 = arith.addf %1007, %1012 : vector<8x64xf32>
    %cst_416 = arith.constant 1.4000001 : f32
    %1014 = vector.broadcast %cst_416 : f32 to vector<8x64xf32>
    %1015 = arith.subf %815, %1014 : vector<8x64xf32>
    %cst_417 = arith.constant 2.50000095 : f32
    %1016 = vector.broadcast %cst_417 : f32 to vector<8x64xf32>
    %1017 = arith.mulf %1015, %1016 : vector<8x64xf32>
    %1018 = arith.mulf %1017, %906 : vector<8x64xf32>
    %cst_418 = arith.constant 2.200000e+00 : f32
    %1019 = vector.broadcast %cst_418 : f32 to vector<8x64xf32>
    %1020 = arith.subf %1019, %815 : vector<8x64xf32>
    %cst_419 = arith.constant 2.49999952 : f32
    %1021 = vector.broadcast %cst_419 : f32 to vector<8x64xf32>
    %1022 = arith.mulf %1020, %1021 : vector<8x64xf32>
    %1023 = arith.mulf %1022, %914 : vector<8x64xf32>
    %1024 = arith.addf %1018, %1023 : vector<8x64xf32>
    %cst_420 = arith.constant -2.200000e+00 : f32
    %1025 = vector.broadcast %cst_420 : f32 to vector<8x64xf32>
    %1026 = arith.subf %815, %1025 : vector<8x64xf32>
    %cst_421 = arith.constant 1.24999988 : f32
    %1027 = vector.broadcast %cst_421 : f32 to vector<8x64xf32>
    %1028 = arith.mulf %1026, %1027 : vector<8x64xf32>
    %1029 = arith.mulf %1028, %925 : vector<8x64xf32>
    %cst_422 = arith.constant -1.000000e+00 : f32
    %1030 = vector.broadcast %cst_422 : f32 to vector<8x64xf32>
    %1031 = arith.subf %1030, %815 : vector<8x64xf32>
    %cst_423 = arith.constant 1.25000012 : f32
    %1032 = vector.broadcast %cst_423 : f32 to vector<8x64xf32>
    %1033 = arith.mulf %1031, %1032 : vector<8x64xf32>
    %1034 = arith.mulf %1033, %936 : vector<8x64xf32>
    %1035 = arith.addf %1029, %1034 : vector<8x64xf32>
    %cst_424 = arith.constant -1.800000e+00 : f32
    %1036 = vector.broadcast %cst_424 : f32 to vector<8x64xf32>
    %1037 = arith.subf %815, %1036 : vector<8x64xf32>
    %cst_425 = arith.constant 1.25000012 : f32
    %1038 = vector.broadcast %cst_425 : f32 to vector<8x64xf32>
    %1039 = arith.mulf %1037, %1038 : vector<8x64xf32>
    %1040 = arith.mulf %1039, %936 : vector<8x64xf32>
    %cst_426 = arith.constant -6.000000e-01 : f32
    %1041 = vector.broadcast %cst_426 : f32 to vector<8x64xf32>
    %1042 = arith.subf %1041, %815 : vector<8x64xf32>
    %cst_427 = arith.constant 1.25000012 : f32
    %1043 = vector.broadcast %cst_427 : f32 to vector<8x64xf32>
    %1044 = arith.mulf %1042, %1043 : vector<8x64xf32>
    %1045 = arith.mulf %1044, %947 : vector<8x64xf32>
    %1046 = arith.addf %1040, %1045 : vector<8x64xf32>
    %cst_428 = arith.constant -1.400000e+00 : f32
    %1047 = vector.broadcast %cst_428 : f32 to vector<8x64xf32>
    %1048 = arith.subf %815, %1047 : vector<8x64xf32>
    %cst_429 = arith.constant 1.25000012 : f32
    %1049 = vector.broadcast %cst_429 : f32 to vector<8x64xf32>
    %1050 = arith.mulf %1048, %1049 : vector<8x64xf32>
    %1051 = arith.mulf %1050, %947 : vector<8x64xf32>
    %cst_430 = arith.constant -0.199999988 : f32
    %1052 = vector.broadcast %cst_430 : f32 to vector<8x64xf32>
    %1053 = arith.subf %1052, %815 : vector<8x64xf32>
    %cst_431 = arith.constant 1.250000e+00 : f32
    %1054 = vector.broadcast %cst_431 : f32 to vector<8x64xf32>
    %1055 = arith.mulf %1053, %1054 : vector<8x64xf32>
    %1056 = arith.mulf %1055, %958 : vector<8x64xf32>
    %1057 = arith.addf %1051, %1056 : vector<8x64xf32>
    %cst_432 = arith.constant -1.000000e+00 : f32
    %1058 = vector.broadcast %cst_432 : f32 to vector<8x64xf32>
    %1059 = arith.subf %815, %1058 : vector<8x64xf32>
    %cst_433 = arith.constant 1.250000e+00 : f32
    %1060 = vector.broadcast %cst_433 : f32 to vector<8x64xf32>
    %1061 = arith.mulf %1059, %1060 : vector<8x64xf32>
    %1062 = arith.mulf %1061, %958 : vector<8x64xf32>
    %cst_434 = arith.constant 0.200000048 : f32
    %1063 = vector.broadcast %cst_434 : f32 to vector<8x64xf32>
    %1064 = arith.subf %1063, %815 : vector<8x64xf32>
    %cst_435 = arith.constant 1.24999988 : f32
    %1065 = vector.broadcast %cst_435 : f32 to vector<8x64xf32>
    %1066 = arith.mulf %1064, %1065 : vector<8x64xf32>
    %1067 = arith.mulf %1066, %969 : vector<8x64xf32>
    %1068 = arith.addf %1062, %1067 : vector<8x64xf32>
    %cst_436 = arith.constant -6.000000e-01 : f32
    %1069 = vector.broadcast %cst_436 : f32 to vector<8x64xf32>
    %1070 = arith.subf %815, %1069 : vector<8x64xf32>
    %cst_437 = arith.constant 1.24999988 : f32
    %1071 = vector.broadcast %cst_437 : f32 to vector<8x64xf32>
    %1072 = arith.mulf %1070, %1071 : vector<8x64xf32>
    %1073 = arith.mulf %1072, %969 : vector<8x64xf32>
    %cst_438 = arith.constant 6.000000e-01 : f32
    %1074 = vector.broadcast %cst_438 : f32 to vector<8x64xf32>
    %1075 = arith.subf %1074, %815 : vector<8x64xf32>
    %cst_439 = arith.constant 1.250000e+00 : f32
    %1076 = vector.broadcast %cst_439 : f32 to vector<8x64xf32>
    %1077 = arith.mulf %1075, %1076 : vector<8x64xf32>
    %1078 = arith.mulf %1077, %980 : vector<8x64xf32>
    %1079 = arith.addf %1073, %1078 : vector<8x64xf32>
    %cst_440 = arith.constant -0.199999988 : f32
    %1080 = vector.broadcast %cst_440 : f32 to vector<8x64xf32>
    %1081 = arith.subf %815, %1080 : vector<8x64xf32>
    %cst_441 = arith.constant 1.250000e+00 : f32
    %1082 = vector.broadcast %cst_441 : f32 to vector<8x64xf32>
    %1083 = arith.mulf %1081, %1082 : vector<8x64xf32>
    %1084 = arith.mulf %1083, %980 : vector<8x64xf32>
    %cst_442 = arith.constant 1.000000e+00 : f32
    %1085 = vector.broadcast %cst_442 : f32 to vector<8x64xf32>
    %1086 = arith.subf %1085, %815 : vector<8x64xf32>
    %cst_443 = arith.constant 1.25000012 : f32
    %1087 = vector.broadcast %cst_443 : f32 to vector<8x64xf32>
    %1088 = arith.mulf %1086, %1087 : vector<8x64xf32>
    %1089 = arith.mulf %1088, %991 : vector<8x64xf32>
    %1090 = arith.addf %1084, %1089 : vector<8x64xf32>
    %cst_444 = arith.constant 0.200000048 : f32
    %1091 = vector.broadcast %cst_444 : f32 to vector<8x64xf32>
    %1092 = arith.subf %815, %1091 : vector<8x64xf32>
    %cst_445 = arith.constant 1.25000012 : f32
    %1093 = vector.broadcast %cst_445 : f32 to vector<8x64xf32>
    %1094 = arith.mulf %1092, %1093 : vector<8x64xf32>
    %1095 = arith.mulf %1094, %991 : vector<8x64xf32>
    %cst_446 = arith.constant 1.4000001 : f32
    %1096 = vector.broadcast %cst_446 : f32 to vector<8x64xf32>
    %1097 = arith.subf %1096, %815 : vector<8x64xf32>
    %cst_447 = arith.constant 1.24999988 : f32
    %1098 = vector.broadcast %cst_447 : f32 to vector<8x64xf32>
    %1099 = arith.mulf %1097, %1098 : vector<8x64xf32>
    %1100 = arith.mulf %1099, %1002 : vector<8x64xf32>
    %1101 = arith.addf %1095, %1100 : vector<8x64xf32>
    %cst_448 = arith.constant 6.000000e-01 : f32
    %1102 = vector.broadcast %cst_448 : f32 to vector<8x64xf32>
    %1103 = arith.subf %815, %1102 : vector<8x64xf32>
    %cst_449 = arith.constant 1.24999988 : f32
    %1104 = vector.broadcast %cst_449 : f32 to vector<8x64xf32>
    %1105 = arith.mulf %1103, %1104 : vector<8x64xf32>
    %1106 = arith.mulf %1105, %1002 : vector<8x64xf32>
    %cst_450 = arith.constant 1.800000e+00 : f32
    %1107 = vector.broadcast %cst_450 : f32 to vector<8x64xf32>
    %1108 = arith.subf %1107, %815 : vector<8x64xf32>
    %cst_451 = arith.constant 1.25000012 : f32
    %1109 = vector.broadcast %cst_451 : f32 to vector<8x64xf32>
    %1110 = arith.mulf %1108, %1109 : vector<8x64xf32>
    %1111 = arith.mulf %1110, %1013 : vector<8x64xf32>
    %1112 = arith.addf %1106, %1111 : vector<8x64xf32>
    %cst_452 = arith.constant 1.000000e+00 : f32
    %1113 = vector.broadcast %cst_452 : f32 to vector<8x64xf32>
    %1114 = arith.subf %815, %1113 : vector<8x64xf32>
    %cst_453 = arith.constant 1.25000012 : f32
    %1115 = vector.broadcast %cst_453 : f32 to vector<8x64xf32>
    %1116 = arith.mulf %1114, %1115 : vector<8x64xf32>
    %1117 = arith.mulf %1116, %1013 : vector<8x64xf32>
    %cst_454 = arith.constant 2.200000e+00 : f32
    %1118 = vector.broadcast %cst_454 : f32 to vector<8x64xf32>
    %1119 = arith.subf %1118, %815 : vector<8x64xf32>
    %cst_455 = arith.constant 1.25000012 : f32
    %1120 = vector.broadcast %cst_455 : f32 to vector<8x64xf32>
    %1121 = arith.mulf %1119, %1120 : vector<8x64xf32>
    %1122 = arith.mulf %1121, %1024 : vector<8x64xf32>
    %1123 = arith.addf %1117, %1122 : vector<8x64xf32>
    %cst_456 = arith.constant -2.200000e+00 : f32
    %1124 = vector.broadcast %cst_456 : f32 to vector<8x64xf32>
    %1125 = arith.subf %815, %1124 : vector<8x64xf32>
    %cst_457 = arith.constant 0.833333313 : f32
    %1126 = vector.broadcast %cst_457 : f32 to vector<8x64xf32>
    %1127 = arith.mulf %1125, %1126 : vector<8x64xf32>
    %1128 = arith.mulf %1127, %1035 : vector<8x64xf32>
    %cst_458 = arith.constant -6.000000e-01 : f32
    %1129 = vector.broadcast %cst_458 : f32 to vector<8x64xf32>
    %1130 = arith.subf %1129, %815 : vector<8x64xf32>
    %cst_459 = arith.constant 0.833333373 : f32
    %1131 = vector.broadcast %cst_459 : f32 to vector<8x64xf32>
    %1132 = arith.mulf %1130, %1131 : vector<8x64xf32>
    %1133 = arith.mulf %1132, %1046 : vector<8x64xf32>
    %1134 = arith.addf %1128, %1133 : vector<8x64xf32>
    %cst_460 = arith.constant -1.800000e+00 : f32
    %1135 = vector.broadcast %cst_460 : f32 to vector<8x64xf32>
    %1136 = arith.subf %815, %1135 : vector<8x64xf32>
    %cst_461 = arith.constant 0.833333373 : f32
    %1137 = vector.broadcast %cst_461 : f32 to vector<8x64xf32>
    %1138 = arith.mulf %1136, %1137 : vector<8x64xf32>
    %1139 = arith.mulf %1138, %1046 : vector<8x64xf32>
    %cst_462 = arith.constant -0.199999988 : f32
    %1140 = vector.broadcast %cst_462 : f32 to vector<8x64xf32>
    %1141 = arith.subf %1140, %815 : vector<8x64xf32>
    %cst_463 = arith.constant 0.833333313 : f32
    %1142 = vector.broadcast %cst_463 : f32 to vector<8x64xf32>
    %1143 = arith.mulf %1141, %1142 : vector<8x64xf32>
    %1144 = arith.mulf %1143, %1057 : vector<8x64xf32>
    %1145 = arith.addf %1139, %1144 : vector<8x64xf32>
    %cst_464 = arith.constant -1.400000e+00 : f32
    %1146 = vector.broadcast %cst_464 : f32 to vector<8x64xf32>
    %1147 = arith.subf %815, %1146 : vector<8x64xf32>
    %cst_465 = arith.constant 0.833333313 : f32
    %1148 = vector.broadcast %cst_465 : f32 to vector<8x64xf32>
    %1149 = arith.mulf %1147, %1148 : vector<8x64xf32>
    %1150 = arith.mulf %1149, %1057 : vector<8x64xf32>
    %cst_466 = arith.constant 0.200000048 : f32
    %1151 = vector.broadcast %cst_466 : f32 to vector<8x64xf32>
    %1152 = arith.subf %1151, %815 : vector<8x64xf32>
    %cst_467 = arith.constant 0.833333313 : f32
    %1153 = vector.broadcast %cst_467 : f32 to vector<8x64xf32>
    %1154 = arith.mulf %1152, %1153 : vector<8x64xf32>
    %1155 = arith.mulf %1154, %1068 : vector<8x64xf32>
    %1156 = arith.addf %1150, %1155 : vector<8x64xf32>
    %cst_468 = arith.constant -1.000000e+00 : f32
    %1157 = vector.broadcast %cst_468 : f32 to vector<8x64xf32>
    %1158 = arith.subf %815, %1157 : vector<8x64xf32>
    %cst_469 = arith.constant 0.833333313 : f32
    %1159 = vector.broadcast %cst_469 : f32 to vector<8x64xf32>
    %1160 = arith.mulf %1158, %1159 : vector<8x64xf32>
    %1161 = arith.mulf %1160, %1068 : vector<8x64xf32>
    %cst_470 = arith.constant 6.000000e-01 : f32
    %1162 = vector.broadcast %cst_470 : f32 to vector<8x64xf32>
    %1163 = arith.subf %1162, %815 : vector<8x64xf32>
    %cst_471 = arith.constant 0.833333313 : f32
    %1164 = vector.broadcast %cst_471 : f32 to vector<8x64xf32>
    %1165 = arith.mulf %1163, %1164 : vector<8x64xf32>
    %1166 = arith.mulf %1165, %1079 : vector<8x64xf32>
    %1167 = arith.addf %1161, %1166 : vector<8x64xf32>
    %cst_472 = arith.constant -6.000000e-01 : f32
    %1168 = vector.broadcast %cst_472 : f32 to vector<8x64xf32>
    %1169 = arith.subf %815, %1168 : vector<8x64xf32>
    %cst_473 = arith.constant 0.833333313 : f32
    %1170 = vector.broadcast %cst_473 : f32 to vector<8x64xf32>
    %1171 = arith.mulf %1169, %1170 : vector<8x64xf32>
    %1172 = arith.mulf %1171, %1079 : vector<8x64xf32>
    %cst_474 = arith.constant 1.000000e+00 : f32
    %1173 = vector.broadcast %cst_474 : f32 to vector<8x64xf32>
    %1174 = arith.subf %1173, %815 : vector<8x64xf32>
    %cst_475 = arith.constant 0.833333313 : f32
    %1175 = vector.broadcast %cst_475 : f32 to vector<8x64xf32>
    %1176 = arith.mulf %1174, %1175 : vector<8x64xf32>
    %1177 = arith.mulf %1176, %1090 : vector<8x64xf32>
    %1178 = arith.addf %1172, %1177 : vector<8x64xf32>
    %cst_476 = arith.constant -0.199999988 : f32
    %1179 = vector.broadcast %cst_476 : f32 to vector<8x64xf32>
    %1180 = arith.subf %815, %1179 : vector<8x64xf32>
    %cst_477 = arith.constant 0.833333313 : f32
    %1181 = vector.broadcast %cst_477 : f32 to vector<8x64xf32>
    %1182 = arith.mulf %1180, %1181 : vector<8x64xf32>
    %1183 = arith.mulf %1182, %1090 : vector<8x64xf32>
    %cst_478 = arith.constant 1.4000001 : f32
    %1184 = vector.broadcast %cst_478 : f32 to vector<8x64xf32>
    %1185 = arith.subf %1184, %815 : vector<8x64xf32>
    %cst_479 = arith.constant 0.833333313 : f32
    %1186 = vector.broadcast %cst_479 : f32 to vector<8x64xf32>
    %1187 = arith.mulf %1185, %1186 : vector<8x64xf32>
    %1188 = arith.mulf %1187, %1101 : vector<8x64xf32>
    %1189 = arith.addf %1183, %1188 : vector<8x64xf32>
    %cst_480 = arith.constant 0.200000048 : f32
    %1190 = vector.broadcast %cst_480 : f32 to vector<8x64xf32>
    %1191 = arith.subf %815, %1190 : vector<8x64xf32>
    %cst_481 = arith.constant 0.833333313 : f32
    %1192 = vector.broadcast %cst_481 : f32 to vector<8x64xf32>
    %1193 = arith.mulf %1191, %1192 : vector<8x64xf32>
    %1194 = arith.mulf %1193, %1101 : vector<8x64xf32>
    %cst_482 = arith.constant 1.800000e+00 : f32
    %1195 = vector.broadcast %cst_482 : f32 to vector<8x64xf32>
    %1196 = arith.subf %1195, %815 : vector<8x64xf32>
    %cst_483 = arith.constant 0.833333373 : f32
    %1197 = vector.broadcast %cst_483 : f32 to vector<8x64xf32>
    %1198 = arith.mulf %1196, %1197 : vector<8x64xf32>
    %1199 = arith.mulf %1198, %1112 : vector<8x64xf32>
    %1200 = arith.addf %1194, %1199 : vector<8x64xf32>
    %cst_484 = arith.constant 6.000000e-01 : f32
    %1201 = vector.broadcast %cst_484 : f32 to vector<8x64xf32>
    %1202 = arith.subf %815, %1201 : vector<8x64xf32>
    %cst_485 = arith.constant 0.833333373 : f32
    %1203 = vector.broadcast %cst_485 : f32 to vector<8x64xf32>
    %1204 = arith.mulf %1202, %1203 : vector<8x64xf32>
    %1205 = arith.mulf %1204, %1112 : vector<8x64xf32>
    %cst_486 = arith.constant 2.200000e+00 : f32
    %1206 = vector.broadcast %cst_486 : f32 to vector<8x64xf32>
    %1207 = arith.subf %1206, %815 : vector<8x64xf32>
    %cst_487 = arith.constant 0.833333313 : f32
    %1208 = vector.broadcast %cst_487 : f32 to vector<8x64xf32>
    %1209 = arith.mulf %1207, %1208 : vector<8x64xf32>
    %1210 = arith.mulf %1209, %1123 : vector<8x64xf32>
    %1211 = arith.addf %1205, %1210 : vector<8x64xf32>
    %1212 = tpu.concatenate %1134, %1145, %1156, %1167, %1178, %1189, %1200, %1211 in 1 : vector<8x64xf32>, vector<8x64xf32>, vector<8x64xf32>, vector<8x64xf32>, vector<8x64xf32>, vector<8x64xf32>, vector<8x64xf32>, vector<8x64xf32> -> vector<8x512xf32>
    %cst_488 = arith.constant dense<0.000000e+00> : vector<8x32xf32>
    %1213 = tpu.matmul %1212, %819, %cst_488 {dimension_numbers = #tpu.dot_dimension_numbers<[1], [0], [0], [1], [0, 0, 1, 1], [], []>} : vector<8x512xf32>, vector<512x32xf32>, vector<8x32xf32> -> vector<8x32xf32>
    %1214 = arith.addf %826, %1213 : vector<8x32xf32>
    %c0_489 = arith.constant 0 : index
    %c0_490 = arith.constant 0 : index
    %1215 = vector.load %arg11[%c0_489, %c0_490] : memref<8x32xf32, #tpu.memory_space<vmem>>, vector<8x32xf32>
    %c0_491 = arith.constant 0 : index
    %c0_492 = arith.constant 0 : index
    %c0_493 = arith.constant 0 : index
    %1216 = vector.load %arg3[%c0_491, %c0_492, %c0_493] : memref<1x8x1xf32, #tpu.memory_space<vmem>>, vector<1x8x1xf32>
    %1217 = vector.shape_cast %1216 : vector<1x8x1xf32> to vector<8x1xf32>
    %1218 = vector.broadcast %1217 : vector<8x1xf32> to vector<8x32xf32>
    %1219 = arith.mulf %1218, %1214 : vector<8x32xf32>
    %1220 = arith.addf %1215, %1219 : vector<8x32xf32>
    %c0_494 = arith.constant 0 : index
    %c0_495 = arith.constant 0 : index
    %1221 = vector.load %arg11[%c0_494, %c0_495] : memref<8x32xf32, #tpu.memory_space<vmem>>, vector<8x32xf32>
    tpu.vector_store %arg11[%c0_494, %c0_495], %1220 {strides = array<i32>} : memref<8x32xf32, #tpu.memory_space<vmem>>, vector<8x32xf32>,
    return
  }
  func.func @transform_0(%arg0: i32, %arg1: i32) -> (i32, i32) {
    %c0_i32 = arith.constant 0 : i32
    %c0_i32_0 = arith.constant 0 : i32
    return %arg0, %c0_i32 : i32, i32
  }
  func.func @transform_1(%arg0: i32, %arg1: i32) -> (i32, i32, i32) {
    %c0_i32 = arith.constant 0 : i32
    %c0_i32_0 = arith.constant 0 : i32
    return %arg1, %arg0, %c0_i32 : i32, i32, i32
  }
  func.func @transform_2(%arg0: i32, %arg1: i32) -> (i32, i32) {
    %c0_i32 = arith.constant 0 : i32
    %c0_i32_0 = arith.constant 0 : i32
    %c0_i32_1 = arith.constant 0 : i32
    return %c0_i32, %c0_i32_0 : i32, i32
  }
  func.func @transform_3(%arg0: i32, %arg1: i32) -> (i32, i32, i32) {
    %c0_i32 = arith.constant 0 : i32
    %c0_i32_0 = arith.constant 0 : i32
    %c0_i32_1 = arith.constant 0 : i32
    return %arg1, %c0_i32, %c0_i32_0 : i32, i32, i32
  }
  func.func @transform_4(%arg0: i32, %arg1: i32) -> (i32, i32, i32) {
    %c0_i32 = arith.constant 0 : i32
    %c0_i32_0 = arith.constant 0 : i32
    %c0_i32_1 = arith.constant 0 : i32
    return %arg1, %c0_i32, %c0_i32_0 : i32, i32, i32
  }
  func.func @transform_5(%arg0: i32, %arg1: i32) -> (i32, i32, i32) {
    %c0_i32 = arith.constant 0 : i32
    %c0_i32_0 = arith.constant 0 : i32
    %c0_i32_1 = arith.constant 0 : i32
    return %arg1, %c0_i32, %c0_i32_0 : i32, i32, i32
  }
  func.func @transform_6(%arg0: i32, %arg1: i32) -> (i32, i32, i32) {
    %c0_i32 = arith.constant 0 : i32
    %c0_i32_0 = arith.constant 0 : i32
    %c0_i32_1 = arith.constant 0 : i32
    return %arg1, %c0_i32, %c0_i32_0 : i32, i32, i32
  }
  func.func @transform_7(%arg0: i32, %arg1: i32) -> (i32, i32, i32) {
    %c0_i32 = arith.constant 0 : i32
    %c0_i32_0 = arith.constant 0 : i32
    %c0_i32_1 = arith.constant 0 : i32
    return %arg1, %c0_i32, %c0_i32_0 : i32, i32, i32
  }
  func.func @transform_8(%arg0: i32, %arg1: i32) -> (i32, i32, i32) {
    %c0_i32 = arith.constant 0 : i32
    %c0_i32_0 = arith.constant 0 : i32
    %c0_i32_1 = arith.constant 0 : i32
    return %arg1, %c0_i32, %c0_i32_0 : i32, i32, i32
  }
  func.func @transform_9(%arg0: i32, %arg1: i32) -> (i32, i32) {
    %c0_i32 = arith.constant 0 : i32
    %c0_i32_0 = arith.constant 0 : i32
    return %arg0, %c0_i32 : i32, i32
  }
}

</mosaic_0001>

<bundles_post_ra>
// kernel: _lambda_.2
= control target key start
LH: loop header
LB: loop body
LE: loop exit
PB: predicated region body
PF: predicated region fallthrough
CT: control target
= control target key end

     0   :  { %s3423_s0 = inlined_call_operand.hbm [shape: f32[2,8,32], index: 0, kind: input, shape index: {}]   ;;  %s3424_s1 = inlined_call_operand.hbm [shape: f32[1,32], index: 1, kind: input, shape index: {}]   ;;  %s3425_s2 = inlined_call_operand.vmem [shape: f32[1,32], index: 2, kind: input, shape index: {}]   ;;  %s3426_s3 = inlined_call_operand.hbm [shape: f32[32,96], index: 3, kind: input, shape index: {}]   ;;  %s3427_s4 = inlined_call_operand.hbm [shape: f32[256,96], index: 4, kind: input, shape index: {}]   ;;  %s3428_s5 = inlined_call_operand.vmem [shape: f32[8,16], index: 5, kind: input, shape index: {}]   ;;  %s3429_s6 = inlined_call_operand.vmem [shape: f32[8,16], index: 6, kind: input, shape index: {}]   ;;  %s3430_s7 = inlined_call_operand.hbm [shape: f32[4,8,32], index: 7, kind: input, shape index: {}]   ;;  %s3431_s8 = inlined_call_operand.vmem [shape: f32[1,32], index: 8, kind: input, shape index: {}]   ;;  %s3432_s9 = inlined_call_operand.hbm [shape: f32[32,4], index: 9, kind: input, shape index: {}]   ;;  %s3433_s10 = inlined_call_operand.vmem [shape: f32[2,8,32], index: 10, kind: output, shape index: {0}]   ;;  %s3434_s11 = inlined_call_operand.vmem [shape: f32[2,8,4], index: 11, kind: output, shape index: {1}]  }
   0x1   :  { %3441 = sst [smem:[#allocation16_spill]] %s3424_s1 }
   0x2   :  { %3442 = sst [smem:[#allocation17_spill]] %s3426_s3 }
   0x3   :  { %17 = vsyncpa [#allocation3], 0 }
   0x4   :  { %19 = vsyncpa [#allocation3 + $0x1], 0 }
   0x5   :  { %20 = vsyncpa [#allocation5], 0 }
   0x6   :  { %21 = vsyncpa [#allocation8], 0 }
   0x7   :  { %22 = vsyncpa [#allocation11], 0  ;;  %s2897_s17 = smov 0   ;;  %s2899_s18 = smov 0  }
   0x8   :  { %s2901_s19 = smov 0   ;;  %s2903_s20 = smov 0  }
   0x9 LB: > { %s2815_s21 = smov [#allocation4]   ;;  %s2918_s23 = sadd.s32 4294967295, %s2813_s20   ;;  %s2813_s20 = sphi %s2903_s20, %s3468_s20   ;;  %s2809_s19 = sphi %s2901_s19, %s3467_s19   ;;  %s2805_s18 = sphi %s2899_s18, %s3466_s18   ;;  %s2801_s17 = sphi %s2897_s17, %s3465_s17  }
   0xa   : > { %s313_s22 = sshll.u32 %s2815_s21, 4  ;;  %p2260_p0 = scmp.ge.s32.totalorder %s2813_s20, 1  ;;  %s314_s22 = int_to_ptr.vmem [resolvable:$true] %s313_s22 }
   0xb   : > { %p3435_p1 = scmp.eq.s32.totalorder %s2918_s23, 0  ;;  %p300_p2 = scmp.lt.s32.totalorder %s2813_s20, 3 }
   0xc   : > { %s2816_s25 = smov [#allocation7]   ;;  %s2817_s28 = smov [#allocation6]  }
   0xd   : > { %p2923_p3 = pnand %p2260_p0, %p300_p2  ;;  %s339_s26 = sshll.u32 %s2816_s25, 4  ;;  %s2935_s26 = int_to_ptr.vmem [resolvable:$true] %s339_s26 }
   0xe   : > { %s326_s29 = sshll.u32 %s2817_s28, 4  ;;  %s2620_s12 = scalar_lea.vmem %s314_s22, 16  ;;  %s2937_s29 = int_to_ptr.vmem [resolvable:$true] %s326_s29 }
   0xf   : > { %s3443_s24 = scalar_select %p2923_p3, 1, 0 }
  0x10   : > { %p2485_p4 = pneg %p2923_p3  ;;  %p2621_p7 = scmp.ne.s32.totalorder %s314_s22, %s2620_s12 }
  0x11   : > { %s2627_s13 = scalar_lea.vmem %s314_s22, 32  ;;  %p2628_p10 = scmp.lt.s32.totalorder %s314_s22, %s314_s22 }
  0x12   : > { %p2931_p5 = pnand %p2485_p4, %p3435_p1  ;;  %p2629_p11 = scmp.lt.s32.totalorder %s2627_s13, %s2620_s12 }
  0x14   : > { %p2941_p6 = pneg %p2931_p5  ;;  %p2630_p12 = por %p2629_p11, %p2628_p10 }
  0x16   : > { %p2623_p8 = pnand %p2621_p7, %p2941_p6 }
  0x18   : > { %p2624_p9 = pneg %p2623_p8 }
  0x1a   : > { %p2631_p13 = pnand %p2630_p12, %p2624_p9 }
  0x1c   : > { %2634 = shalt.err (!%p2631_p13)
}
  0x1d   : > { %s3446_s1 = sld [smem:[#allocation16_spill]]  ;;  %s2646_s16 = scalar_lea.vmem %s2935_s26, 4096 }
  0x1e   : > { %p2647_p0 = scmp.ne.s32.totalorder %s2935_s26, %s2646_s16  ;;  %p2654_p7 = scmp.lt.s32.totalorder %s2935_s26, %s2935_s26 }
  0x1f   : > { %p2655_p8 = scmp.lt.s32.totalorder %s2646_s16, %s2646_s16 }
  0x20   : > { %p2649_p2 = pnand %p2647_p0, %p2941_p6 }
  0x21   : > { %p2656_p9 = por %p2655_p8, %p2654_p7 }
  0x22   : > { %p2650_p4 = pneg %p2649_p2 }
  0x23   : > { %2488 = dma.hbm_to_vmem [thread:$0]  (!%p2931_p5), %s3446_s1, 16, %s314_s22, [#allocation5]  }
  0x24   : > { %p2657_p10 = pnand %p2656_p9, %p2650_p4 }
  0x26   : > { %2660 = shalt.err (!%p2657_p10)
}
  0x27   : > { %s2818_s21 = smov 128   ;;  %s2819_s25 = smov 8  }
  0x28   : > { %2494 = dma.hbm_to_vmem [thread:$0]  (!%p2931_p5), %s3427_s4, 4096, %s2935_s26, [#allocation8], %s2818_s21, %s2818_s21, %s2819_s25  }
  0x29   : > { %s2672_s12 = scalar_lea.vmem %s2937_s29, 512  ;;  %p2680_p0 = scmp.lt.s32.totalorder %s2937_s29, %s2937_s29 }
  0x2a   : > { %p2673_p11 = scmp.ne.s32.totalorder %s2937_s29, %s2672_s12  ;;  %p2681_p2 = scmp.lt.s32.totalorder %s2672_s12, %s2672_s12 }
  0x2c   : > { %p2675_p12 = pnand %p2673_p11, %p2941_p6  ;;  %p2682_p4 = por %p2681_p2, %p2680_p0 }
  0x2e   : > { %p2676_p13 = pneg %p2675_p12 }
  0x30   : > { %p2683_p7 = pnand %p2682_p4, %p2676_p13 }
  0x32   : > { %2686 = shalt.err (!%p2683_p7)
}
  0x33   : > { %s3447_s3 = sld [smem:[#allocation17_spill]]  ;;  %s2820_s26 = smov [#allocation9]  }
  0x34   : > { %s358_s15 = sshll.u32 %s2820_s26, 4  ;;  %s2821_s16 = smov [#allocation10]   ;;  %s359_s15 = int_to_ptr.vmem [resolvable:$true] %s358_s15 }
  0x35   : > { %s374_s22 = sshll.u32 %s2821_s16, 4  ;;  %s2698_s28 = scalar_lea.vmem %s359_s15, 512  ;;  %s375_s22 = int_to_ptr.vmem [resolvable:$true] %s374_s22 }
  0x36   : > { %p2699_p8 = scmp.ne.s32.totalorder %s359_s15, %s2698_s28  ;;  %p2706_p11 = scmp.lt.s32.totalorder %s359_s15, %s359_s15 }
  0x37   : > { %p2707_p12 = scmp.lt.s32.totalorder %s2698_s28, %s2698_s28 }
  0x38   : > { %p2701_p9 = pnand %p2699_p8, %p2941_p6 }
  0x39   : > { %2491 = dma.hbm_to_vmem [thread:$0]  (!%p2931_p5), %s3447_s3, 512, %s2937_s29, [#allocation5], %s2818_s21, %s2818_s21, %s2819_s25  }
  0x3a   : > { %p2702_p10 = pneg %p2701_p9  ;;  %p2708_p13 = por %p2707_p12, %p2706_p11 }
  0x3c   : > { %p2709_p0 = pnand %p2708_p13, %p2702_p10 }
  0x3e   : > { %2712 = shalt.err (!%p2709_p0)
}
  0x3f   : > { %2497 = dma.hbm_to_vmem [thread:$0]  (!%p2931_p5), %s3430_s7, 512, %s359_s15, [#allocation8], %s2818_s21, %s2818_s21, %s2819_s25  }
  0x40   : > { %s2724_s13 = scalar_lea.vmem %s375_s22, 512  ;;  %p2732_p8 = scmp.lt.s32.totalorder %s375_s22, %s375_s22 }
  0x41   : > { %p2725_p2 = scmp.ne.s32.totalorder %s375_s22, %s2724_s13  ;;  %p2733_p9 = scmp.lt.s32.totalorder %s2724_s13, %s2724_s13 }
  0x43   : > { %p2727_p4 = pnand %p2725_p2, %p2941_p6  ;;  %p2734_p10 = por %p2733_p9, %p2732_p8 }
  0x45   : > { %p2728_p7 = pneg %p2727_p4 }
  0x47   : > { %p2735_p11 = pnand %p2734_p10, %p2728_p7 }
  0x49   : > { %2738 = shalt.err (!%p2735_p11)
}
  0x4a   : > { %2500 = dma.hbm_to_vmem [thread:$0]  (!%p2931_p5), %s3432_s9, 512, %s375_s22, [#allocation11], %s2818_s21, %s2818_s21, %s2819_s25  }
  0x4b   : > { %s3003_s27 = sadd.s32 1, %s2813_s20   ;;  %s35_s15 = sadd.s32 1, %s2809_s19 }
  0x4c   : > { %s32_s30 = ssub.s32 %s2813_s20, %s3003_s27  ;;  %p42_p12 = scmp.ne.s32.totalorder %s2809_s19, %s2805_s18 }
  0x4d   : > { %p33_p6 = scmp.eq.s32.totalorder %s32_s30, 0  ;;  %p43_p13 = scmp.eq.s32.totalorder %s2813_s20, 0 }
  0x4e   : > { %p48_p0 = scmp.ne.s32.totalorder %s2805_s18, %s2801_s17  ;;  %p2510_p7 = scmp.lt.s32.totalorder %s2813_s20, 2 }
  0x4f   : > { %s3014_s16 = scalar_select %p33_p6, %s2809_s19, %s35_s15  }
  0x50   : > { %p44_p2 = por %p43_p13, %p42_p12  ;;  %p3018_p4 = por %p3435_p1, %p48_p0 }
  0x51   : > { %s388_s29 = sand.u32 1, %s2809_s19   ;;  %s2268_s25 = sshll.u32 %s2813_s20, 7 }
  0x52   : > { %s3448_s28 = scalar_select %p3018_p4, 1, 0 }
  0x53   : > { %s2267_s21 = sshll.u32 %s388_s29, 3  ;;  %s3028_s13 = scalar_lea.hbm %s3423_s0, %s2268_s25 }
  0x54   : > { %s392_s17 = scalar_lea.vmem [#allocation2], %s2267_s21  ;;  %p3030_p5 = pnand %p2510_p7, %p44_p2 }
  0x55   : > { %s399_s14 = sshll.u32 %s392_s17, 4  ;;  %s389_s30 = scalar_lea.sflag [#allocation3], %s388_s29  ;;  %s400_s14 = int_to_ptr.vmem [resolvable:$true] %s399_s14 }
  0x56   : > { %s2739_s15 = scalar_lea.hbm %s3028_s13, 128  ;;  %p2741_p9 = pneg %p3030_p5 }
  0x57   : > { %p2740_p8 = scmp.ne.s32.totalorder %s3028_s13, %s2739_s15  ;;  %s2744_s22 = scalar_lea.hbm %s3423_s0, 256 }
  0x58   : > { %p2745_p6 = scmp.lt.s32.totalorder %s3028_s13, %s3423_s0  ;;  %p2746_p12 = scmp.lt.s32.totalorder %s2744_s22, %s2739_s15 }
  0x59   : > { %p2742_p10 = pnand %p2741_p9, %p2740_p8 }
  0x5a   : > { %p2747_p13 = por %p2746_p12, %p2745_p6 }
  0x5b   : > { %p2743_p11 = pneg %p2742_p10 }
  0x5d   : > { %p2748_p0 = pnand %p2747_p13, %p2743_p11 }
  0x5f   : > { %2751 = shalt.err (!%p2748_p0)
}
  0x60   : > { %s2752_s17 = scalar_lea.vmem %s400_s14, 128  ;;  %s2822_s29 = smov [#allocation2]  }
  0x61   : > { %p2753_p2 = scmp.ne.s32.totalorder %s400_s14, %s2752_s17  ;;  %s2757_s1 = sshll.u32 %s2822_s29, 4  ;;  %s2758_s1 = int_to_ptr.vmem [resolvable:$false] %s2757_s1 }
  0x62   : > { %s2759_s3 = scalar_lea.vmem %s2758_s1, 256  ;;  %p2760_p8 = scmp.lt.s32.totalorder %s400_s14, %s2758_s1 }
  0x63   : > { %p2755_p7 = pnand %p2753_p2, %p2741_p9  ;;  %p2761_p10 = scmp.lt.s32.totalorder %s2759_s3, %s2752_s17 }
  0x65   : > { %p2756_p1 = pneg %p2755_p7  ;;  %p2762_p4 = por %p2761_p10, %p2760_p8 }
  0x67   : > { %p2763_p3 = pnand %p2762_p4, %p2756_p1 }
  0x69   : > { %2766 = shalt.err (!%p2763_p3)
}
  0x6a   : > { %2504 = dma.hbm_to_vmem [thread:$0]  (!%p3030_p5), %s3028_s13, 128, %s400_s14, %s389_s30  }
  0x6b   : > { %p3450_p11 = scmp.ne.s32.totalorder %s3443_s24, 0 }
  0x6c   : > { %s410_s15 = sand.u32 (!%p3450_p11), 1, %s2805_s18   ;;  %p3451_p9 = scmp.ne.s32.totalorder (!%p3450_p11), %s3448_s28, 0 }
  0x6d   : > { %408 = sbr.rel (%p3450_p11) target bundleno = 2291 (0x8f3), region = 60  ;;  %s3051_s20 = sshll.u32 (!%p3450_p11), %s410_s15, 3 }
  0x6e   : > { %s411_s25 = scalar_lea.sflag (!%p3450_p11), [#allocation3], %s410_s15  ;;  %s414_s22 = scalar_lea.vmem (!%p3450_p11), [#allocation2], %s3051_s20 }
  0x72   : > { %2784 = dma.done.wait (%p3451_p9), %s411_s25, 128  }
  0x73   : > { %2786 = vsyncadd (%p3451_p9), %s411_s25, 4294967168  ;;  %p3452_p1 = scmp.eq.s32.totalorder %s2918_s23, 0 }
  0x75   : > { %2788 = dma.done.wait (%p3452_p1), [#allocation5], 528   ;;  %p3453_p3 = pmov %p3452_p1 }
  0x76   : > { %p3454_p4 = pmov %p3452_p1 }
  0x77   : > { %2790 = vsyncadd (%p3453_p3), [#allocation5], 4294966768 }
  0x78   : > { %2792 = dma.done.wait (%p3454_p4), [#allocation8], 4608   ;;  %p3455_p5 = pmov %p3452_p1 }
  0x79   : > { %p3456_p6 = pmov %p3452_p1 }
  0x7a   : > { %2794 = vsyncadd (%p3455_p5), [#allocation8], 4294962688 }
  0x7b   : > { %2796 = dma.done.wait (%p3456_p6), [#allocation11], 512   ;;  %p3457_p12 = pmov %p3452_p1 }
  0x7c   : > { %v3072_v0 = vld [vmem:[%s414_s22] sm:$0xff]  ;;  %vm3440_vm0 = vcmask 261120   ;;  %v2823_v3 = vmov 0.0   ;;  %vm3438_vm1 = vmmov 0   ;;  %v503_v7 = vld [vmem:[#allocation6] sm:$0xff]  ;;  %s2825_s1 = smov 64  }
  0x7d   : > { %2798 = vsyncadd (%p3457_p12), [#allocation11], 4294966784  ;;  %v486_v1 = vmul.f32 %v3072_v0, %v3072_v0  ;;  %2381 = vmatprep.subr.mxu1 %v2823_v3  ;;  %v506_v4 = vld [vmem:[#allocation6 + $0x18] sm:$0xff]  ;;  %v505_v5 = vld [vmem:[#allocation6 + $0x10] sm:$0xff]  ;;  %2389 = vmatprep.mubr.msk.f32.mxu1 %vm3438_vm1, %v2823_v3  ;;  %s2826_s3 = smov 32   ;;  %s2827_s24 = smov 96  }
  0x7e   : > { %2382 = vmatpush3.msra.mxu1 %v506_v4  ;;  %v504_v6 = vld [vmem:[#allocation6 + $0x8] sm:$0xff]  ;;  %v538_v8 = vld [vmem:[#allocation7 + $0xf8] sm:$0xff]  ;;  %v537_v10 = vld [vmem:[#allocation7 + $0xf0] sm:$0xff]  ;;  %s2828_s14 = smov 48   ;;  %s2829_s12 = smov 16  }
  0x7f   : > { %v488_v2 = vsel %vm3440_vm0, %v486_v1, 0.0  ;;  %2383 = vmatprep.subr.mxu1 %v2823_v3  ;;  %v522_v9 = vld [vmem:[#allocation7 + $0x78] sm:$0xff]  ;;  %2312 = vmatprep.subr.mxu0 %v538_v8  ;;  %v521_v11 = vld [vmem:[#allocation7 + $0x70] sm:$0xff]  ;;  %v536_v12 = vld [vmem:[#allocation7 + $0xe8] sm:$0xff]  ;;  %s2830_s21 = smov 112   ;;  %s2831_s17 = smov 124  }
  0x80   : > { %489 = vadd.xlane.f32.xlu0 %v488_v2  ;;  %2384 = vmatpush3.msra.mxu1 %v505_v5  ;;  %v520_v13 = vld [vmem:[#allocation7 + $0x68] sm:$0xff]  ;;  %v535_v14 = vld [vmem:[#allocation7 + $0xe0] sm:$0xff]  ;;  %v534_v16 = vld [vmem:[#allocation7 + $0xd8] sm:$0xff]  ;;  %s2832_s29 = smov 120   ;;  %s2833_s15 = smov 116  }
  0x81   : > { %2385 = vmatprep.subr.mxu1 %v2823_v3  ;;  %2313 = vmatpush3.msra.mxu0 %v522_v9  ;;  %v519_v15 = vld [vmem:[#allocation7 + $0x60] sm:$0xff]  ;;  %v518_v17 = vld [vmem:[#allocation7 + $0x58] sm:$0xff]  ;;  %v533_v18 = vld [vmem:[#allocation7 + $0xd0] sm:$0xff]  ;;  %s2834_s25 = smov 100   ;;  %p476_p13 = scmp.lt.s32.totalorder %s2918_s23, 1 }
  0x82   : > { %2386 = vmatpush3.msra.mxu1 %v504_v6  ;;  %2314 = vmatprep.subr.mxu0 %v537_v10  ;;  %v517_v19 = vld [vmem:[#allocation7 + $0x50] sm:$0xff]  ;;  %v532_v20 = vld [vmem:[#allocation7 + $0xc8] sm:$0xff]  ;;  %v531_v22 = vld [vmem:[#allocation7 + $0xc0] sm:$0xff] }
  0x83   : > { %2387 = vmatprep.subr.mxu1 %v2823_v3  ;;  %2315 = vmatpush3.msra.mxu0 %v521_v11  ;;  %v516_v21 = vld [vmem:[#allocation7 + $0x48] sm:$0xff]  ;;  %v515_v23 = vld [vmem:[#allocation7 + $0x40] sm:$0xff]  ;;  %v530_v24 = vld [vmem:[#allocation7 + $0xb8] sm:$0xff]  ;;  %s3470_s23 = smov (!%p476_p13, %s2918_s23), 1 }
  0x84   : > { %2388 = vmatpush3.msra.mxu1 %v503_v7  ;;  %2316 = vmatprep.subr.mxu0 %v536_v12  ;;  %v514_v25 = vld [vmem:[#allocation7 + $0x38] sm:$0xff]  ;;  %v529_v26 = vld [vmem:[#allocation7 + $0xb0] sm:$0xff]  ;;  %v528_v28 = vld [vmem:[#allocation7 + $0xa8] sm:$0xff] }
  0x85   : > { %2392 = vmatprep.subr.mxu1 %v2823_v3  ;;  %2317 = vmatpush3.msra.mxu0 %v520_v13  ;;  %v513_v27 = vld [vmem:[#allocation7 + $0x30] sm:$0xff]  ;;  %v512_v29 = vld [vmem:[#allocation7 + $0x28] sm:$0xff]  ;;  %v527_v30 = vld [vmem:[#allocation7 + $0xa0] sm:$0xff] }
  0x86   : > { %2318 = vmatprep.subr.mxu0 %v535_v14  ;;  %v511_v31 = vld [vmem:[#allocation7 + $0x20] sm:$0xff]  ;;  %v2278_v36 = vld [vmem:[#allocation4] ss:$0 sm:$0xff] }
  0x87   : > { %2319 = vmatpush3.msra.mxu0 %v519_v15 }
  0x88   : > { %2320 = vmatprep.subr.mxu0 %v534_v16 }
  0x89   : > { %2321 = vmatpush3.msra.mxu0 %v518_v17 }
  0x8a   : > { %2322 = vmatprep.subr.mxu0 %v533_v18 }
  0x8b   : > { %2323 = vmatpush3.msra.mxu0 %v517_v19 }
  0x8c   : > { %2324 = vmatprep.subr.mxu0 %v532_v20 }
  0x8d   : > { %2325 = vmatpush3.msra.mxu0 %v516_v21 }
  0x8e   : > { %2326 = vmatprep.subr.mxu0 %v531_v22 }
  0x8f   : > { %2327 = vmatpush3.msra.mxu0 %v515_v23 }
  0x90   : > { %2328 = vmatprep.subr.mxu0 %v530_v24 }
  0x91   : > { %2329 = vmatpush3.msra.mxu0 %v514_v25 }
  0x92   : > { %2330 = vmatprep.subr.mxu0 %v529_v26 }
  0x93   : > { %2331 = vmatpush3.msra.mxu0 %v513_v27 }
  0x94   : > { %2332 = vmatprep.subr.mxu0 %v528_v28 }
  0x95   : > { %2333 = vmatpush3.msra.mxu0 %v512_v29 }
  0x96   : > { %2334 = vmatprep.subr.mxu0 %v527_v30 }
  0x97   : > { %2335 = vmatpush3.msra.mxu0 %v511_v31 }
 0x109   : > { %v490_v32 = vpop.xlane.xlu0 %489 }
 0x10a   : > { %v492_v33 = vmul.f32 0.03125, %v490_v32 }
 0x10c   : > { %v493_v34 = vadd.f32 1e-06, %v492_v33 }
 0x10e   : > { %2584 = vrsqrt.f32 %v493_v34 }
 0x11b   : > { %v2585_v35 = vpop.eup %2584 }
 0x11c   : > { %v495_v37 = vmul.f32 %v2585_v35, %v3072_v0 }
 0x11e   : > { %v3085_v38 = vmul.f32 %v2278_v36, %v495_v37 }
 0x120   : > { %vm554_vm2 = vcmp.ge.f32.partialorder %v3085_v38, -1.4  ;;  %vm555_vm3 = vcmp.lt.f32.partialorder %v3085_v38, -1.0  ;;  %vm558_vm4 = vcmp.ge.f32.partialorder %v3085_v38, -1.0  ;;  %vm559_vm5 = vcmp.lt.f32.partialorder %v3085_v38, -0.6 }
 0x121   : > { %vm556_vm6 = vmand %vm554_vm2, %vm555_vm3  ;;  %vm562_vm7 = vcmp.ge.f32.partialorder %v3085_v38, -0.6  ;;  %vm563_vm8 = vcmp.lt.f32.partialorder %v3085_v38, -0.19999999  ;;  %vm566_vm9 = vcmp.ge.f32.partialorder %v3085_v38, -0.19999999 }
 0x122   : > { %v557_v39 = vsel %vm556_vm6, 1.0, %v2823_v3  ;;  %vm560_vm10 = vmand %vm558_vm4, %vm559_vm5  ;;  %vm567_vm11 = vcmp.lt.f32.partialorder %v3085_v38, 0.20000005  ;;  %vm570_vm12 = vcmp.ge.f32.partialorder %v3085_v38, 0.20000005  ;;  %vm575_vm2 = vcmp.lt.f32.partialorder %v3085_v38, 1.0 }
 0x123   : > { %v561_v40 = vsel %vm560_vm10, 1.0, %v2823_v3  ;;  %vm564_vm13 = vmand %vm562_vm7, %vm563_vm8  ;;  %vm571_vm14 = vcmp.lt.f32.partialorder %v3085_v38, 0.6  ;;  %vm574_vm15 = vcmp.ge.f32.partialorder %v3085_v38, 0.6  ;;  %vm578_vm1 = vcmp.ge.f32.partialorder %v3085_v38, 1.0 }
 0x124   : > { %vm568_vm3 = vmand %vm566_vm9, %vm567_vm11  ;;  %vm579_vm0 = vcmp.lt.f32.partialorder %v3085_v38, 1.4000001  ;;  %vm582_vm4 = vcmp.ge.f32.partialorder %v3085_v38, 1.4000001  ;;  %v600_v41 = vsub.f32 -1.0, %v3085_v38  ;;  %v565_v42 = vsel %vm564_vm13, 1.0, %v2823_v3 }
 0x125   : > { %vm572_vm5 = vmand %vm570_vm12, %vm571_vm14  ;;  %vm583_vm6 = vcmp.lt.f32.partialorder %v3085_v38, 1.8  ;;  %v3108_v43 = vadd.f32 1.4, %v3085_v38  ;;  %v3111_v44 = vadd.f32 1.0, %v3085_v38  ;;  %v3114_v45 = vsel %vm568_vm3, 1.0, %v2823_v3 }
 0x126   : > { %v573_v46 = vsel %vm572_vm5, 1.0, %v2823_v3  ;;  %vm576_vm7 = vmand %vm574_vm15, %vm575_vm2  ;;  %v601_v47 = vmul.f32 2.5000002, %v600_v41  ;;  %v3120_v48 = vsub.f32 -0.6, %v3085_v38  ;;  %v3128_v52 = vsub.f32 1.0, %v3085_v38 }
 0x127   : > { %v577_v49 = vsel %vm576_vm7, 1.0, %v2823_v3  ;;  %vm580_vm8 = vmand %vm578_vm1, %vm579_vm0  ;;  %v605_v50 = vmul.f32 2.5000002, %v3108_v43  ;;  %v612_v51 = vmul.f32 2.5000002, %v3111_v44  ;;  %v3138_v56 = vadd.f32 -1.0, %v3085_v38 }
 0x128   : > { %v581_v53 = vsel %vm580_vm8, 1.0, %v2823_v3  ;;  %vm584_vm9 = vmand %vm582_vm4, %vm583_vm6  ;;  %v608_v54 = vmul.f32 2.5000002, %v3120_v48  ;;  %v3135_v55 = vsub.f32 -0.19999999, %v3085_v38  ;;  %v675_v60 = vmul.f32 1.25, %v3111_v44 }
 0x129   : > { %v3141_v57 = vsel %vm584_vm9, 1.0, %v2823_v3  ;;  %v606_v58 = vmul.f32 %v605_v50, %v557_v39  ;;  %v3144_v59 = vadd.f32 0.6, %v3085_v38  ;;  %v613_v62 = vmul.f32 %v612_v51, %v561_v40 }
 0x12a   : > { %v609_v61 = vmul.f32 %v608_v54, %v561_v40  ;;  %v615_v63 = vmul.f32 2.4999998, %v3135_v55  ;;  %v621_v0 = vsub.f32 0.20000005, %v3085_v38  ;;  %v2286_v2 = vadd.f32 -0.20000005, %v3085_v38 }
 0x12b   : > { %v619_v1 = vmul.f32 2.4999998, %v3144_v59  ;;  %v636_v4 = vmul.f32 2.5000002, %v3128_v52  ;;  %v3153_v7 = vsub.f32 0.6, %v3085_v38  ;;  %v3155_v8 = vmul.f32 %v601_v47, %v557_v39 }
 0x12c   : > { %v616_v5 = vmul.f32 %v615_v63, %v565_v42  ;;  %v622_v6 = vmul.f32 2.4999998, %v621_v0  ;;  %v633_v10 = vmul.f32 2.5000002, %v2286_v2  ;;  %v3158_v12 = vadd.f32 -0.6, %v3085_v38 }
 0x12d   : > { %v620_v9 = vmul.f32 %v619_v1, %v565_v42  ;;  %v637_v11 = vmul.f32 %v636_v4, %v577_v49  ;;  %v3160_v13 = vadd.f32 %v609_v61, %v606_v58  ;;  %v3164_v16 = vsub.f32 1.4000001, %v3085_v38 }
 0x12e   : > { %v617_v14 = vadd.f32 %v616_v5, %v613_v62  ;;  %v623_v15 = vmul.f32 %v622_v6, %v3114_v45  ;;  %v634_v17 = vmul.f32 %v633_v10, %v573_v46  ;;  %v640_v18 = vmul.f32 2.5000002, %v3158_v12 }
 0x12f   : > { %v647_v19 = vmul.f32 2.4999995, %v3138_v56  ;;  %v649_v20 = vsub.f32 1.8, %v3085_v38  ;;  %v629_v22 = vmul.f32 2.5000002, %v3153_v7 }
 0x130   : > { %v3169_v21 = vadd.f32 %v623_v15, %v620_v9  ;;  %v643_v23 = vmul.f32 2.4999995, %v3164_v16  ;;  %v670_v24 = vmul.f32 1.2500001, %v3108_v43  ;;  %v638_v25 = vadd.f32 %v637_v11, %v634_v17 }
 0x131   : > { %v641_v26 = vmul.f32 %v640_v18, %v577_v49  ;;  %v648_v27 = vmul.f32 %v647_v19, %v581_v53  ;;  %v650_v28 = vmul.f32 2.500001, %v649_v20  ;;  %v2289_v30 = vadd.f32 -1.4000001, %v3085_v38 }
 0x132   : > { %v644_v29 = vmul.f32 %v643_v23, %v581_v53  ;;  %v671_v31 = vmul.f32 %v670_v24, %v3160_v13  ;;  %v672_v32 = vmul.f32 1.25, %v3135_v55  ;;  %v676_v34 = vmul.f32 %v675_v60, %v617_v14 }
 0x133   : > { %v651_v33 = vmul.f32 %v650_v28, %v3141_v57  ;;  %v677_v35 = vmul.f32 1.2499999, %v621_v0  ;;  %v690_v36 = vmul.f32 1.2500001, %v2286_v2  ;;  %v630_v37 = vmul.f32 %v629_v22, %v573_v46 }
 0x134   : > { %v645_v39 = vadd.f32 %v644_v29, %v641_v26  ;;  %v673_v40 = vmul.f32 %v672_v32, %v617_v14  ;;  %v692_v42 = vmul.f32 1.2499999, %v3164_v16  ;;  %v695_v51 = vmul.f32 1.2499999, %v3158_v12 }
 0x135   : > { %v3179_v47 = vadd.f32 %v651_v33, %v648_v27  ;;  %v678_v49 = vmul.f32 %v677_v35, %v3169_v21  ;;  %v691_v50 = vmul.f32 %v690_v36, %v638_v25  ;;  %v697_v58 = vmul.f32 1.2500001, %v649_v20  ;;  %v526_v35 = vld [vmem:[#allocation7 + $0x98] sm:$0xff] }
 0x136   : > { %v674_v53 = vadd.f32 %v673_v40, %v671_v31  ;;  %v693_v54 = vmul.f32 %v692_v42, %v645_v39  ;;  %v715_v61 = vmul.f32 0.8333333, %v3108_v43  ;;  %v654_v60 = vmul.f32 2.500001, %v2289_v30  ;;  %v510_v36 = vld [vmem:[#allocation7 + $0x18] sm:$0xff]  ;;  %2336 = vmatprep.subr.mxu0 %v526_v35 }
 0x137   : > { %v3184_v62 = vadd.f32 %v678_v49, %v676_v34  ;;  %v696_v46 = vmul.f32 %v695_v51, %v645_v39  ;;  %v717_v63 = vmul.f32 0.8333333, %v621_v0  ;;  %v698_v4 = vmul.f32 %v697_v58, %v3179_v47  ;;  %v509_v51 = vld [vmem:[#allocation7 + $0x10] sm:$0xff]  ;;  %2337 = vmatpush3.msra.mxu0 %v510_v36 }
 0x138   : > { %v694_v1 = vadd.f32 %v693_v54, %v691_v50  ;;  %v716_v5 = vmul.f32 %v715_v61, %v674_v53  ;;  %v735_v6 = vmul.f32 0.8333333, %v2286_v2  ;;  %v737_v10 = vmul.f32 0.8333334, %v649_v20  ;;  %v525_v50 = vld [vmem:[#allocation7 + $0x90] sm:$0xff] }
 0x139   : > { %v718_v9 = vmul.f32 %v717_v63, %v3184_v62  ;;  %vm550_vm0 = vcmp.ge.f32.partialorder %v3085_v38, -1.8  ;;  %vm551_vm1 = vcmp.lt.f32.partialorder %v3085_v38, -1.4  ;;  %v3190_v11 = vadd.f32 %v698_v4, %v696_v46  ;;  %2338 = vmatprep.subr.mxu0 %v525_v50 }
 0x13a   : > { %v736_v43 = vmul.f32 %v735_v6, %v694_v1  ;;  %vm552_vm10 = vmand %vm550_vm0, %vm551_vm1  ;;  %v2281_v14 = vadd.f32 1.8, %v3085_v38  ;;  %v2285_v0 = vadd.f32 0.19999999, %v3085_v38  ;;  %v593_v2 = vsub.f32 -1.4, %v3085_v38  ;;  %2339 = vmatpush3.msra.mxu0 %v509_v51 }
 0x13b   : > { %v719_v15 = vadd.f32 %v718_v9, %v716_v5  ;;  %v3195_v17 = vsel %vm552_vm10, 1.0, %v2823_v3  ;;  %v662_v18 = vmul.f32 1.2500001, %v600_v41  ;;  %v738_v19 = vmul.f32 %v737_v10, %v3190_v11  ;;  %v3246_v51 = vld [vmem:[%s3429_s6] sm:$0xff] }
 0x13c   : > { %v598_v20 = vmul.f32 2.5000002, %v2281_v14  ;;  %v626_v22 = vmul.f32 2.4999998, %v2285_v0  ;;  %v665_v23 = vmul.f32 1.2500001, %v2281_v14 }
 0x13d   : > { %v667_v24 = vmul.f32 1.2500001, %v3120_v48  ;;  %v685_v26 = vmul.f32 1.25, %v2285_v0  ;;  %v687_v27 = vmul.f32 1.2500001, %v3128_v52  ;;  %v739_v28 = vadd.f32 %v738_v19, %v736_v43  ;;  %v508_v19 = vld [vmem:[#allocation7 + $0x8] sm:$0xff] }
 0x13e   : > { %v599_v29 = vmul.f32 %v598_v20, %v3195_v17  ;;  %v627_v30 = vmul.f32 %v626_v22, %v3114_v45  ;;  %v707_v31 = vmul.f32 0.8333334, %v3120_v48  ;;  %v710_v33 = vmul.f32 0.8333334, %v2281_v14 }
 0x13f   : > { %v668_v32 = vmul.f32 %v667_v24, %v3160_v13  ;;  %v688_v41 = vmul.f32 %v687_v27, %v638_v25  ;;  %v712_v34 = vmul.f32 0.8333333, %v3135_v55  ;;  %v2574_v39 = vpack.i.bf16 %v719_v15, %v739_v28 }
 0x140   : > { %v603_v40 = vadd.f32 %v3155_v8, %v599_v29  ;;  %v631_v42 = vadd.f32 %v630_v37, %v627_v30  ;;  %v730_v49 = vmul.f32 0.8333333, %v2285_v0  ;;  %v655_v45 = vmul.f32 %v654_v60, %v3141_v57 }
 0x141   : > { %v732_v48 = vmul.f32 0.8333333, %v3164_v16  ;;  %vm586_vm11 = vcmp.ge.f32.partialorder %v3085_v38, 1.8  ;;  %vm587_vm12 = vcmp.lt.f32.partialorder %v3085_v38, 2.2  ;;  %2575 = vrot.lane.b32.xlu1 %v2574_v39, %s2825_s1  ;;  %v713_v37 = vmul.f32 %v712_v34, %v674_v53 }
 0x142   : > { %v666_v55 = vmul.f32 %v665_v23, %v603_v40  ;;  %v686_v13 = vmul.f32 %v685_v26, %v631_v42  ;;  %v3214_v8 = vmul.f32 %v662_v18, %v603_v40  ;;  %vm588_vm13 = vmand %vm586_vm11, %vm587_vm12  ;;  %v656_v25 = vsub.f32 2.2, %v3085_v38  ;;  %v524_v18 = vld [vmem:[#allocation7 + $0x88] sm:$0xff] }
 0x143   : > { %v589_v57 = vsel %vm588_vm13, 1.0, %v2823_v3  ;;  %v680_v16 = vmul.f32 1.2499999, %v3144_v59  ;;  %v682_v54 = vmul.f32 1.25, %v3153_v7  ;;  %v733_v60 = vmul.f32 %v732_v48, %v694_v1  ;;  %v523_v1 = vld [vmem:[#allocation7 + $0x80] sm:$0xff]  ;;  %2340 = vmatprep.subr.mxu0 %v524_v18 }
 0x144   : > { %v669_v58 = vadd.f32 %v668_v32, %v666_v55  ;;  %v689_v61 = vadd.f32 %v688_v41, %v686_v13  ;;  %v657_v46 = vmul.f32 2.4999995, %v656_v25  ;;  %v700_v5 = vmul.f32 1.2500001, %v3138_v56  ;;  %v507_v56 = vld [vmem:[#allocation7] sm:$0xff]  ;;  %2341 = vmatpush3.msra.mxu0 %v508_v19 }
 0x145   : > { %v681_v63 = vmul.f32 %v680_v16, %v3169_v21  ;;  %v683_v4 = vmul.f32 %v682_v54, %v631_v42  ;;  %v702_v6 = vmul.f32 1.2500001, %v656_v25  ;;  %v720_v15 = vmul.f32 0.8333333, %v3111_v44  ;;  %2342 = vmatprep.subr.mxu0 %v523_v1 }
 0x146   : > { %v711_v9 = vmul.f32 %v710_v33, %v669_v58  ;;  %v731_v10 = vmul.f32 %v730_v49, %v689_v61  ;;  %v3222_v53 = vmul.f32 %v707_v31, %v669_v58  ;;  %v658_v43 = vmul.f32 %v657_v46, %v589_v57  ;;  %2343 = vmatpush3.msra.mxu0 %v507_v56 }
 0x147   : > { %v684_v14 = vadd.f32 %v683_v4, %v681_v63  ;;  %v701_v0 = vmul.f32 %v700_v5, %v3179_v47  ;;  %v722_v23 = vmul.f32 0.8333333, %v3153_v7  ;;  %v721_v24 = vmul.f32 %v720_v15, %v3184_v62  ;;  %2432 = vmatprep.subr.mxu0 %v2823_v3 }
 0x148   : > { %v714_v20 = vadd.f32 %v713_v37, %v711_v9  ;;  %v734_v22 = vadd.f32 %v733_v60, %v731_v10  ;;  %v659_v21 = vadd.f32 %v658_v43, %v655_v45  ;;  %v740_v26 = vmul.f32 0.8333334, %v3158_v12 }
 0x149   : > { %v2279_v27 = vmul.f32 -1.442695, %v3085_v38  ;;  %v725_v47 = vmul.f32 0.8333333, %v3144_v59  ;;  %v723_v29 = vmul.f32 %v722_v23, %v684_v14  ;;  %v727_v30 = vmul.f32 0.8333333, %v3128_v52 }
 0x14a   : > { %v2569_v44 = vpack.i.bf16 %v714_v20, %v734_v22  ;;  %v703_v28 = vmul.f32 %v702_v6, %v659_v21  ;;  %v594_v7 = vmul.f32 2.5000002, %v593_v2  ;;  %v742_v31 = vmul.f32 0.8333333, %v656_v25  ;;  %v3253_v25 = vld [vmem:[%s3428_s5] sm:$0xff] }
 0x14b   : > { %2586 = vpow2.f32 %v2279_v27  ;;  %v726_v62 = vmul.f32 %v725_v47, %v684_v14  ;;  %v741_v32 = vmul.f32 %v740_v26, %v3190_v11  ;;  %v728_v59 = vmul.f32 %v727_v30, %v689_v61 }
 0x14c   : > { %2570 = vrot.lane.b32.xlu0 %v2569_v44, %s2826_s3  ;;  %v704_v12 = vadd.f32 %v703_v28, %v701_v0  ;;  %vm546_vm14 = vcmp.ge.f32.partialorder %v3085_v38, -2.2  ;;  %vm547_vm15 = vcmp.lt.f32.partialorder %v3085_v38, -1.8  ;;  %v2280_v52 = vadd.f32 2.2, %v3085_v38 }
 0x14d   : > { %v724_v2 = vadd.f32 %v723_v29, %v721_v24  ;;  %v729_v33 = vadd.f32 %v728_v59, %v726_v62  ;;  %vm548_vm2 = vmand %vm546_vm14, %vm547_vm15  ;;  %v595_v34 = vmul.f32 %v594_v7, %v3195_v17  ;;  %vm3458_vm3 = vcmask 261120  }
 0x14e   : > { %v743_v41 = vmul.f32 %v742_v31, %v704_v12  ;;  %v549_v35 = vsel %vm548_vm2, 1.0, %v2823_v3  ;;  %v591_v36 = vmul.f32 2.4999995, %v2280_v52  ;;  %v660_v49 = vmul.f32 1.2499999, %v2280_v52  ;;  %vm3460_vm6 = vmmov %vm3458_vm3 }
 0x14f   : > { %v705_v17 = vmul.f32 0.8333333, %v2280_v52  ;;  %vm3459_vm4 = vmmov 0   ;;  %vm770_vm5 = vcmask 523264   ;;  %vm3461_vm7 = vmmov %vm3458_vm3  ;;  %vm772_vm8 = vcmask 785408  }
 0x150   : > { %v744_v39 = vadd.f32 %v743_v41, %v741_v32  ;;  %v592_v11 = vmul.f32 %v591_v36, %v549_v35  ;;  %vm999_vm9 = vcmask 31744   ;;  %vm1053_vm0 = vcmask 64512   ;;  %vm3462_vm1 = vmmov %vm3458_vm3 }
 0x151   : > { %vm3463_vm10 = vmmov %vm3462_vm1 }
 0x152   : > { %v2579_v40 = vpack.i.bf16 %v724_v2, %v744_v39  ;;  %v596_v42 = vadd.f32 %v595_v34, %v592_v11  ;;  %vm3464_vm11 = vmmov %vm3462_vm1 }
 0x154   : > { %2580 = vrot.lane.b32.xlu1 %v2579_v40, %s2827_s24  ;;  %v661_v50 = vmul.f32 %v660_v49, %v596_v42 }
 0x156   : > { %v664_v45 = vadd.f32 %v3214_v8, %v661_v50 }
 0x158   : > { %v2587_v48 = vpop.eup %2586  ;;  %948 = vrot.lane.b32.xlu1 %v3246_v51, %s2828_s14  ;;  %v706_v13 = vmul.f32 %v705_v17, %v664_v45 }
 0x159   : > { %v542_v55 = vadd.f32 1.0, %v2587_v48 }
 0x15a   : > { %v709_v37 = vadd.f32 %v3222_v53, %v706_v13 }
 0x15b   : > { %2588 = vrcp.f32 %v542_v55 }
 0x15c   : > { %961 = vrot.lane.b32.xlu1 %v3253_v25, %s2828_s14 }
 0x160   : > { %935 = vrot.lane.b32.xlu1 %v3253_v25, %s2829_s12 }
 0x164   : > { %944 = vrot.lane.b32.xlu1 %v3253_v25, %s2826_s3 }
 0x168   : > { %v2589_v8 = vpop.eup %2588  ;;  %957 = vrot.lane.b32.xlu1 %v3246_v51, %s2826_s3  ;;  %s2835_s3 = smov 4  }
 0x169   : > { %v545_v57 = vmul.f32 %v2589_v8, %v3085_v38 }
 0x16b   : > { %2390 = vmatmul.mubr.msk.f32.vlgmr.msra.gmra.mxu1 %vm3458_vm3, %v545_v57 }
 0x16c   : > { %2394 = vmatprep.mubr.msk.f32.mxu1 %vm3459_vm4, %v2823_v3 }
 0x1b3   : > { %v2576_v54 = vpop.permute.xlu1 %2575 }
 0x1b4   : > { %v2578_v60 = vunpack.i.h.bf16 %v2576_v54  ;;  %v2577_v46 = vunpack.i.l.bf16 %v2576_v54 }
 0x1be   : > { %v2571_v16 = vpop.permute.xlu0 %2570 }
 0x1bf   : > { %v2573_v58 = vunpack.i.h.bf16 %v2571_v16  ;;  %v2572_v61 = vunpack.i.l.bf16 %v2571_v16 }
 0x1c1   : > { %v774_v63 = vsel %vm3460_vm6, %v729_v33, %v2572_v61  ;;  %v769_v4 = vsel %vm3461_vm7, %v709_v37, %v2573_v58 }
 0x1c2   : > { %v775_v9 = vsel %vm770_vm5, %v774_v63, %v2577_v46  ;;  %v771_v10 = vsel %vm770_vm5, %v769_v4, %v2578_v60 }
 0x1c6   : > { %v2581_v5 = vpop.permute.xlu1 %2580 }
 0x1c7   : > { %v2583_v6 = vunpack.i.h.bf16 %v2581_v5  ;;  %v2582_v38 = vunpack.i.l.bf16 %v2581_v5 }
 0x1c9   : > { %v776_v53 = vsel %vm772_vm8, %v775_v9, %v2582_v38  ;;  %v773_v43 = vsel %vm772_vm8, %v771_v10, %v2583_v6 }
 0x1ca   : > { %841 = vmatprep.mubr.f32.mxu0 %v776_v53  ;;  %v949_v15 = vpop.permute.xlu1 %948 }
 0x1cb   : > { %842 = vmatmul.mubr.f32.vlgmr.msra.gmra.mxu0 %v773_v43 }
 0x1cc   : > { %2434 = vmatprep.mubr.msk.f32.mxu0 %vm3459_vm4, %v2823_v3 }
 0x1ce   : > { %v962_v20 = vpop.permute.xlu1 %961 }
 0x1d2   : > { %v936_v56 = vpop.permute.xlu1 %935 }
 0x1d6   : > { %v945_v26 = vpop.permute.xlu1 %944 }
 0x1da   : > { %v958_v27 = vpop.permute.xlu1 %957 }
 0x22b   : > { %v916_v14 = vpop.f32.mrf.mxu1 }
 0x22d   : > { %v2391_v0 = vpop.f32.mrf.mxu1 }
 0x28b   : > { %v2344_v18 = vpop.f32.mrf.mxu0 }
 0x28d   : > { %v2345_v19 = vpop.f32.mrf.mxu0 }
 0x28e   : > { %v2346_v1 = vadd.f32 %v2345_v19, %v2344_v18 }
 0x290   : > { %v3271_v22 = vadd.f32 %v2346_v1, %v916_v14 }
 0x292   : > { %v964_v21 = vmul.f32 %v962_v20, %v3271_v22  ;;  %v951_v23 = vmul.f32 %v949_v15, %v3271_v22  ;;  %v938_v24 = vmul.f32 %v936_v56, %v3271_v22  ;;  %v960_v47 = vmul.f32 %v958_v27, %v3271_v22 }
 0x293   : > { %v933_v30 = vmul.f32 %v3246_v51, %v3271_v22  ;;  %v947_v32 = vmul.f32 %v945_v26, %v3271_v22  ;;  %v922_v2 = vmul.f32 %v3253_v25, %v3271_v22 }
 0x294   : > { %966 = vrot.lane.b32.xlu1 %v964_v21, %s2830_s21  ;;  %953 = vrot.lane.b32.xlu0 %v951_v23, %s2830_s21 }
 0x298   : > { %924 = vrot.lane.b32.xlu0 %v3246_v51, %s2829_s12  ;;  %940 = vrot.lane.b32.xlu1 %v938_v24, %s2830_s21 }
 0x306   : > { %v967_v44 = vpop.permute.xlu1 %966  ;;  %v954_v28 = vpop.permute.xlu0 %953 }
 0x307   : > { %v969_v29 = vadd.f32 %v967_v44, %v960_v47  ;;  %v956_v59 = vsub.f32 %v947_v32, %v954_v28 }
 0x309   : > { %1012 = vrot.lane.b32.xlu1 %v969_v29, %s2831_s17 }
 0x30a   : > { %v925_v7 = vpop.permute.xlu0 %924  ;;  %v941_v31 = vpop.permute.xlu1 %940 }
 0x30b   : > { %v927_v62 = vmul.f32 %v925_v7, %v3271_v22  ;;  %v943_v12 = vadd.f32 %v941_v31, %v933_v30 }
 0x30d   : > { %929 = vrot.lane.b32.xlu0 %v927_v62, %s2830_s21  ;;  %981 = vrot.lane.b32.xlu1 %v943_v12, %s2831_s17 }
 0x311   : > { %1005 = vrot.lane.b32.xlu0 %v956_v59, %s2831_s17  ;;  %1014 = vrot.lane.b32.xlu1 %v969_v29, %s2832_s29 }
 0x315   : > { %1007 = vrot.lane.b32.xlu0 %v956_v59, %s2832_s29  ;;  %1009 = vrot.lane.b32.xlu1 %v956_v59, %s2833_s15 }
 0x319   : > { %983 = vrot.lane.b32.xlu0 %v943_v12, %s2832_s29  ;;  %985 = vrot.lane.b32.xlu1 %v943_v12, %s2833_s15 }
 0x31d   : > { %1016 = vrot.lane.b32.xlu0 %v969_v29, %s2833_s15  ;;  %1030 = vrot.lane.b32.xlu1 %v969_v29, %s2834_s25 }
 0x321   : > { %1018 = vrot.lane.b32.xlu0 %v956_v59, %s2827_s24 }
 0x325   : > { %987 = vrot.lane.b32.xlu0 %v943_v12, %s2835_s3 }
 0x37b   : > { %v1013_v52 = vpop.permute.xlu1 %1012 }
 0x37c   : > { %1032 = vrot.lane.b32.xlu0 %v1013_v52, %s2834_s25 }
 0x37f   : > { %v930_v41 = vpop.permute.xlu0 %929  ;;  %v982_v33 = vpop.permute.xlu1 %981 }
 0x380   : > { %v932_v34 = vsub.f32 %v922_v2, %v930_v41  ;;  %989 = vrot.lane.b32.xlu0 %v982_v33, %s2835_s3 }
 0x382   : > { %971 = vrot.lane.b32.xlu1 %v932_v34, %s2831_s17 }
 0x383   : > { %v1006_v35 = vpop.permute.xlu0 %1005  ;;  %v1015_v36 = vpop.permute.xlu1 %1014 }
 0x384   : > { %1034 = vrot.lane.b32.xlu0 %v1015_v36, %s2834_s25 }
 0x386   : > { %974 = vrot.lane.b32.xlu1 %v932_v34, %s2832_s29 }
 0x387   : > { %v1008_v39 = vpop.permute.xlu0 %1007  ;;  %v1010_v11 = vpop.permute.xlu1 %1009 }
 0x38a   : > { %1020 = vrot.lane.b32.xlu1 %v1006_v35, %s2827_s24 }
 0x38b   : > { %v984_v40 = vpop.permute.xlu0 %983  ;;  %v986_v42 = vpop.permute.xlu1 %985 }
 0x38c   : > { %991 = vrot.lane.b32.xlu0 %v984_v40, %s2835_s3 }
 0x38e   : > { %1022 = vrot.lane.b32.xlu1 %v1008_v39, %s2827_s24 }
 0x38f   : > { %v1017_v49 = vpop.permute.xlu0 %1016  ;;  %v1031_v50 = vpop.permute.xlu1 %1030 }
 0x390   : > { %1036 = vrot.lane.b32.xlu0 %v1017_v49, %s2834_s25 }
 0x392   : > { %1024 = vrot.lane.b32.xlu1 %v1010_v11, %s2827_s24  ;;  %s2836_s24 = smov 104  }
 0x393   : > { %v1019_v51 = vpop.permute.xlu0 %1018 }
 0x394   : > { %v1042_v45 = vsel %vm999_vm9, %v1019_v51, %v1031_v50  ;;  %993 = vrot.lane.b32.xlu0 %v986_v42, %s2835_s3 }
 0x395   : > { %2393 = vmatpush3.xpose.msk.msra.mxu1 %vm1053_vm0, %v1042_v45 }
 0x396   : > { %977 = vrot.lane.b32.xlu1 %v932_v34, %s2833_s15  ;;  %2397 = vmatprep.subr.mxu1 %v2823_v3 }
 0x397   : > { %v988_v17 = vpop.permute.xlu0 %987 }
 0x398   : > { %v1000_v48 = vsel %vm999_vm9, %v932_v34, %v988_v17 }
 0x399   : > { %2395 = vmatmul.mubr.msk.f32.vlgmr.msra.gmra.mxu1 %vm1053_vm0, %v1000_v48 }
 0x39a   : > { %2399 = vmatprep.mubr.msk.f32.mxu1 %vm3459_vm4, %v2823_v3 }
 0x3ee   : > { %v1033_v55 = vpop.permute.xlu0 %1032 }
 0x3f2   : > { %v990_v13 = vpop.permute.xlu0 %989 }
 0x3f4   : > { %v972_v25 = vpop.permute.xlu1 %971 }
 0x3f5   : > { %v1001_v58 = vsel %vm999_vm9, %v972_v25, %v990_v13 }
 0x3f6   : > { %v1035_v8 = vpop.permute.xlu0 %1034 }
 0x3f8   : > { %v975_v37 = vpop.permute.xlu1 %974 }
 0x3fc   : > { %v1021_v57 = vpop.permute.xlu1 %1020 }
 0x3fd   : > { %v1043_v16 = vsel %vm999_vm9, %v1021_v57, %v1033_v55 }
 0x3fe   : > { %v992_v54 = vpop.permute.xlu0 %991  ;;  %2398 = vmatpush3.xpose.msk.msra.mxu1 %vm1053_vm0, %v1043_v16 }
 0x3ff   : > { %2402 = vmatprep.subr.mxu1 %v2823_v3  ;;  %v1002_v63 = vsel %vm999_vm9, %v975_v37, %v992_v54 }
 0x400   : > { %v1023_v61 = vpop.permute.xlu1 %1022 }
 0x401   : > { %v1044_v60 = vsel %vm999_vm9, %v1023_v61, %v1035_v8  ;;  %2400 = vmatmul.mubr.msk.f32.vlgmr.msra.gmra.mxu1 %vm1053_vm0, %v1001_v58 }
 0x402   : > { %v1037_v46 = vpop.permute.xlu0 %1036  ;;  %2403 = vmatpush3.xpose.msk.msra.mxu1 %vm1053_vm0, %v1044_v60  ;;  %2404 = vmatprep.mubr.msk.f32.mxu1 %vm3459_vm4, %v2823_v3  ;;  %v1710_v60 = vld [vmem:[#allocation9] sm:$0xff] }
 0x403   : > { %2407 = vmatprep.subr.mxu1 %v2823_v3 }
 0x404   : > { %v1025_v4 = vpop.permute.xlu1 %1024 }
 0x405   : > { %v1045_v5 = vsel %vm999_vm9, %v1025_v4, %v1037_v46  ;;  %2405 = vmatmul.mubr.msk.f32.vlgmr.msra.gmra.mxu1 %vm1053_vm0, %v1002_v63  ;;  %v1712_v46 = vld [vmem:[#allocation9 + $0x8] sm:$0xff]  ;;  %v1936_v63 = vld [vmem:[#allocation9 + $0x18] sm:$0xff] }
 0x406   : > { %2408 = vmatpush3.xpose.msk.msra.mxu1 %vm1053_vm0, %v1045_v5  ;;  %2409 = vmatprep.mubr.msk.f32.mxu1 %vm3459_vm4, %v2823_v3  ;;  %v994_v6 = vpop.permute.xlu0 %993 }
 0x407   : > { %2412 = vmatprep.subr.mxu1 %v2823_v3  ;;  %2433 = vmatpush3.msra.mxu0 %v1712_v46 }
 0x408   : > { %v978_v38 = vpop.permute.xlu1 %977  ;;  %2442 = vmatprep.subr.mxu0 %v2823_v3 }
 0x409   : > { %v1003_v9 = vsel %vm999_vm9, %v978_v38, %v994_v6  ;;  %v1860_v6 = vld [vmem:[#allocation9 + $0x10] sm:$0xff] }
 0x40a   : > { %2410 = vmatmul.mubr.msk.f32.vlgmr.msra.gmra.mxu1 %vm1053_vm0, %v1003_v9 }
 0x40b   : > { %2414 = vmatprep.mubr.msk.f32.mxu1 %vm3459_vm4, %v2823_v3 }
 0x459   : > { %v1126_v10 = vpop.f32.mrf.mxu1 }
 0x45a   : > { %v1358_v53 = vmul.f32 0.35355338, %v1126_v10 }
 0x45b   : > { %v2396_v43 = vpop.f32.mrf.mxu1 }
 0x45c   : > { %v1362_v14 = vsel %vm1053_vm0, %v1358_v53, -inf }
 0x45d   : > { %1363 = vmax.xlane.f32.xlu1 %v1362_v14 }
 0x4c1   : > { %v1202_v0 = vpop.f32.mrf.mxu1 }
 0x4c2   : > { %v1359_v15 = vmul.f32 0.35355338, %v1202_v0 }
 0x4c3   : > { %v2401_v18 = vpop.f32.mrf.mxu1 }
 0x4c4   : > { %v1365_v19 = vsel %vm1053_vm0, %v1359_v15, -inf }
 0x4c5   : > { %1366 = vmax.xlane.f32.xlu0 %v1365_v19  ;;  %v1278_v1 = vpop.f32.mrf.mxu1 }
 0x4c6   : > { %v1360_v20 = vmul.f32 0.35355338, %v1278_v1 }
 0x4c7   : > { %v2406_v21 = vpop.f32.mrf.mxu1 }
 0x4c8   : > { %v1368_v23 = vsel %vm1053_vm0, %v1360_v20, -inf }
 0x4c9   : > { %1369 = vmax.xlane.f32.xlu0 %v1368_v23 }
 0x4ca   : > { %v1354_v56 = vpop.f32.mrf.mxu1 }
 0x4cb   : > { %v1361_v24 = vmul.f32 0.35355338, %v1354_v56 }
 0x4cc   : > { %v2411_v26 = vpop.f32.mrf.mxu1 }
 0x4cd   : > { %v1371_v27 = vsel %vm1053_vm0, %v1361_v24, -inf  ;;  %v2307_v26 = vld [vmem:[%s3431_s8] ss:$0 sm:$0xff] }
 0x4ce   : > { %1372 = vmax.xlane.f32.xlu1 %v1371_v27 }
 0x4df   : > { %1047 = vrot.lane.b32.xlu0 %v3271_v22, %s2832_s29  ;;  %1049 = vrot.lane.b32.xlu1 %v3271_v22, %s2830_s21 }
 0x4e3   : > { %1051 = vrot.lane.b32.xlu1 %v3271_v22, %s2836_s24 }
 0x4e6   : > { %v1364_v47 = vpop.xlane.xlu1 %1363 }
 0x4e7   : > { %v1374_v44 = vsub.f32 %v1358_v53, %v1364_v47  ;;  %1406 = vrot.lane.b32.xlu1 %v3271_v22, %s2825_s1  ;;  %v2608_v47 = vld [vmem:[%s414_s22] sm:$0xff] }
 0x4e9   : > { %v1378_v28 = vmul.f32 1.442695, %v1374_v44 }
 0x4eb   : > { %2590 = vpow2.f32 %v1378_v28 }
 0x4f8   : > { %v2591_v29 = vpop.eup %2590 }
 0x4f9   : > { %v1386_v30 = vsel %vm1053_vm0, %v2591_v29, 0.0 }
 0x4fe   : > { %1387 = vadd.xlane.f32.xlu0 %v1386_v30 }
 0x54e   : > { %v1367_v7 = vpop.xlane.xlu0 %1366 }
 0x54f   : > { %v1375_v31 = vsub.f32 %v1359_v15, %v1367_v7  ;;  %v2040_v7 = vld [vmem:[#allocation10 + $0x18] sm:$0xff] }
 0x551   : > { %v1380_v62 = vmul.f32 1.442695, %v1375_v31  ;;  %v2039_v31 = vld [vmem:[#allocation10 + $0x10] sm:$0xff] }
 0x552   : > { %v1370_v12 = vpop.xlane.xlu0 %1369 }
 0x553   : > { %2592 = vpow2.f32 %v1380_v62  ;;  %v1376_v32 = vsub.f32 %v1360_v20, %v1370_v12  ;;  %v2038_v62 = vld [vmem:[#allocation10 + $0x8] sm:$0xff]  ;;  %v2037_v12 = vld [vmem:[#allocation10] sm:$0xff] }
 0x555   : > { %v1382_v59 = vmul.f32 1.442695, %v1376_v32 }
 0x556   : > { %v1048_v49 = vpop.permute.xlu0 %1047 }
 0x557   : > { %2594 = vpow2.f32 %v1382_v59  ;;  %v1373_v52 = vpop.xlane.xlu1 %1372 }
 0x558   : > { %v1377_v2 = vsub.f32 %v1361_v24, %v1373_v52 }
 0x55a   : > { %v1384_v41 = vmul.f32 1.442695, %v1377_v2 }
 0x55b   : > { %v1050_v33 = vpop.permute.xlu1 %1049 }
 0x55c   : > { %2596 = vpow2.f32 %v1384_v41  ;;  %v2308_v41 = vld [vmem:[%s3425_s2] ss:$0 sm:$0xff] }
 0x55f   : > { %v1052_v22 = vpop.permute.xlu1 %1051 }
 0x560   : > { %v2593_v34 = vpop.eup %2592 }
 0x561   : > { %v1389_v35 = vsel %vm1053_vm0, %v2593_v34, 0.0 }
 0x562   : > { %1390 = vadd.xlane.f32.xlu1 %v1389_v35 }
 0x563   : > { %v1407_v36 = vpop.permute.xlu1 %1406 }
 0x564   : > { %v2595_v39 = vpop.eup %2594  ;;  %2413 = vmatpush3.msra.mxu1 %v1407_v36 }
 0x565   : > { %v1392_v11 = vsel %vm1053_vm0, %v2595_v39, 0.0  ;;  %2417 = vmatprep.subr.mxu1 %v2823_v3 }
 0x566   : > { %1393 = vadd.xlane.f32.xlu0 %v1392_v11 }
 0x569   : > { %v2597_v40 = vpop.eup %2596 }
 0x56a   : > { %v1395_v42 = vsel %vm1053_vm0, %v2597_v40, 0.0 }
 0x56b   : > { %1396 = vadd.xlane.f32.xlu0 %v1395_v42 }
 0x573   : > { %1558 = vrot.lane.b32.xlu1 %v1050_v33, %s2825_s1 }
 0x577   : > { %1634 = vrot.lane.b32.xlu1 %v1052_v22, %s2825_s1 }
 0x581   : > { %1482 = vrot.lane.b32.xlu0 %v1048_v49, %s2825_s1  ;;  %s2276_s1 = sshll.u32 %s3470_s23, 3 }
 0x582   : > { %s479_s30 = scalar_lea.vmem %s3433_s10, %s2276_s1  ;;  %s483_s17 = scalar_lea.vmem %s3434_s11, %s2276_s1 }
 0x587   : > { %v1388_v50 = vpop.xlane.xlu0 %1387 }
 0x588   : > { %2598 = vrcp.f32 %v1388_v50 }
 0x595   : > { %v2599_v51 = vpop.eup %2598 }
 0x596   : > { %v1402_v45 = vmul.f32 %v2599_v51, %v2591_v29 }
 0x598   : > { %2415 = vmatmul.mubr.msk.f32.vlgmr.msra.gmra.mxu1 %vm1053_vm0, %v1402_v45 }
 0x599   : > { %2419 = vmatprep.mubr.msk.f32.mxu1 %vm3459_vm4, %v2823_v3 }
 0x5eb   : > { %v1391_v17 = vpop.xlane.xlu1 %1390 }
 0x5ec   : > { %2600 = vrcp.f32 %v1391_v17 }
 0x5ef   : > { %v1394_v48 = vpop.xlane.xlu0 %1393  ;;  %v1559_v37 = vpop.permute.xlu1 %1558 }
 0x5f0   : > { %2602 = vrcp.f32 %v1394_v48 }
 0x5f3   : > { %v1635_v54 = vpop.permute.xlu1 %1634 }
 0x5f4   : > { %v1397_v55 = vpop.xlane.xlu0 %1396 }
 0x5f5   : > { %2604 = vrcp.f32 %v1397_v55 }
 0x5f8   : > { %v1483_v13 = vpop.permute.xlu0 %1482 }
 0x5f9   : > { %v2601_v25 = vpop.eup %2600  ;;  %2418 = vmatpush3.msra.mxu1 %v1483_v13 }
 0x5fa   : > { %2422 = vmatprep.subr.mxu1 %v2823_v3  ;;  %v1403_v8 = vmul.f32 %v2601_v25, %v2593_v34 }
 0x5fc   : > { %2420 = vmatmul.mubr.msk.f32.vlgmr.msra.gmra.mxu1 %vm1053_vm0, %v1403_v8 }
 0x5fd   : > { %v2603_v57 = vpop.eup %2602  ;;  %2423 = vmatpush3.msra.mxu1 %v1559_v37  ;;  %2424 = vmatprep.mubr.msk.f32.mxu1 %vm3459_vm4, %v2823_v3 }
 0x5fe   : > { %2427 = vmatprep.subr.mxu1 %v2823_v3  ;;  %v1404_v16 = vmul.f32 %v2603_v57, %v2595_v39 }
 0x600   : > { %2425 = vmatmul.mubr.msk.f32.vlgmr.msra.gmra.mxu1 %vm1053_vm0, %v1404_v16 }
 0x601   : > { %2428 = vmatpush3.msra.mxu1 %v1635_v54  ;;  %2429 = vmatprep.mubr.msk.f32.mxu1 %vm3459_vm4, %v2823_v3 }
 0x602   : > { %v2605_v58 = vpop.eup %2604  ;;  %2437 = vmatprep.subr.mxu1 %v2823_v3 }
 0x603   : > { %v1405_v61 = vmul.f32 %v2605_v58, %v2597_v40 }
 0x605   : > { %2430 = vmatmul.mubr.msk.f32.vlgmr.msra.gmra.mxu1 %vm1053_vm0, %v1405_v61 }
 0x606   : > { %2438 = vmatpush3.msra.mxu1 %v1710_v60  ;;  %2439 = vmatprep.mubr.msk.f32.mxu1 %vm3459_vm4, %v2823_v3 }
 0x607   : > { %2447 = vmatprep.subr.mxu1 %v2823_v3 }
 0x658   : > { %v1478_v4 = vpop.f32.mrf.mxu1 }
 0x659   : > { %2440 = vmatmul.mubr.msk.f32.vlgmr.msra.gmra.mxu1 %vm1053_vm0, %v1478_v4 }
 0x65a   : > { %v2416_v5 = vpop.f32.mrf.mxu1  ;;  %2448 = vmatpush3.msra.mxu1 %v1936_v63  ;;  %2449 = vmatprep.mubr.msk.f32.mxu1 %vm3459_vm4, %v2823_v3 }
 0x6bc   : > { %v1554_v38 = vpop.f32.mrf.mxu1 }
 0x6bd   : > { %2435 = vmatmul.mubr.msk.f32.vlgmr.msra.gmra.mxu0 %vm1053_vm0, %v1554_v38 }
 0x6be   : > { %v2421_v9 = vpop.f32.mrf.mxu1  ;;  %2443 = vmatpush3.msra.mxu0 %v1860_v6  ;;  %2444 = vmatprep.mubr.msk.f32.mxu0 %vm3459_vm4, %v2823_v3 }
 0x6bf   : > { %2452 = vmatprep.subr.mxu0 %v2823_v3 }
 0x6c0   : > { %v1630_v10 = vpop.f32.mrf.mxu1 }
 0x6c1   : > { %2445 = vmatmul.mubr.msk.f32.vlgmr.msra.gmra.mxu0 %vm1053_vm0, %v1630_v10 }
 0x6c2   : > { %v2426_v53 = vpop.f32.mrf.mxu1  ;;  %2460 = vmatprep.mubr.msk.f32.mxu0 %vm3459_vm4, %v2823_v3  ;;  %2453 = vmatpush3.msra.mxu0 %v2040_v7 }
 0x6c3   : > { %2454 = vmatprep.subr.mxu0 %v2823_v3 }
 0x6c4   : > { %2455 = vmatpush3.msra.mxu0 %v2039_v31 }
 0x6c5   : > { %v1706_v43 = vpop.f32.mrf.mxu1  ;;  %2456 = vmatprep.subr.mxu0 %v2823_v3 }
 0x6c6   : > { %2450 = vmatmul.mubr.msk.f32.vlgmr.msra.gmra.mxu1 %vm1053_vm0, %v1706_v43  ;;  %2457 = vmatpush3.msra.mxu0 %v2038_v62 }
 0x6c7   : > { %v2431_v14 = vpop.f32.mrf.mxu1  ;;  %2458 = vmatprep.subr.mxu0 %v2823_v3 }
 0x6c8   : > { %2459 = vmatpush3.msra.mxu0 %v2037_v12 }
 0x719   : > { %v1855_v0 = vpop.f32.mrf.mxu1 }
 0x71b   : > { %v2441_v15 = vpop.f32.mrf.mxu1 }
 0x77d   : > { %v1782_v18 = vpop.f32.mrf.mxu0 }
 0x77e   : > { %v1856_v20 = vadd.f32 %v1855_v0, %v1782_v18 }
 0x77f   : > { %v2436_v19 = vpop.f32.mrf.mxu0 }
 0x781   : > { %v1930_v1 = vpop.f32.mrf.mxu0 }
 0x782   : > { %v1934_v23 = vadd.f32 %v1930_v1, %v1856_v20 }
 0x783   : > { %v2446_v21 = vpop.f32.mrf.mxu0 }
 0x786   : > { %v2006_v56 = vpop.f32.mrf.mxu1 }
 0x787   : > { %v2010_v24 = vadd.f32 %v2006_v56, %v1934_v23 }
 0x788   : > { %v2451_v27 = vpop.f32.mrf.mxu1 }
 0x789   : > { %v2011_v44 = vadd.f32 %v2608_v47, %v2010_v24 }
 0x78b   : > { %v2019_v28 = vadd.f32 %v2307_v26, %v2011_v44 }
 0x78d   : > { %v2022_v29 = vmul.f32 %v2019_v28, %v2019_v28  ;;  %2020 = vst.msk [vmem:[%s479_s30] sm:$0xff] %vm3462_vm1, %v2019_v28 }
 0x78f   : > { %v2023_v30 = vsel %vm3463_vm10, %v2022_v29, 0.0 }
 0x790   : > { %2024 = vadd.xlane.f32.xlu0 %v2023_v30 }
 0x819   : > { %v2025_v32 = vpop.xlane.xlu0 %2024 }
 0x81a   : > { %v2026_v59 = vmul.f32 0.03125, %v2025_v32 }
 0x81c   : > { %v2027_v52 = vadd.f32 1e-06, %v2026_v59 }
 0x81e   : > { %2606 = vrsqrt.f32 %v2027_v52 }
 0x82b   : > { %v2607_v2 = vpop.eup %2606 }
 0x82c   : > { %v2029_v33 = vmul.f32 %v2607_v2, %v2019_v28 }
 0x82e   : > { %v2036_v22 = vmul.f32 %v2308_v41, %v2029_v33 }
 0x830   : > { %2461 = vmatmul.mubr.msk.f32.vlgmr.msra.gmra.mxu0 %vm3464_vm11, %v2036_v22 }
 0x8f0   : > { %v2110_v3 = vpop.f32.mrf.mxu0 }
 0x8f1   : > { %2114 = vst.msk [vmem:[%s483_s17] sm:$0xff] %vm999_vm9, %v2110_v3 }
 0x8f2   : > { %v2462_v34 = vpop.f32.mrf.mxu0 }
 0x8f3 PF: > { %p25_p0 = scmp.ge.s32.totalorder %s3003_s27, 4   ;;  %s3465_s17 = smov %s2805_s18 }
 0x8f4   : > { %s3466_s18 = smov %s2809_s19  ;;  %s3467_s19 = smov %s3014_s16 }
 0x8f5   : > { %s3468_s20 = smov %s3003_s27  ;;  %27 = sbr.rel (!%p25_p0) target bundleno = 9 (0x9), region = 135 }
 0x8fa   :  { %2148 = vsyncpa [#allocation3], 1 }
 0x8fb   :  { %2150 = vsyncpa [#allocation3 + $0x1], 1 }
 0x8fc   :  { %2151 = vsyncpa [#allocation5], 1 }
 0x8fd   :  { %2152 = vsyncpa [#allocation8], 1 }
 0x8fe   :  { %2153 = vsyncpa [#allocation11], 1 }

// kernel: _lambda_.3
= control target key start
LH: loop header
LB: loop body
LE: loop exit
PB: predicated region body
PF: predicated region fallthrough
CT: control target
= control target key end

     0   :  { %s3374_s0 = inlined_call_operand.vmem [shape: f32[16,32], index: 0, kind: input, shape index: {}]   ;;  %s3375_s1 = inlined_call_operand.vmem [shape: f32[4,16,1], index: 1, kind: input, shape index: {}]   ;;  %s3376_s2 = inlined_call_operand.vmem [shape: f32[1,32], index: 2, kind: input, shape index: {}]   ;;  %s3377_s3 = inlined_call_operand.vmem [shape: f32[4,32,64], index: 3, kind: input, shape index: {}]   ;;  %s3378_s4 = inlined_call_operand.hbm [shape: f32[4,256,64], index: 4, kind: input, shape index: {}]   ;;  %s3379_s5 = inlined_call_operand.vmem [shape: f32[4,32,64], index: 5, kind: input, shape index: {}]   ;;  %s3380_s6 = inlined_call_operand.hbm [shape: f32[4,256,64], index: 6, kind: input, shape index: {}]   ;;  %s3381_s7 = inlined_call_operand.vmem [shape: f32[4,64,32], index: 7, kind: input, shape index: {}]   ;;  %s3382_s8 = inlined_call_operand.hbm [shape: f32[4,512,32], index: 8, kind: input, shape index: {}]   ;;  %s3383_s9 = inlined_call_operand.hbm [shape: f32[16,32], index: 9, kind: output, shape index: {}]  }
   0x1   :  { %3399 = sst [smem:[#allocation24_spill]] %s3376_s2 }
   0x2   :  { %3400 = sst [smem:[#allocation25_spill]] %s3378_s4 }
   0x3   :  { %3401 = sst [smem:[#allocation26_spill]] %s3379_s5 }
   0x4   :  { %3402 = sst [smem:[#allocation27_spill]] %s3380_s6 }
   0x5   :  { %3403 = sst [smem:[#allocation28_spill]] %s3381_s7 }
   0x6   :  { %3404 = sst [smem:[#allocation29_spill]] %s3382_s8 }
   0x7   :  { %3405 = sst [smem:[#allocation30_spill]] %s3383_s9 }
   0x8   :  { %14 = vsyncpa [#allocation3], 0 }
   0x9   :  { %16 = vsyncpa [#allocation3 + $0x1], 0 }
   0xa   :  { %17 = vsyncpa [#allocation6], 0 }
   0xb   :  { %19 = vsyncpa [#allocation6 + $0x1], 0 }
   0xc   :  { %20 = vsyncpa [#allocation4], 0 }
   0xd   :  { %22 = vsyncpa [#allocation4 + $0x1], 0  ;;  %s2586_s30 = smov 0   ;;  %s2588_s10 = smov 0  }
   0xe   :  { %s2590_s11 = smov 0   ;;  %s2592_s12 = smov 0  }
   0xf   :  { %s2594_s13 = smov 0   ;;  %s2596_s14 = smov 0  }
  0x10   :  { %s2598_s15 = smov 0   ;;  %s2600_s16 = smov 0  }
  0x11   :  { %s2602_s17 = smov 0   ;;  %s2604_s18 = smov 0  }
  0x12   :  { %s2606_s19 = smov 0  }
  0x13 LB: > { %3406 = sst [smem:[#allocation12_spill]] %s2482_s30  ;;  %s2640_s20 = sadd.s32 4294967295, %s2522_s19   ;;  %s2522_s19 = sphi %s2606_s19, %s28_s19   ;;  %s2518_s18 = sphi %s2604_s18, %s3444_s18   ;;  %s2514_s17 = sphi %s2602_s17, %s3443_s17   ;;  %s2510_s16 = sphi %s2600_s16, %s3442_s16   ;;  %s2506_s15 = sphi %s2598_s15, %s3441_s15   ;;  %s2502_s14 = sphi %s2596_s14, %s3440_s14   ;;  %s2498_s13 = sphi %s2594_s13, %s3439_s13   ;;  %s2494_s12 = sphi %s2592_s12, %s3438_s12   ;;  %s2490_s11 = sphi %s2590_s11, %s3437_s11   ;;  %s2486_s10 = sphi %s2588_s10, %s3446_s10   ;;  %s2482_s30 = sphi %s2586_s30, %s3445_s30  }
  0x14   : > { %3407 = sst [smem:[#allocation13_spill]] %s2490_s11  ;;  %s1894_s21 = sadd.s32 4294967294, %s2522_s19  }
  0x15   : > { %3408 = sst [smem:[#allocation14_spill]] %s2498_s13  ;;  %s37_s22 = sadd.s32 1, %s2514_s17 }
  0x16   : > { %3409 = sst [smem:[#allocation15_spill]] %s2502_s14  ;;  %s40_s23 = sadd.s32 1, %s2518_s18 }
  0x17   : > { %3410 = sst [smem:[#allocation16_spill]] %s2514_s17  ;;  %p38_p0 = scmp.ge.s32.totalorder %s37_s22, 4 }
  0x18   : > { %3411 = sst [smem:[#allocation17_spill]] %s2518_s18  ;;  %s148_s24 = sadd.s32 1, %s2502_s14 }
  0x19   : > { %p155_p1 = scmp.ne.s32.totalorder %s2502_s14, %s2498_s13  ;;  %p156_p2 = scmp.eq.s32.totalorder %s2522_s19, 0 }
  0x1a   : > { %s3448_s22 = smov (%p38_p0, %s37_s22), 0  ;;  %s3450_s23 = smov (!%p38_p0, %s40_s23), %s2518_s18 }
  0x1b   : > { %3412 = sst [smem:[#allocation18_spill]] %s3448_s22  ;;  %s145_s25 = ssub.s32 %s2514_s17, %s3448_s22 }
  0x1c   : > { %p2654_p3 = por %p156_p2, %p155_p1  ;;  %p42_p4 = scmp.ge.s32.totalorder %s3450_s23, 2 }
  0x1d   : > { %p146_p5 = scmp.eq.s32.totalorder %s145_s25, 0  ;;  %p161_p6 = scmp.ne.s32.totalorder %s2498_s13, %s2494_s12 }
  0x1e   : > { %p162_p7 = scmp.eq.s32.totalorder %s2640_s20, 0  ;;  %s3452_s23 = smov (%p42_p4, %s3450_s23), 0 }
  0x1f   : > { %3414 = sst [smem:[#allocation19_spill]] %s3452_s23  ;;  %s275_s29 = ssub.s32 %s2518_s18, %s3452_s23 }
  0x20   : > { %s2663_s27 = scalar_select %p146_p5, %s2502_s14, %s148_s24  }
  0x21   : > { %p2665_p8 = por %p162_p7, %p161_p6  ;;  %p276_p9 = scmp.eq.s32.totalorder %s275_s29, 0 }
  0x22   : > { %3415 = sst [smem:[#allocation20_spill]] %s2663_s27  ;;  %s278_s22 = sadd.s32 1, %s2490_s11 }
  0x23   : > { %p288_p10 = scmp.ne.s32.totalorder %s2490_s11, %s2486_s10  ;;  %p289_p11 = scmp.eq.s32.totalorder %s2640_s20, 7 }
  0x24   : > { %s2676_s12 = scalar_select %p276_p9, %s2490_s11, %s278_s22  }
  0x25   : > { %p2678_p12 = por %p289_p11, %p288_p10  ;;  %p294_p13 = scmp.ne.s32.totalorder %s2486_s10, %s2482_s30 }
  0x26   : > { %3417 = sst [smem:[#allocation21_spill]] %s2676_s12  ;;  %p295_p0 = scmp.eq.s32.totalorder %s1894_s21, 7 }
  0x27   : > { %s3418_s25 = scalar_select %p2678_p12, 1, 0 }
  0x28   : > { %p2179_p1 = scmp.lt.s32.totalorder %s2522_s19, 8  ;;  %s2686_s24 = sand.u32 1, %s2502_s14  }
  0x29   : > { %3419 = sst [smem:[#allocation22_spill]] %s3418_s25  ;;  %p2688_p2 = por %p295_p0, %p294_p13 }
  0x2a   : > { %s1897_s29 = sshll.u32 %s2686_s24, 8  ;;  %s1951_s18 = sshll.u32 %s2514_s17, 12 }
  0x2b   : > { %s3420_s23 = scalar_select %p2688_p2, 1, 0 }
  0x2c   : > { %p2696_p4 = pnand %p2179_p1, %p2654_p3  ;;  %s373_s27 = sand.u32 1, %s2522_s19  }
  0x2d   : > { %3421 = sst [smem:[#allocation23_spill]] %s3420_s23  ;;  %s377_s11 = scalar_lea.vmem [#allocation5], %s1897_s29 }
  0x2e   : > { %s3423_s6 = sld [smem:[#allocation27_spill]]  ;;  %s384_s30 = sshll.u32 %s377_s11, 4  ;;  %s385_s30 = int_to_ptr.vmem [resolvable:$true] %s384_s30 }
  0x2f   : > { %p1906_p5 = scmp.ge.s32.totalorder %s2522_s19, 1  ;;  %s2709_s23 = scalar_lea.sflag [#allocation6], %s373_s27 }
  0x30   : > { %p2316_p3 = pneg %p2696_p4  ;;  %s2327_s26 = scalar_lea.vmem %s385_s30, 4096 }
  0x31   : > { %p2328_p6 = scmp.ne.s32.totalorder %s385_s30, %s2327_s26  ;;  %s2524_s9 = smov [#allocation5]  }
  0x32   : > { %s2332_s25 = sshll.u32 %s2524_s9, 4  ;;  %s2333_s25 = int_to_ptr.vmem [resolvable:$false] %s2332_s25 }
  0x33   : > { %p2330_p7 = pnand %p2328_p6, %p2316_p3  ;;  %s2334_s14 = scalar_lea.vmem %s2333_s25, 8192 }
  0x34   : > { %s383_s12 = scalar_lea.hbm %s3423_s6, %s1951_s18  ;;  %p2335_p10 = scmp.lt.s32.totalorder %s385_s30, %s2333_s25 }
  0x35   : > { %p2331_p9 = pneg %p2330_p7  ;;  %p2336_p11 = scmp.lt.s32.totalorder %s2334_s14, %s2327_s26 }
  0x37   : > { %p2337_p13 = por %p2336_p11, %p2335_p10 }
  0x39   : > { %p2338_p0 = pnand %p2337_p13, %p2331_p9 }
  0x3b   : > { %2341 = shalt.err (!%p2338_p0)
}
  0x3c   : > { %s3394_s11 = smov 128   ;;  %s2526_s27 = smov 8  }
  0x3d   : > { %2171 = dma.hbm_to_vmem [thread:$0]  (!%p2696_p4), %s383_s12, 4096, %s385_s30, %s2709_s23, %s3394_s11, %s3394_s11, %s2526_s27  }
  0x3e   : > { %p421_p1 = scmp.lt.s32.totalorder %s2522_s19, 9  ;;  %s3425_s4 = sld [smem:[#allocation25_spill]] }
  0x3f   : > { %s348_s14 = scalar_lea.vmem [#allocation2], %s1897_s29  ;;  %s1903_s2 = sshll.u32 %s2686_s24, 9 }
  0x40   : > { %p2725_p6 = pnand %p1906_p5, %p421_p1  ;;  %s355_s6 = sshll.u32 %s348_s14, 4  ;;  %s356_s6 = int_to_ptr.vmem [resolvable:$true] %s355_s6 }
  0x41   : > { %s345_s7 = scalar_lea.sflag [#allocation3], %s2686_s24  ;;  %s2355_s5 = scalar_lea.vmem %s356_s6, 4096 }
  0x42   : > { %p2356_p7 = scmp.ne.s32.totalorder %s356_s6, %s2355_s5  ;;  %s2527_s30 = smov [#allocation2]  }
  0x43   : > { %s2360_s12 = sshll.u32 %s2527_s30, 4  ;;  %s2361_s12 = int_to_ptr.vmem [resolvable:$false] %s2360_s12 }
  0x44   : > { %s354_s26 = scalar_lea.hbm %s3425_s4, %s1951_s18  ;;  %p2358_p9 = pnand %p2356_p7, %p2316_p3 }
  0x45   : > { %s2362_s11 = scalar_lea.vmem %s2361_s12, 8192  ;;  %p2363_p10 = scmp.lt.s32.totalorder %s356_s6, %s2361_s12 }
  0x46   : > { %p2359_p5 = pneg %p2358_p9  ;;  %p2364_p11 = scmp.lt.s32.totalorder %s2362_s11, %s2355_s5 }
  0x48   : > { %p2365_p13 = por %p2364_p11, %p2363_p10 }
  0x4a   : > { %p2366_p0 = pnand %p2365_p13, %p2359_p5 }
  0x4c   : > { %2369 = shalt.err (!%p2366_p0)
}
  0x4d   : > { %s3426_s18 = smov 128   ;;  %s1953_s24 = sshll.u32 %s2514_s17, 13 }
  0x4e   : > { %2168 = dma.hbm_to_vmem [thread:$0]  (!%p2696_p4), %s354_s26, 4096, %s356_s6, %s345_s7, %s3426_s18, %s3426_s18, %s2526_s27  }
  0x4f   : > { %s3427_s8 = sld [smem:[#allocation29_spill]]  ;;  %s406_s14 = scalar_lea.vmem [#allocation7], %s1903_s2 }
  0x50   : > { %s413_s30 = sshll.u32 %s406_s14, 4  ;;  %s2528_s11 = smov [#allocation7]   ;;  %s414_s30 = int_to_ptr.vmem [resolvable:$true] %s413_s30 }
  0x51   : > { %s2383_s5 = scalar_lea.vmem %s414_s30, 8192  ;;  %s2388_s12 = sshll.u32 %s2528_s11, 4  ;;  %s2389_s12 = int_to_ptr.vmem [resolvable:$false] %s2388_s12 }
  0x52   : > { %p2384_p1 = scmp.ne.s32.totalorder %s414_s30, %s2383_s5  ;;  %s2390_s4 = scalar_lea.vmem %s2389_s12, 16384 }
  0x53   : > { %p2391_p5 = scmp.lt.s32.totalorder %s414_s30, %s2389_s12  ;;  %p2392_p10 = scmp.lt.s32.totalorder %s2390_s4, %s2383_s5 }
  0x54   : > { %p2386_p7 = pnand %p2384_p1, %p2316_p3 }
  0x55   : > { %s412_s21 = scalar_lea.hbm %s3427_s8, %s1953_s24  ;;  %p2393_p11 = por %p2392_p10, %p2391_p5 }
  0x56   : > { %p2387_p9 = pneg %p2386_p7 }
  0x58   : > { %p2394_p13 = pnand %p2393_p11, %p2387_p9 }
  0x5a   : > { %2397 = shalt.err (!%p2394_p13)
}
  0x5b   : > { %2174 = dma.hbm_to_vmem [thread:$0]  (!%p2696_p4), %s412_s21, 8192, %s414_s30, %s2709_s23, %s3426_s18, %s3426_s18, %s2526_s27  }
  0x5c   : > { %425 = sbr.rel (%p2725_p6) target bundleno = 1044 (0x414), region = 56  ;;  %s2762_s2 = sand.u32 (!%p2725_p6), 1, %s2498_s13  }
  0x5d   : > { %s1907_s4 = sshll.u32 (!%p2725_p6), %s2762_s2, 8  ;;  %s428_s6 = scalar_lea.sflag (!%p2725_p6), [#allocation3], %s2762_s2 }
  0x5e   : > { %s2766_s7 = scalar_lea.vmem (!%p2725_p6), [#allocation2], %s1907_s4 }
  0x61   : > { %2469 = dma.done.wait (%p2665_p8), %s428_s6, 4096  }
  0x62   : > { %2471 = vsyncadd (%p2665_p8), %s428_s6, 4294963200  ;;  %s436_s23 = sand.u32 1, %s2640_s20   ;;  %s2773_s27 = scalar_lea.vmem [#allocation5], %s1907_s4 }
  0x63   : > { %s437_s22 = scalar_lea.sflag [#allocation6], %s436_s23 }
  0x64   : > { %2473 = dma.done.wait (%p2665_p8), %s437_s22, 12288  }
  0x65   : > { %2475 = vsyncadd (%p2665_p8), %s437_s22, 4294955008  ;;  %s1909_s9 = sshll.u32 %s2762_s2, 9  ;;  %s3396_s26 = sand.u32 1, %s2486_s10  }
  0x66   : > { %s1910_s18 = sshll.u32 %s3396_s26, 3  ;;  %p521_p4 = scmp.lt.s32.totalorder %s2510_s16, 1 }
  0x67   : > { %p525_p3 = scmp.lt.s32.totalorder %s2506_s15, 3  ;;  %s3428_s17 = sld [smem:[#allocation26_spill]] }
  0x68   : > { %s522_s20 = scalar_select %p521_p4, %s2510_s16, 1 }
  0x69   : > { %s526_s24 = scalar_select %p525_p3, %s2506_s15, 3 }
  0x6a   : > { %s1911_s29 = sshll.u32 %s522_s20, 3  ;;  %s2810_s12 = scalar_lea.vmem [#allocation8], %s1910_s18 }
  0x6b   : > { %s524_s28 = scalar_lea.vmem %s3374_s0, %s1911_s29  ;;  %s1912_s14 = sshll.u32 %s526_s24, 1 }
  0x6c   : > { %s530_s30 = sadd.s32 %s1912_s14, %s522_s20  ;;  %s1954_s5 = sshll.u32 %s526_s24, 5 }
  0x6d   : > { %s1913_s11 = sshll.u32 %s530_s30, 3  ;;  %s537_s2 = scalar_lea.vmem %s3377_s3, %s1954_s5 }
  0x6e   : > { %s2796_s22 = scalar_lea.vmem %s3375_s1, %s1913_s11  ;;  %s2801_s13 = scalar_lea.vmem %s3428_s17, %s1954_s5 }
  0x6f   : > { %s1956_s25 = sshll.u32 %s526_s24, 6  ;;  %s3429_s20 = sld [smem:[#allocation28_spill]] }
  0x70   : > { %s2808_s30 = scalar_lea.vmem [#allocation7], %s1909_s9  ;;  %p1920_p8 = scmp.ne.s32.totalorder %s2506_s15, 0 }
  0x72   : > { %551 = sbr.rel (%p1920_p8) target bundleno = 121 (0x79), region = 72 }
  0x75   : > { %s2806_s14 = scalar_lea.vmem %s3429_s20, %s1956_s25 }
  0x77   : > { %v552_v0 = vld [vmem:[%s524_s28] sm:$0xff]  ;;  %vm553_vm0 = vcmask 261120  }
  0x78   : > { %554 = vst.msk [vmem:[%s2810_s12] sm:$0xff] %vm553_vm0, %v552_v0 }
  0x79 PF: > { %v2814_v1 = vld [vmem:[%s524_s28] sm:$0xff]  ;;  %vm558_vm1 = vcmask 261120   ;;  %v2529_v4 = vmov 0.0   ;;  %v577_v5 = vld [vmem:[%s537_s2 + $0x18] sm:$0xff]  ;;  %v576_v6 = vld [vmem:[%s537_s2 + $0x10] sm:$0xff]  ;;  %vm2530_vm2 = vmmov 0  }
  0x7a   : > { %v557_v2 = vmul.f32 %v2814_v1, %v2814_v1  ;;  %2116 = vmatprep.subr.mxu1 %v2529_v4  ;;  %2124 = vmatprep.mubr.msk.f32.mxu1 %vm2530_vm2, %v2529_v4  ;;  %v575_v7 = vld [vmem:[%s537_s2 + $0x8] sm:$0xff]  ;;  %v574_v8 = vld [vmem:[%s537_s2] sm:$0xff]  ;;  %v1026_v9 = vld [vmem:[%s2773_s27 + $0xf8] sm:$0xff]  ;;  %s3430_s17 = sld [smem:[#allocation24_spill]]  ;;  %s2531_s9 = smov 64  }
  0x7b   : > { %2117 = vmatpush3.msra.mxu1 %v577_v5  ;;  %v609_v10 = vld [vmem:[%s2766_s7 + $0xf8] sm:$0xff]  ;;  %v608_v12 = vld [vmem:[%s2766_s7 + $0xf0] sm:$0xff]  ;;  %v607_v14 = vld [vmem:[%s2766_s7 + $0xe8] sm:$0xff]  ;;  %s2533_s26 = smov 96   ;;  %s1703_s18 = sshll.u32 %s2810_s12, 4  ;;  %s1704_s18 = int_to_ptr.vmem [resolvable:$true] %s1703_s18 }
  0x7c   : > { %v559_v3 = vsel %vm558_vm1, %v557_v2, 0.0  ;;  %2118 = vmatprep.subr.mxu1 %v2529_v4  ;;  %1957 = vmatprep.subr.mxu0 %v609_v10  ;;  %v593_v11 = vld [vmem:[%s2766_s7 + $0x78] sm:$0xff]  ;;  %v592_v13 = vld [vmem:[%s2766_s7 + $0x70] sm:$0xff]  ;;  %v591_v15 = vld [vmem:[%s2766_s7 + $0x68] sm:$0xff]  ;;  %s3432_s5 = sld [smem:[#allocation30_spill]]  ;;  %s3433_s4 = sand.u32 1, %s2486_s10  }
  0x7d   : > { %560 = vadd.xlane.f32.xlu0 %v559_v3  ;;  %2119 = vmatpush3.msra.mxu1 %v576_v6  ;;  %v606_v16 = vld [vmem:[%s2766_s7 + $0xe0] sm:$0xff]  ;;  %v605_v18 = vld [vmem:[%s2766_s7 + $0xd8] sm:$0xff]  ;;  %v604_v20 = vld [vmem:[%s2766_s7 + $0xd0] sm:$0xff]  ;;  %s1690_s2 = scalar_lea.sflag [#allocation4], %s3433_s4  ;;  %s2398_s6 = scalar_lea.vmem %s1704_s18, 128 }
  0x7e   : > { %2120 = vmatprep.subr.mxu1 %v2529_v4  ;;  %1958 = vmatpush3.msra.mxu0 %v593_v11  ;;  %v590_v17 = vld [vmem:[%s2766_s7 + $0x60] sm:$0xff]  ;;  %v589_v19 = vld [vmem:[%s2766_s7 + $0x58] sm:$0xff]  ;;  %v588_v21 = vld [vmem:[%s2766_s7 + $0x50] sm:$0xff]  ;;  %p2399_p6 = scmp.ne.s32.totalorder %s1704_s18, %s2398_s6  ;;  %s2535_s23 = smov [#allocation8]  }
  0x7f   : > { %2121 = vmatpush3.msra.mxu1 %v575_v7  ;;  %1959 = vmatprep.subr.mxu0 %v608_v12  ;;  %v603_v22 = vld [vmem:[%s2766_s7 + $0xc8] sm:$0xff]  ;;  %v602_v24 = vld [vmem:[%s2766_s7 + $0xc0] sm:$0xff]  ;;  %v601_v26 = vld [vmem:[%s2766_s7 + $0xb8] sm:$0xff] }
  0x80   : > { %2122 = vmatprep.subr.mxu1 %v2529_v4  ;;  %1960 = vmatpush3.msra.mxu0 %v592_v13  ;;  %v587_v23 = vld [vmem:[%s2766_s7 + $0x48] sm:$0xff]  ;;  %v586_v25 = vld [vmem:[%s2766_s7 + $0x40] sm:$0xff]  ;;  %v585_v27 = vld [vmem:[%s2766_s7 + $0x38] sm:$0xff]  ;;  %p2400_p0 = pnand %p2399_p6, %p2678_p12 }
  0x81   : > { %2123 = vmatpush3.msra.mxu1 %v574_v8  ;;  %1961 = vmatprep.subr.mxu0 %v607_v14  ;;  %v600_v28 = vld [vmem:[%s2766_s7 + $0xb0] sm:$0xff]  ;;  %v599_v30 = vld [vmem:[%s2766_s7 + $0xa8] sm:$0xff]  ;;  %v598_v32 = vld [vmem:[%s2766_s7 + $0xa0] sm:$0xff] }
  0x82   : > { %1997 = vmatprep.subr.mxu1 %v1026_v9  ;;  %1962 = vmatpush3.msra.mxu0 %v591_v15  ;;  %v584_v29 = vld [vmem:[%s2766_s7 + $0x30] sm:$0xff]  ;;  %v583_v31 = vld [vmem:[%s2766_s7 + $0x28] sm:$0xff]  ;;  %v582_v33 = vld [vmem:[%s2766_s7 + $0x20] sm:$0xff]  ;;  %p2401_p1 = pneg %p2400_p0 }
  0x83   : > { %1963 = vmatprep.subr.mxu0 %v606_v16  ;;  %v1921_v38 = vld [vmem:[%s3430_s17] ss:$0 sm:$0xff] }
  0x84   : > { %1964 = vmatpush3.msra.mxu0 %v590_v17 }
  0x85   : > { %1965 = vmatprep.subr.mxu0 %v605_v18 }
  0x86   : > { %1966 = vmatpush3.msra.mxu0 %v589_v19 }
  0x87   : > { %1967 = vmatprep.subr.mxu0 %v604_v20 }
  0x88   : > { %1968 = vmatpush3.msra.mxu0 %v588_v21 }
  0x89   : > { %1969 = vmatprep.subr.mxu0 %v603_v22 }
  0x8a   : > { %1970 = vmatpush3.msra.mxu0 %v587_v23 }
  0x8b   : > { %1971 = vmatprep.subr.mxu0 %v602_v24 }
  0x8c   : > { %1972 = vmatpush3.msra.mxu0 %v586_v25 }
  0x8d   : > { %1973 = vmatprep.subr.mxu0 %v601_v26 }
  0x8e   : > { %1974 = vmatpush3.msra.mxu0 %v585_v27 }
  0x8f   : > { %1975 = vmatprep.subr.mxu0 %v600_v28 }
  0x90   : > { %1976 = vmatpush3.msra.mxu0 %v584_v29 }
  0x91   : > { %1977 = vmatprep.subr.mxu0 %v599_v30 }
  0x92   : > { %1978 = vmatpush3.msra.mxu0 %v583_v31 }
  0x93   : > { %1979 = vmatprep.subr.mxu0 %v598_v32 }
  0x94   : > { %1980 = vmatpush3.msra.mxu0 %v582_v33 }
 0x106   : > { %v561_v34 = vpop.xlane.xlu0 %560 }
 0x107   : > { %v563_v35 = vmul.f32 0.03125, %v561_v34 }
 0x109   : > { %v564_v36 = vadd.f32 1e-06, %v563_v35 }
 0x10b   : > { %2304 = vrsqrt.f32 %v564_v36 }
 0x118   : > { %v2305_v37 = vpop.eup %2304 }
 0x119   : > { %v566_v39 = vmul.f32 %v2305_v37, %v2814_v1 }
 0x11b   : > { %v2854_v40 = vmul.f32 %v1921_v38, %v566_v39 }
 0x11d   : > { %vm625_vm3 = vcmp.ge.f32.partialorder %v2854_v40, -1.4  ;;  %vm626_vm4 = vcmp.lt.f32.partialorder %v2854_v40, -1.0  ;;  %vm629_vm5 = vcmp.ge.f32.partialorder %v2854_v40, -1.0  ;;  %vm630_vm6 = vcmp.lt.f32.partialorder %v2854_v40, -0.6 }
 0x11e   : > { %vm627_vm7 = vmand %vm625_vm3, %vm626_vm4  ;;  %vm633_vm8 = vcmp.ge.f32.partialorder %v2854_v40, -0.6  ;;  %vm634_vm9 = vcmp.lt.f32.partialorder %v2854_v40, -0.19999999  ;;  %vm637_vm10 = vcmp.ge.f32.partialorder %v2854_v40, -0.19999999 }
 0x11f   : > { %v2864_v41 = vsel %vm627_vm7, 1.0, %v2529_v4  ;;  %vm631_vm11 = vmand %vm629_vm5, %vm630_vm6  ;;  %vm638_vm12 = vcmp.lt.f32.partialorder %v2854_v40, 0.20000005  ;;  %vm641_vm13 = vcmp.ge.f32.partialorder %v2854_v40, 0.20000005  ;;  %vm646_vm3 = vcmp.lt.f32.partialorder %v2854_v40, 1.0 }
 0x120   : > { %v632_v42 = vsel %vm631_vm11, 1.0, %v2529_v4  ;;  %vm635_vm14 = vmand %vm633_vm8, %vm634_vm9  ;;  %vm642_vm15 = vcmp.lt.f32.partialorder %v2854_v40, 0.6  ;;  %vm645_vm0 = vcmp.ge.f32.partialorder %v2854_v40, 0.6  ;;  %vm649_vm7 = vcmp.ge.f32.partialorder %v2854_v40, 1.0 }
 0x121   : > { %v636_v43 = vsel %vm635_vm14, 1.0, %v2529_v4  ;;  %vm639_vm4 = vmand %vm637_vm10, %vm638_vm12  ;;  %vm650_vm5 = vcmp.lt.f32.partialorder %v2854_v40, 1.4000001  ;;  %v671_v44 = vsub.f32 -1.0, %v2854_v40  ;;  %vm653_vm8 = vcmp.ge.f32.partialorder %v2854_v40, 1.4000001 }
 0x122   : > { %v2877_v45 = vsel %vm639_vm4, 1.0, %v2529_v4  ;;  %vm643_vm6 = vmand %vm641_vm13, %vm642_vm15  ;;  %v2881_v46 = vadd.f32 1.4, %v2854_v40  ;;  %v2884_v47 = vadd.f32 1.0, %v2854_v40  ;;  %vm654_vm10 = vcmp.lt.f32.partialorder %v2854_v40, 1.8 }
 0x123   : > { %vm647_vm9 = vmand %vm645_vm0, %vm646_vm3  ;;  %v672_v48 = vmul.f32 2.5000002, %v671_v44  ;;  %v2890_v49 = vsub.f32 -0.6, %v2854_v40  ;;  %v2893_v50 = vsel %vm643_vm6, 1.0, %v2529_v4  ;;  %v2898_v53 = vsub.f32 1.0, %v2854_v40 }
 0x124   : > { %vm651_vm11 = vmand %vm649_vm7, %vm650_vm5  ;;  %v676_v51 = vmul.f32 2.5000002, %v2881_v46  ;;  %v683_v52 = vmul.f32 2.5000002, %v2884_v47  ;;  %v648_v54 = vsel %vm647_vm9, 1.0, %v2529_v4  ;;  %v2906_v57 = vadd.f32 -1.0, %v2854_v40 }
 0x125   : > { %v679_v55 = vmul.f32 2.5000002, %v2890_v49  ;;  %v2903_v56 = vsub.f32 -0.19999999, %v2854_v40  ;;  %v652_v58 = vsel %vm651_vm11, 1.0, %v2529_v4  ;;  %vm655_vm12 = vmand %vm653_vm8, %vm654_vm10  ;;  %v746_v61 = vmul.f32 1.25, %v2884_v47 }
 0x126   : > { %v677_v59 = vmul.f32 %v676_v51, %v2864_v41  ;;  %v2913_v60 = vadd.f32 0.6, %v2854_v40  ;;  %v684_v63 = vmul.f32 %v683_v52, %v632_v42  ;;  %v692_v1 = vsub.f32 0.20000005, %v2854_v40 }
 0x127   : > { %v680_v62 = vmul.f32 %v679_v55, %v632_v42  ;;  %v686_v0 = vmul.f32 2.4999998, %v2903_v56  ;;  %v1929_v3 = vadd.f32 -0.20000005, %v2854_v40  ;;  %v707_v5 = vmul.f32 2.5000002, %v2898_v53 }
 0x128   : > { %v690_v2 = vmul.f32 2.4999998, %v2913_v60  ;;  %v2922_v6 = vsel %vm655_vm12, 1.0, %v2529_v4  ;;  %v693_v8 = vmul.f32 2.4999998, %v692_v1  ;;  %v2945_v25 = vmul.f32 %v672_v48, %v2864_v41 }
 0x129   : > { %v687_v7 = vmul.f32 %v686_v0, %v636_v43  ;;  %v2925_v9 = vsub.f32 0.6, %v2854_v40  ;;  %v704_v11 = vmul.f32 2.5000002, %v1929_v3  ;;  %v708_v12 = vmul.f32 %v707_v5, %v648_v54 }
 0x12a   : > { %v691_v10 = vmul.f32 %v690_v2, %v636_v43  ;;  %v2928_v13 = vadd.f32 -0.6, %v2854_v40  ;;  %v2930_v14 = vadd.f32 %v680_v62, %v677_v59  ;;  %v694_v16 = vmul.f32 %v693_v8, %v2877_v45 }
 0x12b   : > { %v688_v15 = vadd.f32 %v687_v7, %v684_v63  ;;  %v2934_v17 = vsub.f32 1.4000001, %v2854_v40  ;;  %v705_v18 = vmul.f32 %v704_v11, %v2893_v50  ;;  %v718_v20 = vmul.f32 2.4999995, %v2906_v57 }
 0x12c   : > { %v711_v19 = vmul.f32 2.5000002, %v2928_v13  ;;  %v720_v21 = vsub.f32 1.8, %v2854_v40  ;;  %v2940_v22 = vadd.f32 %v694_v16, %v691_v10  ;;  %v741_v24 = vmul.f32 1.2500001, %v2881_v46 }
 0x12d   : > { %v714_v23 = vmul.f32 2.4999995, %v2934_v17  ;;  %v709_v26 = vadd.f32 %v708_v12, %v705_v18  ;;  %v719_v28 = vmul.f32 %v718_v20, %v652_v58  ;;  %v700_v30 = vmul.f32 2.5000002, %v2925_v9 }
 0x12e   : > { %v712_v27 = vmul.f32 %v711_v19, %v648_v54  ;;  %v721_v29 = vmul.f32 2.500001, %v720_v21  ;;  %v742_v32 = vmul.f32 %v741_v24, %v2930_v14  ;;  %v743_v33 = vmul.f32 1.25, %v2903_v56 }
 0x12f   : > { %v715_v31 = vmul.f32 %v714_v23, %v652_v58  ;;  %v747_v35 = vmul.f32 %v746_v61, %v688_v15  ;;  %v748_v36 = vmul.f32 1.2499999, %v692_v1  ;;  %v761_v37 = vmul.f32 1.2500001, %v1929_v3 }
 0x130   : > { %v722_v34 = vmul.f32 %v721_v29, %v2922_v6  ;;  %v1932_v39 = vadd.f32 -1.4000001, %v2854_v40  ;;  %v744_v41 = vmul.f32 %v743_v33, %v688_v15  ;;  %v763_v42 = vmul.f32 1.2499999, %v2934_v17 }
 0x131   : > { %v716_v38 = vadd.f32 %v715_v31, %v712_v27  ;;  %v749_v48 = vmul.f32 %v748_v36, %v2940_v22  ;;  %v762_v51 = vmul.f32 %v761_v37, %v709_v26  ;;  %v766_v52 = vmul.f32 1.2499999, %v2928_v13 }
 0x132   : > { %v2953_v43 = vadd.f32 %v722_v34, %v719_v28  ;;  %v745_v54 = vadd.f32 %v744_v41, %v742_v32  ;;  %v768_v58 = vmul.f32 1.2500001, %v720_v21  ;;  %v786_v59 = vmul.f32 0.8333333, %v2881_v46 }
 0x133   : > { %v764_v55 = vmul.f32 %v763_v42, %v716_v38  ;;  %v2958_v61 = vadd.f32 %v749_v48, %v747_v35  ;;  %v767_v62 = vmul.f32 %v766_v52, %v716_v38  ;;  %v788_v63 = vmul.f32 0.8333333, %v692_v1 }
 0x134   : > { %v806_v0 = vmul.f32 0.8333333, %v1929_v3  ;;  %v769_v5 = vmul.f32 %v768_v58, %v2953_v43  ;;  %v787_v7 = vmul.f32 %v786_v59, %v745_v54  ;;  %v808_v8 = vmul.f32 0.8333334, %v720_v21 }
 0x135   : > { %v765_v2 = vadd.f32 %v764_v55, %v762_v51  ;;  %v789_v10 = vmul.f32 %v788_v63, %v2958_v61  ;;  %vm621_vm13 = vcmp.ge.f32.partialorder %v2854_v40, -1.8  ;;  %vm622_vm14 = vcmp.lt.f32.partialorder %v2854_v40, -1.4 }
 0x136   : > { %v664_v11 = vsub.f32 -1.4, %v2854_v40  ;;  %v2965_v12 = vadd.f32 %v769_v5, %v767_v62  ;;  %vm623_vm15 = vmand %vm621_vm13, %vm622_vm14  ;;  %v1924_v1 = vadd.f32 1.8, %v2854_v40  ;;  %v1928_v3 = vadd.f32 0.19999999, %v2854_v40 }
 0x137   : > { %v807_v46 = vmul.f32 %v806_v0, %v765_v2  ;;  %v701_v15 = vmul.f32 %v700_v30, %v2893_v50  ;;  %v725_v16 = vmul.f32 2.500001, %v1932_v39  ;;  %v624_v18 = vsel %vm623_vm15, 1.0, %v2529_v4  ;;  %v581_v0 = vld [vmem:[%s2766_s7 + $0x18] sm:$0xff]  ;;  %v596_v5 = vld [vmem:[%s2766_s7 + $0x90] sm:$0xff] }
 0x138   : > { %v738_v19 = vmul.f32 1.2500001, %v2890_v49  ;;  %v790_v20 = vadd.f32 %v789_v10, %v787_v7  ;;  %v809_v21 = vmul.f32 %v808_v8, %v2965_v12  ;;  %v669_v23 = vmul.f32 2.5000002, %v1924_v1 }
 0x139   : > { %v697_v24 = vmul.f32 2.4999998, %v1928_v3  ;;  %v665_v27 = vmul.f32 2.5000002, %v664_v11  ;;  %v736_v28 = vmul.f32 1.2500001, %v1924_v1  ;;  %v726_v42 = vmul.f32 %v725_v16, %v2922_v6 }
 0x13a   : > { %v739_v29 = vmul.f32 %v738_v19, %v2930_v14  ;;  %v758_v31 = vmul.f32 1.2500001, %v2898_v53  ;;  %v810_v32 = vadd.f32 %v809_v21, %v807_v46  ;;  %v670_v33 = vmul.f32 %v669_v23, %v624_v18  ;;  %v597_v6 = vld [vmem:[%s2766_s7 + $0x98] sm:$0xff]  ;;  %v579_v19 = vld [vmem:[%s2766_s7 + $0x8] sm:$0xff] }
 0x13b   : > { %v698_v50 = vmul.f32 %v697_v24, %v2877_v45  ;;  %v756_v30 = vmul.f32 1.25, %v1928_v3  ;;  %v781_v35 = vmul.f32 0.8333334, %v1924_v1  ;;  %v783_v36 = vmul.f32 0.8333333, %v2903_v56  ;;  %1981 = vmatprep.subr.mxu0 %v597_v6  ;;  %v594_v24 = vld [vmem:[%s2766_s7 + $0x80] sm:$0xff] }
 0x13c   : > { %v759_v34 = vmul.f32 %v758_v31, %v709_v26  ;;  %v801_v37 = vmul.f32 0.8333333, %v1928_v3  ;;  %v2282_v38 = vpack.i.bf16 %v790_v20, %v810_v32  ;;  %v2978_v39 = vadd.f32 %v2945_v25, %v670_v33  ;;  %1982 = vmatpush3.msra.mxu0 %v581_v0  ;;  %v595_v3 = vld [vmem:[%s2766_s7 + $0x88] sm:$0xff]  ;;  %v1023_v0 = vld [vmem:[%s2773_s27 + $0xe0] sm:$0xff] }
 0x13d   : > { %v702_v41 = vadd.f32 %v701_v15, %v698_v50  ;;  %v803_v14 = vmul.f32 0.8333333, %v2934_v17  ;;  %vm657_vm0 = vcmp.ge.f32.partialorder %v2854_v40, 1.8  ;;  %vm658_vm3 = vcmp.lt.f32.partialorder %v2854_v40, 2.2  ;;  %1983 = vmatprep.subr.mxu0 %v596_v5 }
 0x13e   : > { %v727_v45 = vsub.f32 2.2, %v2854_v40  ;;  %2283 = vrot.lane.b32.xlu1 %v2282_v38, %s2531_s9  ;;  %v737_v56 = vmul.f32 %v736_v28, %v2978_v39  ;;  %vm659_vm4 = vmand %vm657_vm0, %vm658_vm3  ;;  %v751_v26 = vmul.f32 1.2499999, %v2913_v60  ;;  %v753_v17 = vmul.f32 1.25, %v2925_v9  ;;  %v1022_v5 = vld [vmem:[%s2773_s27 + $0xd8] sm:$0xff] }
 0x13f   : > { %v757_v25 = vmul.f32 %v756_v30, %v702_v41  ;;  %v784_v48 = vmul.f32 %v783_v36, %v745_v54  ;;  %v804_v51 = vmul.f32 %v803_v14, %v765_v2  ;;  %v660_v52 = vsel %vm659_vm4, 1.0, %v2529_v4  ;;  %v580_v54 = vld [vmem:[%s2766_s7 + $0x10] sm:$0xff] }
 0x140   : > { %v728_v55 = vmul.f32 2.4999995, %v727_v45  ;;  %v740_v58 = vadd.f32 %v739_v29, %v737_v56  ;;  %v752_v62 = vmul.f32 %v751_v26, %v2940_v22  ;;  %v754_v63 = vmul.f32 %v753_v17, %v702_v41  ;;  %1984 = vmatpush3.msra.mxu0 %v580_v54  ;;  %v1020_v54 = vld [vmem:[%s2773_s27 + $0xc8] sm:$0xff] }
 0x141   : > { %v760_v59 = vadd.f32 %v759_v34, %v757_v25  ;;  %v666_v7 = vmul.f32 %v665_v27, %v624_v18  ;;  %v771_v10 = vmul.f32 1.2500001, %v2906_v57  ;;  %v791_v1 = vmul.f32 0.8333333, %v2884_v47  ;;  %1985 = vmatprep.subr.mxu0 %v595_v3  ;;  %v578_v27 = vld [vmem:[%s2766_s7] sm:$0xff]  ;;  %s2532_s7 = smov 32  }
 0x142   : > { %v729_v8 = vmul.f32 %v728_v55, %v660_v52  ;;  %v782_v2 = vmul.f32 %v781_v35, %v740_v58  ;;  %v755_v46 = vadd.f32 %v754_v63, %v752_v62  ;;  %v773_v16 = vmul.f32 1.2500001, %v727_v45  ;;  %1986 = vmatpush3.msra.mxu0 %v579_v19  ;;  %v1010_v55 = vld [vmem:[%s2773_s27 + $0x78] sm:$0xff]  ;;  %v1024_v62 = vld [vmem:[%s2773_s27 + $0xe8] sm:$0xff]  ;;  %v1015_v19 = vld [vmem:[%s2773_s27 + $0xa0] sm:$0xff] }
 0x143   : > { %v802_v11 = vmul.f32 %v801_v37, %v760_v59  ;;  %v772_v15 = vmul.f32 %v771_v10, %v2953_v43  ;;  %v793_v18 = vmul.f32 0.8333333, %v2925_v9  ;;  %v792_v21 = vmul.f32 %v791_v1, %v2958_v61  ;;  %1987 = vmatprep.subr.mxu0 %v594_v24  ;;  %v1008_v63 = vld [vmem:[%s2773_s27 + $0x68] sm:$0xff]  ;;  %v1005_v10 = vld [vmem:[%s2773_s27 + $0x50] sm:$0xff]  ;;  %v1018_v1 = vld [vmem:[%s2773_s27 + $0xb8] sm:$0xff] }
 0x144   : > { %v730_v22 = vadd.f32 %v729_v8, %v726_v42  ;;  %v785_v57 = vadd.f32 %v784_v48, %v782_v2  ;;  %v1922_v23 = vmul.f32 -1.442695, %v2854_v40  ;;  %v811_v29 = vmul.f32 0.8333334, %v2928_v13  ;;  %1988 = vmatpush3.msra.mxu0 %v578_v27  ;;  %v1021_v8 = vld [vmem:[%s2773_s27 + $0xd0] sm:$0xff]  ;;  %v1004_v2 = vld [vmem:[%s2773_s27 + $0x48] sm:$0xff] }
 0x145   : > { %v805_v20 = vadd.f32 %v804_v51, %v802_v11  ;;  %v794_v28 = vmul.f32 %v793_v18, %v755_v46  ;;  %v1923_v43 = vadd.f32 2.2, %v2854_v40  ;;  %v733_v9 = vmul.f32 1.2500001, %v671_v44  ;;  %v1019_v11 = vld [vmem:[%s2773_s27 + $0xc0] sm:$0xff]  ;;  %v1002_v3 = vld [vmem:[%s2773_s27 + $0x38] sm:$0xff] }
 0x146   : > { %v774_v47 = vmul.f32 %v773_v16, %v730_v22  ;;  %2306 = vpow2.f32 %v1922_v23  ;;  %v778_v32 = vmul.f32 0.8333334, %v2890_v49  ;;  %v812_v33 = vmul.f32 %v811_v29, %v2965_v12  ;;  %v1017_v22 = vld [vmem:[%s2773_s27 + $0xb0] sm:$0xff]  ;;  %v1016_v16 = vld [vmem:[%s2773_s27 + $0xa8] sm:$0xff]  ;;  %v995_v29 = vld [vmem:[%s2773_s27] sm:$0xff] }
 0x147   : > { %v2277_v31 = vpack.i.bf16 %v785_v57, %v805_v20  ;;  %v813_v50 = vmul.f32 0.8333333, %v727_v45  ;;  %v662_v30 = vmul.f32 2.4999995, %v1923_v43  ;;  %vm617_vm7 = vcmp.ge.f32.partialorder %v2854_v40, -2.2 }
 0x148   : > { %v775_v61 = vadd.f32 %v774_v47, %v772_v15  ;;  %vm618_vm5 = vcmp.lt.f32.partialorder %v2854_v40, -1.8  ;;  %v734_v13 = vmul.f32 %v733_v9, %v2978_v39  ;;  %v779_v34 = vmul.f32 %v778_v32, %v740_v58  ;;  %v1025_v58 = vld [vmem:[%s2773_s27 + $0xf0] sm:$0xff]  ;;  %v1000_v18 = vld [vmem:[%s2773_s27 + $0x28] sm:$0xff]  ;;  %v999_v57 = vld [vmem:[%s2773_s27 + $0x20] sm:$0xff] }
 0x149   : > { %2278 = vrot.lane.b32.xlu0 %v2277_v31, %s2532_s7  ;;  %v795_v35 = vadd.f32 %v794_v28, %v792_v21  ;;  %vm619_vm6 = vmand %vm617_vm7, %vm618_vm5  ;;  %v796_v49 = vmul.f32 0.8333333, %v2913_v60  ;;  %v798_v36 = vmul.f32 0.8333333, %v2898_v53  ;;  %v731_v45 = vmul.f32 1.2499999, %v1923_v43 }
 0x14a   : > { %v814_v44 = vmul.f32 %v813_v50, %v775_v61  ;;  %v620_v12 = vsel %vm619_vm6, 1.0, %v2529_v4  ;;  %v776_v25 = vmul.f32 0.8333333, %v1923_v43  ;;  %v1001_v15 = vld [vmem:[%s2773_s27 + $0x30] sm:$0xff]  ;;  %v1014_v20 = vld [vmem:[%s2773_s27 + $0x98] sm:$0xff]  ;;  %v1012_v27 = vld [vmem:[%s2773_s27 + $0x88] sm:$0xff] }
 0x14b   : > { %v663_v38 = vmul.f32 %v662_v30, %v620_v12  ;;  %v797_v41 = vmul.f32 %v796_v49, %v755_v46  ;;  %v799_v14 = vmul.f32 %v798_v36, %v760_v59  ;;  %v1009_v59 = vld [vmem:[%s2773_s27 + $0x70] sm:$0xff]  ;;  %v1003_v46 = vld [vmem:[%s2773_s27 + $0x40] sm:$0xff]  ;;  %v998_v21 = vld [vmem:[%s2773_s27 + $0x18] sm:$0xff]  ;;  %vm841_vm8 = vcmask 523264  }
 0x14c   : > { %v815_v37 = vadd.f32 %v814_v44, %v812_v33  ;;  %v1013_v23 = vld [vmem:[%s2773_s27 + $0x90] sm:$0xff]  ;;  %v996_v47 = vld [vmem:[%s2773_s27 + $0x8] sm:$0xff]  ;;  %v1011_v28 = vld [vmem:[%s2773_s27 + $0x80] sm:$0xff]  ;;  %vm843_vm9 = vcmask 785408  }
 0x14d   : > { %v667_v56 = vadd.f32 %v666_v7, %v663_v38  ;;  %v3017_v39 = vadd.f32 %v799_v14, %v797_v41  ;;  %v1006_v7 = vld [vmem:[%s2773_s27 + $0x58] sm:$0xff]  ;;  %v997_v24 = vld [vmem:[%s2773_s27 + $0x10] sm:$0xff]  ;;  %v992_v41 = vld [vmem:[%s2801_s13 + $0x8] sm:$0xff] }
 0x14e   : > { %v2287_v42 = vpack.i.bf16 %v795_v35, %v815_v37  ;;  %v994_v37 = vld [vmem:[%s2801_s13 + $0x18] sm:$0xff]  ;;  %v993_v38 = vld [vmem:[%s2801_s13 + $0x10] sm:$0xff]  ;;  %v991_v14 = vld [vmem:[%s2801_s13] sm:$0xff] }
 0x14f   : > { %v732_v60 = vmul.f32 %v731_v45, %v667_v56  ;;  %v1207_v56 = vld [vmem:[%s2808_s30 + $0xf8] sm:$0xff] }
 0x150   : > { %2288 = vrot.lane.b32.xlu1 %v2287_v42, %s2533_s26  ;;  %2037 = vmatprep.subr.mxu0 %v1207_v56 }
 0x151   : > { %v735_v53 = vadd.f32 %v734_v13, %v732_v60  ;;  %v1206_v60 = vld [vmem:[%s2808_s30 + $0xf0] sm:$0xff] }
 0x153   : > { %v2307_v26 = vpop.eup %2306  ;;  %v777_v17 = vmul.f32 %v776_v25, %v735_v53  ;;  %v1190_v25 = vld [vmem:[%s2808_s30 + $0x70] sm:$0xff]  ;;  %v1205_v53 = vld [vmem:[%s2808_s30 + $0xe8] sm:$0xff] }
 0x154   : > { %v613_v6 = vadd.f32 1.0, %v2307_v26  ;;  %v1239_v26 = vld [vmem:[%s2808_s30 + $0x1f8] sm:$0xff] }
 0x155   : > { %v3019_v48 = vadd.f32 %v779_v34, %v777_v17  ;;  %v1223_v17 = vld [vmem:[%s2808_s30 + $0x178] sm:$0xff] }
 0x156   : > { %2308 = vrcp.f32 %v613_v6  ;;  %v1189_v6 = vld [vmem:[%s2808_s30 + $0x68] sm:$0xff] }
 0x163   : > { %v2309_v51 = vpop.eup %2308 }
 0x164   : > { %v3022_v52 = vmul.f32 %v2309_v51, %v2854_v40  ;;  %v1007_v40 = vld [vmem:[%s2773_s27 + $0x60] sm:$0xff]  ;;  %s1948_s27 = sshll.u32 %s2510_s16, 7 }
 0x165   : > { %v1204_v51 = vld [vmem:[%s2808_s30 + $0xe0] sm:$0xff]  ;;  %s1701_s11 = scalar_lea.hbm %s3432_s5, %s1948_s27 }
 0x166   : > { %2125 = vmatmul.mubr.msk.f32.vlgmr.msra.gmra.mxu1 %vm558_vm1, %v3022_v52 }
 0x167   : > { %1998 = vmatpush3.msra.mxu1 %v1010_v55  ;;  %v1237_v55 = vld [vmem:[%s2808_s30 + $0x1e8] sm:$0xff] }
 0x168   : > { %1999 = vmatprep.subr.mxu1 %v1025_v58  ;;  %v1188_v58 = vld [vmem:[%s2808_s30 + $0x60] sm:$0xff] }
 0x169   : > { %2000 = vmatpush3.msra.mxu1 %v1009_v59  ;;  %v1221_v59 = vld [vmem:[%s2808_s30 + $0x168] sm:$0xff] }
 0x16a   : > { %2001 = vmatprep.subr.mxu1 %v1024_v62  ;;  %v1203_v62 = vld [vmem:[%s2808_s30 + $0xd8] sm:$0xff] }
 0x16b   : > { %2002 = vmatpush3.msra.mxu1 %v1008_v63  ;;  %v1236_v63 = vld [vmem:[%s2808_s30 + $0x1e0] sm:$0xff] }
 0x16c   : > { %2003 = vmatprep.subr.mxu1 %v1023_v0  ;;  %v1187_v0 = vld [vmem:[%s2808_s30 + $0x58] sm:$0xff] }
 0x16d   : > { %2004 = vmatpush3.msra.mxu1 %v1007_v40  ;;  %v1220_v40 = vld [vmem:[%s2808_s30 + $0x160] sm:$0xff] }
 0x16e   : > { %2005 = vmatprep.subr.mxu1 %v1022_v5  ;;  %v1202_v5 = vld [vmem:[%s2808_s30 + $0xd0] sm:$0xff] }
 0x16f   : > { %2006 = vmatpush3.msra.mxu1 %v1006_v7  ;;  %v1235_v7 = vld [vmem:[%s2808_s30 + $0x1d8] sm:$0xff] }
 0x170   : > { %2007 = vmatprep.subr.mxu1 %v1021_v8  ;;  %v1186_v8 = vld [vmem:[%s2808_s30 + $0x50] sm:$0xff] }
 0x171   : > { %2008 = vmatpush3.msra.mxu1 %v1005_v10  ;;  %v1219_v10 = vld [vmem:[%s2808_s30 + $0x158] sm:$0xff] }
 0x172   : > { %2009 = vmatprep.subr.mxu1 %v1020_v54  ;;  %v1201_v54 = vld [vmem:[%s2808_s30 + $0xc8] sm:$0xff] }
 0x173   : > { %2010 = vmatpush3.msra.mxu1 %v1004_v2  ;;  %v1234_v2 = vld [vmem:[%s2808_s30 + $0x1d0] sm:$0xff] }
 0x174   : > { %2011 = vmatprep.subr.mxu1 %v1019_v11  ;;  %v1185_v11 = vld [vmem:[%s2808_s30 + $0x48] sm:$0xff] }
 0x175   : > { %2012 = vmatpush3.msra.mxu1 %v1003_v46  ;;  %v1218_v46 = vld [vmem:[%s2808_s30 + $0x150] sm:$0xff] }
 0x176   : > { %2013 = vmatprep.subr.mxu1 %v1018_v1  ;;  %v1200_v1 = vld [vmem:[%s2808_s30 + $0xc0] sm:$0xff] }
 0x177   : > { %2014 = vmatpush3.msra.mxu1 %v1002_v3  ;;  %v1233_v3 = vld [vmem:[%s2808_s30 + $0x1c8] sm:$0xff] }
 0x178   : > { %2015 = vmatprep.subr.mxu1 %v1017_v22  ;;  %v1184_v22 = vld [vmem:[%s2808_s30 + $0x40] sm:$0xff] }
 0x179   : > { %2016 = vmatpush3.msra.mxu1 %v1001_v15  ;;  %v1217_v15 = vld [vmem:[%s2808_s30 + $0x148] sm:$0xff] }
 0x17a   : > { %2017 = vmatprep.subr.mxu1 %v1016_v16  ;;  %v1199_v16 = vld [vmem:[%s2808_s30 + $0xb8] sm:$0xff] }
 0x17b   : > { %2018 = vmatpush3.msra.mxu1 %v1000_v18  ;;  %v1232_v18 = vld [vmem:[%s2808_s30 + $0x1c0] sm:$0xff] }
 0x17c   : > { %2019 = vmatprep.subr.mxu1 %v1015_v19  ;;  %v1183_v19 = vld [vmem:[%s2808_s30 + $0x38] sm:$0xff] }
 0x17d   : > { %2020 = vmatpush3.msra.mxu1 %v999_v57  ;;  %v1216_v57 = vld [vmem:[%s2808_s30 + $0x140] sm:$0xff] }
 0x17e   : > { %2021 = vmatprep.subr.mxu1 %v1014_v20  ;;  %v1198_v20 = vld [vmem:[%s2808_s30 + $0xb0] sm:$0xff] }
 0x17f   : > { %2022 = vmatpush3.msra.mxu1 %v998_v21  ;;  %v1231_v21 = vld [vmem:[%s2808_s30 + $0x1b8] sm:$0xff] }
 0x180   : > { %2023 = vmatprep.subr.mxu1 %v1013_v23  ;;  %v1182_v23 = vld [vmem:[%s2808_s30 + $0x30] sm:$0xff] }
 0x181   : > { %2024 = vmatpush3.msra.mxu1 %v997_v24  ;;  %v1215_v24 = vld [vmem:[%s2808_s30 + $0x138] sm:$0xff] }
 0x182   : > { %2025 = vmatprep.subr.mxu1 %v1012_v27  ;;  %v1197_v27 = vld [vmem:[%s2808_s30 + $0xa8] sm:$0xff] }
 0x183   : > { %2026 = vmatpush3.msra.mxu1 %v996_v47  ;;  %v1230_v47 = vld [vmem:[%s2808_s30 + $0x1b0] sm:$0xff] }
 0x184   : > { %2027 = vmatprep.subr.mxu1 %v1011_v28  ;;  %v1181_v28 = vld [vmem:[%s2808_s30 + $0x28] sm:$0xff] }
 0x185   : > { %2028 = vmatpush3.msra.mxu1 %v995_v29  ;;  %v1214_v29 = vld [vmem:[%s2808_s30 + $0x130] sm:$0xff] }
 0x186   : > { %2127 = vmatprep.subr.mxu1 %v2529_v4 }
 0x1b0   : > { %v2284_v31 = vpop.permute.xlu1 %2283 }
 0x1b1   : > { %v2286_v61 = vunpack.i.h.bf16 %v2284_v31  ;;  %v2285_v33 = vunpack.i.l.bf16 %v2284_v31  ;;  %v1229_v31 = vld [vmem:[%s2808_s30 + $0x1a8] sm:$0xff] }
 0x1bb   : > { %v2279_v43 = vpop.permute.xlu0 %2278 }
 0x1bc   : > { %v2281_v9 = vunpack.i.h.bf16 %v2279_v43  ;;  %v2280_v32 = vunpack.i.l.bf16 %v2279_v43  ;;  %v1196_v43 = vld [vmem:[%s2808_s30 + $0xa0] sm:$0xff] }
 0x1be   : > { %v840_v50 = vsel %vm558_vm1, %v3019_v48, %v2281_v9  ;;  %v845_v30 = vsel %vm558_vm1, %v3017_v39, %v2280_v32  ;;  %v1191_v39 = vld [vmem:[%s2808_s30 + $0x78] sm:$0xff]  ;;  %v1238_v48 = vld [vmem:[%s2808_s30 + $0x1f0] sm:$0xff]  ;;  %v1180_v9 = vld [vmem:[%s2808_s30 + $0x20] sm:$0xff] }
 0x1bf   : > { %v846_v44 = vsel %vm841_vm8, %v845_v30, %v2285_v33  ;;  %v842_v49 = vsel %vm841_vm8, %v840_v50, %v2286_v61  ;;  %v1213_v32 = vld [vmem:[%s2808_s30 + $0x128] sm:$0xff]  ;;  %v1195_v61 = vld [vmem:[%s2808_s30 + $0x98] sm:$0xff]  ;;  %v1228_v33 = vld [vmem:[%s2808_s30 + $0x1a0] sm:$0xff] }
 0x1c0   : > { %v1179_v50 = vld [vmem:[%s2808_s30 + $0x18] sm:$0xff]  ;;  %v1212_v30 = vld [vmem:[%s2808_s30 + $0x120] sm:$0xff] }
 0x1c2   : > { %v2289_v13 = vpop.permute.xlu1 %2288 }
 0x1c3   : > { %v2291_v34 = vunpack.i.h.bf16 %v2289_v13  ;;  %v2290_v35 = vunpack.i.l.bf16 %v2289_v13  ;;  %v1194_v13 = vld [vmem:[%s2808_s30 + $0x90] sm:$0xff] }
 0x1c5   : > { %v847_v36 = vsel %vm843_vm9, %v846_v44, %v2290_v35  ;;  %v844_v12 = vsel %vm843_vm9, %v842_v49, %v2291_v34  ;;  %v1178_v34 = vld [vmem:[%s2808_s30 + $0x10] sm:$0xff]  ;;  %v1193_v35 = vld [vmem:[%s2808_s30 + $0x88] sm:$0xff] }
 0x1c6   : > { %912 = vmatprep.mubr.f32.mxu0 %v847_v36  ;;  %1091 = vmatprep.mubr.f32.mxu1 %v847_v36 }
 0x1c7   : > { %913 = vmatmul.mubr.f32.vlgmr.msra.gmra.mxu0 %v844_v12  ;;  %1092 = vmatmul.mubr.f32.vlgmr.msra.gmra.mxu1 %v844_v12 }
 0x1c8   : > { %2128 = vmatpush3.msra.mxu1 %v994_v37  ;;  %2135 = vmatprep.mubr.msk.f32.mxu1 %vm2530_vm2, %v2529_v4 }
 0x1c9   : > { %2129 = vmatprep.subr.mxu1 %v2529_v4  ;;  %2038 = vmatpush3.msra.mxu0 %v1191_v39 }
 0x1ca   : > { %2130 = vmatpush3.msra.mxu1 %v993_v38  ;;  %2039 = vmatprep.subr.mxu0 %v1206_v60 }
 0x1cb   : > { %2131 = vmatprep.subr.mxu1 %v2529_v4  ;;  %2040 = vmatpush3.msra.mxu0 %v1190_v25 }
 0x1cc   : > { %2132 = vmatpush3.msra.mxu1 %v992_v41  ;;  %2041 = vmatprep.subr.mxu0 %v1205_v53 }
 0x1cd   : > { %2133 = vmatprep.subr.mxu1 %v2529_v4  ;;  %2042 = vmatpush3.msra.mxu0 %v1189_v6 }
 0x1ce   : > { %2134 = vmatpush3.msra.mxu1 %v991_v14  ;;  %2043 = vmatprep.subr.mxu0 %v1204_v51 }
 0x1cf   : > { %2136 = vmatmul.mubr.msk.f32.vlgmr.msra.gmra.mxu1 %vm558_vm1, %v3022_v52  ;;  %2072 = vmatprep.subr.mxu1 %v1239_v26  ;;  %v1222_v52 = vld [vmem:[%s2808_s30 + $0x170] sm:$0xff] }
 0x1d0   : > { %2073 = vmatpush3.msra.mxu1 %v1223_v17  ;;  %2044 = vmatpush3.msra.mxu0 %v1188_v58 }
 0x1d1   : > { %2074 = vmatprep.subr.mxu1 %v1238_v48  ;;  %2045 = vmatprep.subr.mxu0 %v1203_v62 }
 0x1d2   : > { %2075 = vmatpush3.msra.mxu1 %v1222_v52  ;;  %2046 = vmatpush3.msra.mxu0 %v1187_v0 }
 0x1d3   : > { %2076 = vmatprep.subr.mxu1 %v1237_v55  ;;  %2047 = vmatprep.subr.mxu0 %v1202_v5 }
 0x1d4   : > { %2077 = vmatpush3.msra.mxu1 %v1221_v59  ;;  %2048 = vmatpush3.msra.mxu0 %v1186_v8 }
 0x1d5   : > { %2078 = vmatprep.subr.mxu1 %v1236_v63  ;;  %2049 = vmatprep.subr.mxu0 %v1201_v54 }
 0x1d6   : > { %2079 = vmatpush3.msra.mxu1 %v1220_v40  ;;  %2050 = vmatpush3.msra.mxu0 %v1185_v11 }
 0x1d7   : > { %2080 = vmatprep.subr.mxu1 %v1235_v7  ;;  %2051 = vmatprep.subr.mxu0 %v1200_v1 }
 0x1d8   : > { %2081 = vmatpush3.msra.mxu1 %v1219_v10  ;;  %2052 = vmatpush3.msra.mxu0 %v1184_v22 }
 0x1d9   : > { %2082 = vmatprep.subr.mxu1 %v1234_v2  ;;  %2053 = vmatprep.subr.mxu0 %v1199_v16 }
 0x1da   : > { %2083 = vmatpush3.msra.mxu1 %v1218_v46  ;;  %2054 = vmatpush3.msra.mxu0 %v1183_v19 }
 0x1db   : > { %2084 = vmatprep.subr.mxu1 %v1233_v3  ;;  %2055 = vmatprep.subr.mxu0 %v1198_v20 }
 0x1dc   : > { %2085 = vmatpush3.msra.mxu1 %v1217_v15  ;;  %2056 = vmatpush3.msra.mxu0 %v1182_v23 }
 0x1dd   : > { %2086 = vmatprep.subr.mxu1 %v1232_v18  ;;  %2057 = vmatprep.subr.mxu0 %v1197_v27 }
 0x1de   : > { %2087 = vmatpush3.msra.mxu1 %v1216_v57  ;;  %2058 = vmatpush3.msra.mxu0 %v1181_v28 }
 0x1df   : > { %2088 = vmatprep.subr.mxu1 %v1231_v21  ;;  %2059 = vmatprep.subr.mxu0 %v1196_v43 }
 0x1e0   : > { %2089 = vmatpush3.msra.mxu1 %v1215_v24  ;;  %2060 = vmatpush3.msra.mxu0 %v1180_v9 }
 0x1e1   : > { %2090 = vmatprep.subr.mxu1 %v1230_v47  ;;  %2061 = vmatprep.subr.mxu0 %v1195_v61 }
 0x1e2   : > { %2091 = vmatpush3.msra.mxu1 %v1214_v29  ;;  %2062 = vmatpush3.msra.mxu0 %v1179_v50 }
 0x1e3   : > { %2092 = vmatprep.subr.mxu1 %v1229_v31  ;;  %2063 = vmatprep.subr.mxu0 %v1194_v13 }
 0x1e4   : > { %2093 = vmatpush3.msra.mxu1 %v1213_v32  ;;  %2064 = vmatpush3.msra.mxu0 %v1178_v34 }
 0x1e5   : > { %2094 = vmatprep.subr.mxu1 %v1228_v33  ;;  %2065 = vmatprep.subr.mxu0 %v1193_v35 }
 0x1e6   : > { %2095 = vmatpush3.msra.mxu1 %v1212_v30 }
 0x226   : > { %v3075_v42 = vpop.f32.mrf.mxu1 }
 0x228   : > { %v2126_v45 = vpop.f32.mrf.mxu1 }
 0x287   : > { %v1989_v44 = vpop.f32.mrf.mxu0  ;;  %v2029_v49 = vpop.f32.mrf.mxu1 }
 0x289   : > { %v1990_v36 = vpop.f32.mrf.mxu0  ;;  %v2030_v12 = vpop.f32.mrf.mxu1 }
 0x28a   : > { %v1991_v37 = vadd.f32 %v1990_v36, %v1989_v44  ;;  %v2031_v38 = vadd.f32 %v2030_v12, %v2029_v49  ;;  %v1177_v44 = vld [vmem:[%s2808_s30 + $0x8] sm:$0xff]  ;;  %v1227_v49 = vld [vmem:[%s2808_s30 + $0x198] sm:$0xff]  ;;  %v1192_v36 = vld [vmem:[%s2808_s30 + $0x80] sm:$0xff] }
 0x28b   : > { %2066 = vmatpush3.msra.mxu0 %v1177_v44  ;;  %2096 = vmatprep.subr.mxu1 %v1227_v49 }
 0x28c   : > { %v988_v14 = vadd.f32 %v1991_v37, %v3075_v42  ;;  %2067 = vmatprep.subr.mxu0 %v1192_v36 }
 0x28f   : > { %v1163_v41 = vpop.f32.mrf.mxu1 }
 0x290   : > { %v1164_v45 = vadd.f32 %v2031_v38, %v1163_v41 }
 0x291   : > { %v2137_v56 = vpop.f32.mrf.mxu1 }
 0x292   : > { %v3131_v39 = vmul.f32 %v1164_v45, %v988_v14  ;;  %v1211_v14 = vld [vmem:[%s2808_s30 + $0x118] sm:$0xff]  ;;  %v1176_v45 = vld [vmem:[%s2808_s30] sm:$0xff]  ;;  %v1226_v56 = vld [vmem:[%s2808_s30 + $0x190] sm:$0xff] }
 0x293   : > { %2097 = vmatpush3.msra.mxu1 %v1211_v14  ;;  %2068 = vmatpush3.msra.mxu0 %v1176_v45 }
 0x294   : > { %vm1251_vm10 = vcmp.ge.f32.partialorder %v3131_v39, -1.8  ;;  %vm1252_vm11 = vcmp.lt.f32.partialorder %v3131_v39, -1.4  ;;  %vm1255_vm12 = vcmp.ge.f32.partialorder %v3131_v39, -1.4  ;;  %2098 = vmatprep.subr.mxu1 %v1226_v56  ;;  %2138 = vmatprep.subr.mxu0 %v2529_v4 }
 0x295   : > { %vm1253_vm13 = vmand %vm1251_vm10, %vm1252_vm11  ;;  %vm1256_vm14 = vcmp.lt.f32.partialorder %v3131_v39, -1.0  ;;  %vm1259_vm15 = vcmp.ge.f32.partialorder %v3131_v39, -1.0  ;;  %vm1260_vm0 = vcmp.lt.f32.partialorder %v3131_v39, -0.6  ;;  %vm1263_vm3 = vcmp.ge.f32.partialorder %v3131_v39, -0.6 }
 0x296   : > { %vm1257_vm4 = vmand %vm1255_vm12, %vm1256_vm14  ;;  %vm1264_vm7 = vcmp.lt.f32.partialorder %v3131_v39, -0.19999999  ;;  %vm1267_vm5 = vcmp.ge.f32.partialorder %v3131_v39, -0.19999999  ;;  %v1301_v42 = vsub.f32 -1.0, %v3131_v39  ;;  %v3146_v60 = vadd.f32 1.0, %v3131_v39 }
 0x297   : > { %vm1261_vm6 = vmand %vm1259_vm15, %vm1260_vm0  ;;  %vm1268_vm9 = vcmp.lt.f32.partialorder %v3131_v39, 0.20000005  ;;  %vm1271_vm10 = vcmp.ge.f32.partialorder %v3131_v39, 0.20000005  ;;  %v3149_v25 = vsel %vm1253_vm13, 1.0, %v2529_v4  ;;  %v1258_v53 = vsel %vm1257_vm4, 1.0, %v2529_v4 }
 0x298   : > { %vm1265_vm11 = vmand %vm1263_vm3, %vm1264_vm7  ;;  %vm1272_vm12 = vcmp.lt.f32.partialorder %v3131_v39, 0.6  ;;  %v3154_v26 = vadd.f32 1.8, %v3131_v39  ;;  %v1262_v17 = vsel %vm1261_vm6, 1.0, %v2529_v4  ;;  %v1376_v59 = vmul.f32 1.25, %v3146_v60 }
 0x299   : > { %v1266_v6 = vsel %vm1265_vm11, 1.0, %v2529_v4  ;;  %vm1269_vm14 = vmand %vm1267_vm5, %vm1268_vm9  ;;  %v1302_v48 = vmul.f32 2.5000002, %v1301_v42  ;;  %v3161_v51 = vadd.f32 1.4, %v3131_v39  ;;  %vm1276_vm15 = vcmp.lt.f32.partialorder %v3131_v39, 1.0 }
 0x29a   : > { %v1270_v52 = vsel %vm1269_vm14, 1.0, %v2529_v4  ;;  %vm1273_vm13 = vmand %vm1271_vm10, %vm1272_vm12  ;;  %v1299_v55 = vmul.f32 2.5000002, %v3154_v26  ;;  %v3166_v58 = vsub.f32 -0.6, %v3131_v39  ;;  %vm1279_vm0 = vcmp.ge.f32.partialorder %v3131_v39, 1.0 }
 0x29b   : > { %v3170_v62 = vsel %vm1273_vm13, 1.0, %v2529_v4  ;;  %v1303_v63 = vmul.f32 %v1302_v48, %v1258_v53  ;;  %v1306_v0 = vmul.f32 2.5000002, %v3161_v51  ;;  %v1313_v40 = vmul.f32 2.5000002, %v3146_v60 }
 0x29c   : > { %v1300_v5 = vmul.f32 %v1299_v55, %v3149_v25  ;;  %v1309_v7 = vmul.f32 2.5000002, %v3166_v58  ;;  %v1315_v8 = vsub.f32 -0.19999999, %v3131_v39  ;;  %v3178_v10 = vadd.f32 0.6, %v3131_v39 }
 0x29d   : > { %v1307_v54 = vmul.f32 %v1306_v0, %v1258_v53  ;;  %v1314_v2 = vmul.f32 %v1313_v40, %v1262_v17  ;;  %v3181_v11 = vsub.f32 0.20000005, %v3131_v39  ;;  %v3184_v46 = vadd.f32 0.19999999, %v3131_v39 }
 0x29e   : > { %v3186_v1 = vadd.f32 %v1303_v63, %v1300_v5  ;;  %v1310_v3 = vmul.f32 %v1309_v7, %v1262_v17  ;;  %v1316_v22 = vmul.f32 2.4999998, %v1315_v8  ;;  %v1320_v15 = vmul.f32 2.4999998, %v3178_v10 }
 0x29f   : > { %v1323_v16 = vmul.f32 2.4999998, %v3181_v11  ;;  %v1327_v18 = vmul.f32 2.4999998, %v3184_v46  ;;  %v1329_v19 = vsub.f32 0.6, %v3131_v39 }
 0x2a0   : > { %v1311_v57 = vadd.f32 %v1310_v3, %v1307_v54  ;;  %v1317_v20 = vmul.f32 %v1316_v22, %v1266_v6  ;;  %v1321_v21 = vmul.f32 %v1320_v15, %v1266_v6  ;;  %v1366_v23 = vmul.f32 1.2500001, %v3154_v26 }
 0x2a1   : > { %v1324_v24 = vmul.f32 %v1323_v16, %v1270_v52  ;;  %v1328_v27 = vmul.f32 %v1327_v18, %v1270_v52  ;;  %v1330_v47 = vmul.f32 2.5000002, %v1329_v19  ;;  %v1368_v28 = vmul.f32 1.2500001, %v3166_v58  ;;  %v1210_v52 = vld [vmem:[%s2808_s30 + $0x110] sm:$0xff] }
 0x2a2   : > { %v1318_v29 = vadd.f32 %v1317_v20, %v1314_v2  ;;  %v1367_v43 = vmul.f32 %v1366_v23, %v3186_v1  ;;  %v1371_v31 = vmul.f32 1.2500001, %v3161_v51  ;;  %v1373_v9 = vmul.f32 1.25, %v1315_v8  ;;  %2099 = vmatpush3.msra.mxu1 %v1210_v52 }
 0x2a3   : > { %v1325_v32 = vadd.f32 %v1324_v24, %v1321_v21  ;;  %v1331_v61 = vmul.f32 %v1330_v47, %v3170_v62  ;;  %v1369_v33 = vmul.f32 %v1368_v28, %v1311_v57  ;;  %v1378_v50 = vmul.f32 1.2499999, %v3181_v11 }
 0x2a4   : > { %v1372_v30 = vmul.f32 %v1371_v31, %v1311_v57  ;;  %v1374_v13 = vmul.f32 %v1373_v9, %v1318_v29  ;;  %v1377_v34 = vmul.f32 %v1376_v59, %v1318_v29  ;;  %v1381_v35 = vmul.f32 1.2499999, %v3178_v10 }
 0x2a5   : > { %v3204_v12 = vadd.f32 %v1331_v61, %v1328_v27  ;;  %v3206_v37 = vadd.f32 %v1369_v33, %v1367_v43  ;;  %v1379_v38 = vmul.f32 %v1378_v50, %v1325_v32  ;;  %v1383_v41 = vmul.f32 1.25, %v1329_v19 }
 0x2a6   : > { %v3211_v53 = vadd.f32 %v1374_v13, %v1372_v30  ;;  %v1382_v17 = vmul.f32 %v1381_v35, %v1325_v32  ;;  %v1411_v6 = vmul.f32 0.8333334, %v3154_v26  ;;  %v1413_v48 = vmul.f32 0.8333333, %v1315_v8 }
 0x2a7   : > { %v3215_v55 = vadd.f32 %v1379_v38, %v1377_v34  ;;  %v1384_v59 = vmul.f32 %v1383_v41, %v3204_v12  ;;  %v1421_v63 = vmul.f32 0.8333333, %v3146_v60  ;;  %v1423_v0 = vmul.f32 0.8333333, %v1329_v19 }
 0x2a8   : > { %v1412_v40 = vmul.f32 %v1411_v6, %v3206_v37  ;;  %v1414_v5 = vmul.f32 %v1413_v48, %v3211_v53  ;;  %vm1275_vm3 = vcmp.ge.f32.partialorder %v3131_v39, 0.6  ;;  %vm1280_vm4 = vcmp.lt.f32.partialorder %v3131_v39, 1.4000001 }
 0x2a9   : > { %v3224_v26 = vadd.f32 %v1384_v59, %v1382_v17  ;;  %v1422_v7 = vmul.f32 %v1421_v63, %v3215_v55  ;;  %vm1277_vm7 = vmand %vm1275_vm3, %vm1276_vm15  ;;  %vm1283_vm5 = vcmp.ge.f32.partialorder %v3131_v39, 1.4000001  ;;  %vm1284_vm6 = vcmp.lt.f32.partialorder %v3131_v39, 1.8 }
 0x2aa   : > { %v1415_v60 = vadd.f32 %v1414_v5, %v1412_v40  ;;  %v1278_v8 = vsel %vm1277_vm7, 1.0, %v2529_v4  ;;  %vm1281_vm9 = vmand %vm1279_vm0, %vm1280_vm4  ;;  %vm1287_vm10 = vcmp.ge.f32.partialorder %v3131_v39, 1.8  ;;  %vm1288_vm11 = vcmp.lt.f32.partialorder %v3131_v39, 2.2 }
 0x2ab   : > { %v1424_v54 = vmul.f32 %v1423_v0, %v3224_v26  ;;  %v1282_v2 = vsel %vm1281_vm9, 1.0, %v2529_v4  ;;  %vm1285_vm12 = vmand %vm1283_vm5, %vm1284_vm6  ;;  %v3239_v3 = vadd.f32 -0.20000005, %v3131_v39  ;;  %v3242_v22 = vsub.f32 1.0, %v3131_v39 }
 0x2ac   : > { %v1286_v15 = vsel %vm1285_vm12, 1.0, %v2529_v4  ;;  %vm1289_vm14 = vmand %vm1287_vm10, %vm1288_vm11  ;;  %v1943_v16 = vadd.f32 -0.6, %v3131_v39  ;;  %v1343_v18 = vsub.f32 1.4000001, %v3131_v39  ;;  %v1944_v19 = vadd.f32 -1.0, %v3131_v39 }
 0x2ad   : > { %v1425_v57 = vadd.f32 %v1424_v54, %v1422_v7  ;;  %v1290_v20 = vsel %vm1289_vm14, 1.0, %v2529_v4  ;;  %v1334_v21 = vmul.f32 2.5000002, %v3239_v3  ;;  %v1337_v23 = vmul.f32 2.5000002, %v3242_v22 }
 0x2ae   : > { %v1341_v24 = vmul.f32 2.5000002, %v1943_v16  ;;  %v1344_v27 = vmul.f32 2.4999995, %v1343_v18  ;;  %v1348_v47 = vmul.f32 2.4999995, %v1944_v19 }
 0x2af   : > { %v2292_v28 = vpack.i.bf16 %v1415_v60, %v1425_v57  ;;  %v1335_v29 = vmul.f32 %v1334_v21, %v3170_v62  ;;  %v1338_v43 = vmul.f32 %v1337_v23, %v1278_v8  ;;  %v3253_v31 = vsub.f32 1.8, %v3131_v39  ;;  %v1225_v60 = vld [vmem:[%s2808_s30 + $0x188] sm:$0xff]  ;;  %v1224_v57 = vld [vmem:[%s2808_s30 + $0x180] sm:$0xff] }
 0x2b0   : > { %v1342_v9 = vmul.f32 %v1341_v24, %v1278_v8  ;;  %v1345_v32 = vmul.f32 %v1344_v27, %v1282_v2  ;;  %v1349_v61 = vmul.f32 %v1348_v47, %v1282_v2  ;;  %v1945_v33 = vadd.f32 -1.4000001, %v3131_v39  ;;  %2100 = vmatprep.subr.mxu1 %v1225_v60 }
 0x2b1   : > { %2293 = vrot.lane.b32.xlu1 %v2292_v28, %s2531_s9  ;;  %v1339_v50 = vadd.f32 %v1338_v43, %v1335_v29  ;;  %v1351_v30 = vmul.f32 2.500001, %v3253_v31  ;;  %v1357_v13 = vsub.f32 2.2, %v3131_v39  ;;  %v1386_v34 = vmul.f32 1.25, %v3184_v46  ;;  %v1208_v29 = vld [vmem:[%s2808_s30 + $0x100] sm:$0xff] }
 0x2b2   : > { %v1346_v35 = vadd.f32 %v1345_v32, %v1342_v9  ;;  %v1355_v62 = vmul.f32 2.500001, %v1945_v33  ;;  %v1388_v44 = vmul.f32 1.2500001, %v3242_v22  ;;  %v1391_v49 = vmul.f32 1.2500001, %v3239_v3 }
 0x2b3   : > { %v1352_v36 = vmul.f32 %v1351_v30, %v1286_v15  ;;  %v1358_v38 = vmul.f32 2.4999995, %v1357_v13  ;;  %v1387_v41 = vmul.f32 %v1386_v34, %v3204_v12  ;;  %v1393_v14 = vmul.f32 1.2499999, %v1343_v18 }
 0x2b4   : > { %v1356_v45 = vmul.f32 %v1355_v62, %v1286_v15  ;;  %v1389_v56 = vmul.f32 %v1388_v44, %v1339_v50  ;;  %v1392_v17 = vmul.f32 %v1391_v49, %v1339_v50  ;;  %v1396_v6 = vmul.f32 1.2499999, %v1943_v16  ;;  %v1209_v15 = vld [vmem:[%s2808_s30 + $0x108] sm:$0xff] }
 0x2b5   : > { %v1353_v48 = vadd.f32 %v1352_v36, %v1349_v61  ;;  %v1359_v52 = vmul.f32 %v1358_v38, %v1290_v20  ;;  %v1394_v59 = vmul.f32 %v1393_v14, %v1346_v35  ;;  %v1398_v63 = vmul.f32 1.2500001, %v3253_v31  ;;  %2101 = vmatpush3.msra.mxu1 %v1209_v15  ;;  %v1173_v15 = vld [vmem:[%s2806_s14 + $0x28] sm:$0xff] }
 0x2b6   : > { %v1390_v0 = vadd.f32 %v1389_v56, %v1387_v41  ;;  %v1397_v40 = vmul.f32 %v1396_v6, %v1346_v35  ;;  %v1401_v5 = vmul.f32 1.2500001, %v1944_v19  ;;  %v1403_v7 = vmul.f32 1.2500001, %v1357_v13  ;;  %2102 = vmatprep.subr.mxu1 %v1224_v57  ;;  %v1172_v57 = vld [vmem:[%s2806_s14 + $0x20] sm:$0xff] }
 0x2b7   : > { %v1360_v8 = vadd.f32 %v1359_v52, %v1356_v45  ;;  %v1395_v54 = vadd.f32 %v1394_v59, %v1392_v17  ;;  %v1399_v12 = vmul.f32 %v1398_v63, %v1353_v48  ;;  %v1431_v2 = vmul.f32 0.8333333, %v3184_v46  ;;  %2103 = vmatpush3.msra.mxu1 %v1208_v29 }
 0x2b8   : > { %v1402_v21 = vmul.f32 %v1401_v5, %v1353_v48  ;;  %v1433_v23 = vmul.f32 0.8333333, %v1343_v18  ;;  %v1441_v20 = vmul.f32 0.8333334, %v1943_v16  ;;  %v1443_v24 = vmul.f32 0.8333333, %v1357_v13 }
 0x2b9   : > { %v1400_v27 = vadd.f32 %v1399_v12, %v1397_v40  ;;  %v1404_v47 = vmul.f32 %v1403_v7, %v1360_v8  ;;  %v1432_v28 = vmul.f32 %v1431_v2, %v1390_v0  ;;  %v1416_v19 = vmul.f32 0.8333333, %v3161_v51  ;;  %v1175_v12 = vld [vmem:[%s2806_s14 + $0x38] sm:$0xff]  ;;  %v1174_v2 = vld [vmem:[%s2806_s14 + $0x30] sm:$0xff] }
 0x2ba   : > { %v1434_v43 = vmul.f32 %v1433_v23, %v1395_v54  ;;  %v1418_v9 = vmul.f32 0.8333333, %v3181_v11  ;;  %vm1247_vm13 = vcmp.ge.f32.partialorder %v3131_v39, -2.2  ;;  %vm1248_vm15 = vcmp.lt.f32.partialorder %v3131_v39, -1.8 }
 0x2bb   : > { %v1405_v46 = vadd.f32 %v1404_v47, %v1402_v21  ;;  %v1442_v18 = vmul.f32 %v1441_v20, %v1400_v27  ;;  %v1417_v16 = vmul.f32 %v1416_v19, %v3211_v53  ;;  %vm1249_vm0 = vmand %vm1247_vm13, %vm1248_vm15  ;;  %v1936_v32 = vadd.f32 2.2, %v3131_v39  ;;  %v1171_v21 = vld [vmem:[%s2806_s14 + $0x18] sm:$0xff]  ;;  %v1170_v23 = vld [vmem:[%s2806_s14 + $0x10] sm:$0xff] }
 0x2bc   : > { %v1419_v61 = vmul.f32 %v1418_v9, %v3215_v55  ;;  %v1250_v51 = vsel %vm1249_vm0, 1.0, %v2529_v4  ;;  %v1294_v33 = vsub.f32 -1.4, %v3131_v39  ;;  %v1435_v50 = vadd.f32 %v1434_v43, %v1432_v28  ;;  %v1169_v20 = vld [vmem:[%s2806_s14 + $0x8] sm:$0xff] }
 0x2bd   : > { %v1444_v11 = vmul.f32 %v1443_v24, %v1405_v46  ;;  %v1292_v30 = vmul.f32 2.4999995, %v1936_v32  ;;  %v1363_v13 = vmul.f32 1.2500001, %v1301_v42  ;;  %v1408_v62 = vmul.f32 0.8333334, %v3166_v58 }
 0x2be   : > { %v1420_v34 = vadd.f32 %v1419_v61, %v1417_v16  ;;  %v1295_v35 = vmul.f32 2.5000002, %v1294_v33  ;;  %v1436_v55 = vmul.f32 0.8333333, %v3239_v3  ;;  %v1438_v41 = vmul.f32 0.8333334, %v3253_v31 }
 0x2bf   : > { %v1445_v53 = vadd.f32 %v1444_v11, %v1442_v18  ;;  %v1293_v44 = vmul.f32 %v1292_v30, %v1250_v51  ;;  %v1364_v49 = vmul.f32 %v1363_v13, %v3186_v1  ;;  %v1409_v38 = vmul.f32 %v1408_v62, %v3206_v37  ;;  %v1680_v31 = vld [vmem:[%s2796_s22] sm:$0xff]  ;;  %s2402_s22 = sshll.u32 %s2535_s23, 4  ;;  %s2403_s22 = int_to_ptr.vmem [resolvable:$false] %s2402_s22 }
 0x2c0   : > { %v1296_v36 = vmul.f32 %v1295_v35, %v3149_v25  ;;  %v1426_v14 = vmul.f32 0.8333333, %v3178_v10  ;;  %v1361_v45 = vmul.f32 1.2499999, %v1936_v32  ;;  %v1437_v56 = vmul.f32 %v1436_v55, %v1395_v54  ;;  %v1679_v30 = vld [vmem:[%s2810_s12] sm:$0xff]  ;;  %s2404_s16 = scalar_lea.vmem %s2403_s22, 256  ;;  %p2405_p7 = scmp.lt.s32.totalorder %s1704_s18, %s2403_s22 }
 0x2c1   : > { %v2297_v42 = vpack.i.bf16 %v1435_v50, %v1445_v53  ;;  %v1428_v58 = vmul.f32 0.8333333, %v3242_v22  ;;  %v1439_v6 = vmul.f32 %v1438_v41, %v1400_v27  ;;  %v2534_v25 = vmov 0   ;;  %v1168_v27 = vld [vmem:[%s2806_s14] sm:$0xff]  ;;  %p2406_p9 = scmp.lt.s32.totalorder %s2404_s16, %s2398_s6 }
 0x2c2   : > { %v1297_v17 = vadd.f32 %v1296_v36, %v1293_v44  ;;  %v1427_v1 = vmul.f32 %v1426_v14, %v3224_v26  ;;  %2303 = vset.pattern.permute.xlu0 %v2534_v25  ;;  %2302 = vset.pattern.permute.xlu1 %v2534_v25  ;;  %v1406_v59 = vmul.f32 0.8333333, %v1936_v32  ;;  %v1935_v40 = vmul.f32 -1.442695, %v3131_v39 }
 0x2c3   : > { %2298 = vrot.lane.b32.xlu1 %v2297_v42, %s2531_s9  ;;  %v1429_v3 = vmul.f32 %v1428_v58, %v1390_v0  ;;  %v1440_v48 = vadd.f32 %v1439_v6, %v1437_v56  ;;  %p2407_p5 = por %p2406_p9, %p2405_p7 }
 0x2c4   : > { %v1362_v37 = vmul.f32 %v1361_v45, %v1297_v17  ;;  %2310 = vpow2.f32 %v1935_v40 }
 0x2c5   : > { %v1430_v10 = vadd.f32 %v1429_v3, %v1427_v1  ;;  %p2408_p10 = pnand %p2407_p5, %p2401_p1 }
 0x2c6   : > { %v1365_v52 = vadd.f32 %v1364_v49, %v1362_v37 }
 0x2c7   : > { %1683 = vperm.xlu1 %2302, %v1680_v31  }
 0x2c8   : > { %v1407_v22 = vmul.f32 %v1406_v59, %v1365_v52 }
 0x2ca   : > { %v1410_v63 = vadd.f32 %v1409_v38, %v1407_v22 }
 0x2d1   : > { %v2311_v26 = vpop.eup %2310 }
 0x2d2   : > { %v1243_v0 = vadd.f32 1.0, %v2311_v26 }
 0x2d4   : > { %2312 = vrcp.f32 %v1243_v0 }
 0x2e1   : > { %v2313_v24 = vpop.eup %2312 }
 0x2e2   : > { %v1246_v29 = vmul.f32 %v2313_v24, %v3131_v39 }
 0x323   : > { %v2294_v5 = vpop.permute.xlu1 %2293 }
 0x324   : > { %v2296_v7 = vunpack.i.h.bf16 %v2294_v5  ;;  %v2295_v60 = vunpack.i.l.bf16 %v2294_v5 }
 0x326   : > { %v1463_v8 = vsel %vm841_vm8, %v1420_v34, %v2295_v60  ;;  %v1462_v54 = vsel %vm841_vm8, %v1410_v63, %v2296_v7 }
 0x327   : > { %1530 = vmatprep.mubr.f32.mxu0 %v1463_v8 }
 0x328   : > { %1531 = vmatmul.mubr.f32.vlgmr.msra.gmra.mxu0 %v1462_v54 }
 0x329   : > { %2139 = vmatpush3.msra.mxu0 %v1175_v12  ;;  %2154 = vmatprep.mubr.msk.f32.mxu0 %vm2530_vm2, %v2529_v4 }
 0x32a   : > { %2140 = vmatprep.subr.mxu0 %v2529_v4 }
 0x32b   : > { %2141 = vmatpush3.msra.mxu0 %v1174_v2 }
 0x32c   : > { %2142 = vmatprep.subr.mxu0 %v2529_v4 }
 0x32d   : > { %2143 = vmatpush3.msra.mxu0 %v1173_v15 }
 0x32e   : > { %2144 = vmatprep.subr.mxu0 %v2529_v4 }
 0x32f   : > { %2145 = vmatpush3.msra.mxu0 %v1172_v57 }
 0x330   : > { %2146 = vmatprep.subr.mxu0 %v2529_v4 }
 0x331   : > { %2147 = vmatpush3.msra.mxu0 %v1171_v21 }
 0x332   : > { %2148 = vmatprep.subr.mxu0 %v2529_v4 }
 0x333   : > { %2149 = vmatpush3.msra.mxu0 %v1170_v23 }
 0x334   : > { %2150 = vmatprep.subr.mxu0 %v2529_v4 }
 0x335   : > { %v2299_v47 = vpop.permute.xlu1 %2298  ;;  %2151 = vmatpush3.msra.mxu0 %v1169_v20 }
 0x336   : > { %v2301_v28 = vunpack.i.h.bf16 %v2299_v47  ;;  %v2300_v19 = vunpack.i.l.bf16 %v2299_v47  ;;  %2152 = vmatprep.subr.mxu0 %v2529_v4 }
 0x337   : > { %2153 = vmatpush3.msra.mxu0 %v1168_v27 }
 0x338   : > { %v1465_v43 = vsel %vm841_vm8, %v1440_v48, %v2300_v19  ;;  %v1464_v9 = vsel %vm841_vm8, %v1430_v10, %v2301_v28  ;;  %2155 = vmatmul.mubr.msk.f32.vlgmr.msra.gmra.mxu0 %vm841_vm8, %v1246_v29 }
 0x339   : > { %1600 = vmatprep.mubr.f32.mxu1 %v1465_v43 }
 0x33a   : > { %1601 = vmatmul.mubr.f32.vlgmr.msra.gmra.mxu1 %v1464_v9 }
 0x342   : > { %v1684_v50 = vpop.permute.xlu1 %1683 }
 0x3e8   : > { %v2069_v46 = vpop.f32.mrf.mxu0 }
 0x3ea   : > { %v2070_v18 = vpop.f32.mrf.mxu0 }
 0x3eb   : > { %v2071_v61 = vadd.f32 %v2070_v18, %v2069_v46 }
 0x3f8   : > { %v1675_v16 = vpop.f32.mrf.mxu0 }
 0x3fa   : > { %v2104_v32 = vpop.f32.mrf.mxu1  ;;  %v2156_v4 = vpop.f32.mrf.mxu0 }
 0x3fc   : > { %v2105_v39 = vpop.f32.mrf.mxu1 }
 0x3fd   : > { %v2106_v51 = vadd.f32 %v2105_v39, %v2104_v32 }
 0x3ff   : > { %v1603_v33 = vadd.f32 %v2106_v51, %v2071_v61 }
 0x401   : > { %v1676_v11 = vadd.f32 %v1675_v16, %v1603_v33 }
 0x403   : > { %v1686_v13 = vmul.f32 %v1684_v50, %v1676_v11 }
 0x405   : > { %v1687_v34 = vadd.f32 %v1686_v13, %v1679_v30 }
 0x407   : > { %1688 = vst.msk [vmem:[%s2810_s12] sm:$0xff] %vm558_vm1, %v1687_v34 }
 0x408   : > { %2411 = shalt.err (!%p2408_p10)
}
 0x409   : > { %s2412_s25 = scalar_lea.hbm %s1701_s11, 128  ;;  %s2416_s20 = scalar_lea.hbm %s3432_s5, 256 }
 0x40a   : > { %p2413_p11 = scmp.ne.s32.totalorder %s1701_s11, %s2412_s25  ;;  %p2417_p3 = scmp.lt.s32.totalorder %s1701_s11, %s3432_s5 }
 0x40b   : > { %p2418_p8 = scmp.lt.s32.totalorder %s2416_s20, %s2412_s25 }
 0x40c   : > { %p2414_p13 = pnand %p2413_p11, %p2678_p12 }
 0x40d   : > { %p2419_p6 = por %p2418_p8, %p2417_p3 }
 0x40e   : > { %p2415_p4 = pneg %p2414_p13 }
 0x410   : > { %p2420_p0 = pnand %p2419_p6, %p2415_p4 }
 0x412   : > { %2423 = shalt.err (!%p2420_p0)
}
 0x413   : > { %2163 = dma.vmem_to_hbm [thread:$0]  (%p2678_p12), %s1704_s18, 128, %s1701_s11, %s1690_s2  }
 0x414 PF: > { %s3434_s12 = sld [smem:[#allocation12_spill]]  ;;  %p2180_p1 = scmp.ge.s32.totalorder %s2522_s19, 2 }
 0x416   : > { %p2176_p7 = pnand %p2180_p1, %p2688_p2 }
 0x418   : > { %p2177_p9 = pneg %p2176_p7 }
 0x41a   : > { %s1715_s15 = sand.u32 1, %s3434_s12  }
 0x41b   : > { %s1716_s17 = scalar_lea.sflag [#allocation4], %s1715_s15 }
 0x41c   : > { %2477 = dma.done.wait (%p2177_p9), %s1716_s17, 128  }
 0x41d   : > { %2479 = vsyncadd (%p2177_p9), %s1716_s17, 4294967168  ;;  %s28_s19 = sadd.s32 1, %s2522_s19   ;;  %s3436_s9 = sld [smem:[#allocation13_spill]] }
 0x41e   : > { %p25_p5 = scmp.ge.s32.totalorder %s28_s19, 10   ;;  %s3437_s11 = sld [smem:[#allocation21_spill]] }
 0x41f   : > { %s3438_s12 = sld [smem:[#allocation14_spill]]  ;;  %s3445_s30 = smov %s2486_s10 }
 0x420   : > { %s3439_s13 = sld [smem:[#allocation15_spill]] }
 0x421   : > { %s3440_s14 = sld [smem:[#allocation20_spill]]  ;;  %27 = sbr.rel (!%p25_p5) target bundleno = 19 (0x13), region = 144 }
 0x422   : > { %s3441_s15 = sld [smem:[#allocation16_spill]] }
 0x423   : > { %s3442_s16 = sld [smem:[#allocation17_spill]]  ;;  %s3446_s10 = smov %s3436_s9 }
 0x424   : > { %s3443_s17 = sld [smem:[#allocation18_spill]] }
 0x425   : > { %s3444_s18 = sld [smem:[#allocation19_spill]] }
 0x426   :  { %1721 = vsyncpa [#allocation3], 1 }
 0x427   :  { %1723 = vsyncpa [#allocation3 + $0x1], 1 }
 0x428   :  { %1724 = vsyncpa [#allocation6], 1 }
 0x429   :  { %1726 = vsyncpa [#allocation6 + $0x1], 1 }
 0x42a   :  { %1727 = vsyncpa [#allocation4], 1 }
 0x42b   :  { %1729 = vsyncpa [#allocation4 + $0x1], 1 }

</bundles_post_ra>
